<compile_context>
chip_gen: v7x
topology: tpu7x:2x2x1
jax: 0.10.0
libtpu: 0.0.40
codegen_flags: <defaults>
</compile_context>

<pallas_src>
import jax
import jax.numpy as jnp
from jax.experimental import pallas as pl
from jax.experimental.pallas import tpu as pltpu


def _round_up(x, m):
    return (x + m - 1) // m * m


def _estimate_vmem_bytes(Th, W, C, Pd, d, itemsize):
    Lt = Th * W
    Lh_pad = _round_up((Th + 2 * d) * W, 128)
    return (2 * C * Lt * itemsize          # fmap0 tile, double-buffered
            + 2 * Pd * Pd * Lt * 4         # f32 output tile, double-buffered
            + C * Lh_pad * itemsize        # single-buffered fmap1 halo scratch
            + Pd * Lt * 4                  # resident w-mask
            + 2 * C * Lt * 4)              # in-kernel f32 temporaries (f0, window)


def _pick_tile_rows(H, W, C, Pd, d, itemsize, budget_bytes):
    """Largest H-tile (rows) whose live VMEM fits the per-generation budget.

    Th must divide H; unless Th == H we also require Th*W % 128 == 0 so every
    lane-axis block and store stays 128-lane aligned (unmasked vst).
    """
    cands = [Th for Th in range(1, H + 1)
             if H % Th == 0 and (Th == H or (Th * W) % 128 == 0)]
    fitting = [Th for Th in cands
               if _estimate_vmem_bytes(Th, W, C, Pd, d, itemsize) <= budget_bytes]
    Th = max(fitting) if fitting else min(cands)
    return Th, _estimate_vmem_bytes(Th, W, C, Pd, d, itemsize)


def _default_vmem_budget_bytes():
    # v7x: 64 MiB VMEM per TensorCore -> keep the live set ~24 MiB.
    # v5e/v6e: 128 MiB physical -> ~2x larger tiles (raise the scoped limit).
    try:
        kind = jax.devices()[0].device_kind.lower()
    except Exception:
        kind = ""
    return (24 << 20) if "v7" in kind else (48 << 20)


def img2col_corr(fmap0, fmap1, max_disp, dila_patch=1, vmem_budget_bytes=None):
    """Pallas implementation of Img2Col.forward.

    NCHW inputs -> (N, (2*max_disp+1)**2, H, W) float32 output.  The module's
    forward is a stride-1 correlation regardless of dila_patch (dila_patch only
    affects the unused oy/ox buffers), so dila_patch does not change the output.
    """
    del dila_patch
    N, C, H, W = fmap0.shape
    assert fmap1.shape == (N, C, H, W)
    d = int(max_disp)
    Pd = 2 * d + 1

    itemsize = fmap1.dtype.itemsize
    budget = int(vmem_budget_bytes or _default_vmem_budget_bytes())
    Th, est = _pick_tile_rows(H, W, C, Pd, d, itemsize, budget)
    HT = H // Th
    Lt = Th * W                       # lanes per tile (output / fmap0 block width)
    Lh = (Th + 2 * d) * W             # halo window lanes actually needed
    Lh_pad = _round_up(Lh, 128)       # 128-lane aligned halo buffer / DMA size
    vmem_limit = int(min(max(est + (4 << 20), 16 << 20), budget + (8 << 20)))

    # --- wrapper-side data prep (metadata-only reshapes + a small H-only pad) --
    f0 = fmap0.reshape(N, C, H * W)                               # lane-dense
    # Zero-pad fmap1 by d rows top/bottom (supplies the dy zero-pad rows so no
    # h-mask / dynamic roll is needed), flatten, and pad the lane axis so the
    # last tile's fixed-size halo DMA stays in bounds.
    f1p = jnp.pad(fmap1, ((0, 0), (0, 0), (d, d), (0, 0)))
    f1p = f1p.reshape(N, C, (H + 2 * d) * W)
    extra = Lh_pad - Lh
    if extra:
        f1p = jnp.pad(f1p, ((0, 0), (0, 0), (0, extra)))

    # Resident per-dx column-validity masks: lane l <-> (h = l//W, w = l%W);
    # plane dx is valid where 0 <= w + dx - d < W.  Identical for every H-tile.
    w_of_lane = jnp.arange(Lt, dtype=jnp.int32) % W
    col = w_of_lane[None, :] + (jnp.arange(Pd, dtype=jnp.int32) - d)[:, None]
    wmask = ((col >= 0) & (col < W)).astype(jnp.float32)          # (Pd, Lt)

    def kernel(wmask_ref, f0_ref, f1_ref, out_ref, halo_ref, copy_sem):
        n = pl.program_id(0)
        ht = pl.program_id(1)

        # Fetch this tile's (Th + 2d)-row halo window of the H-padded fmap1
        # into VMEM (single buffer).  Self-contained per step so 'parallel'
        # megacore partitioning needs no cross-step priming.
        start = ht * Lt
        if Lt % 128 == 0:
            start = pl.multiple_of(start, 128)
        halo_cp = pltpu.make_async_copy(
            f1_ref.at[n, :, pl.ds(start, Lh_pad)], halo_ref, copy_sem)
        halo_cp.start()
        halo_cp.wait()
        # TODO(synk): double-buffer this halo fetch across grid steps once a
        # core-local "first step" predicate is available (cross-step prefetch
        # under 'parallel' partitioning needs core-aware priming).

        f0 = f0_ref[0].astype(jnp.float32)        # (C, Lt) f32, upcast once
        halo = halo_ref[...]                      # (C, Lh_pad), native dtype (bf16 rolls stay bf16)
        wrows = [wmask_ref[i:i + 1, :] for i in range(Pd)]

        def reduce_c(prod):
            # For large C, do most of the reduction with VPU adds over the
            # leading (vreg-repeat) axis and leave one 8-sublane XLU reduce,
            # keeping the XLU free for the window rolls.
            if C % 8 == 0 and C > 8:
                part = jnp.sum(prod.reshape(C // 8, 8, Lt), axis=0)   # VPU adds
                return jnp.sum(part, axis=0, keepdims=True)           # one XLU reduce
            return jnp.sum(prod, axis=0, keepdims=True)

        for dy in range(Pd):                      # static unroll: Pd*Pd planes
            for dx in range(Pd):
                # Window: win[l] = halo[l + dy*W + dx - d]; lanes that wrap or
                # read the lane padding are exactly the w-masked ones.
                shift = (d - dy * W - dx) % Lh_pad          # static shift
                win = pltpu.roll(halo, shift, axis=1)[:, :Lt]
                corr = reduce_c(f0 * win.astype(jnp.float32))          # (1, Lt)
                ch = dy * Pd + dx
                # Per-plane store into the resident output block (no concat).
                out_ref[0, ch:ch + 1, :] = corr * wrows[dx]

    out = pl.pallas_call(
        kernel,
        out_shape=jax.ShapeDtypeStruct((N, Pd * Pd, H * W), jnp.float32),
        grid_spec=pltpu.PrefetchScalarGridSpec(
            num_scalar_prefetch=0,
            grid=(N, HT),
            in_specs=[
                pl.BlockSpec((Pd, Lt), lambda n, ht: (0, 0)),        # resident w-masks
                pl.BlockSpec((1, C, Lt), lambda n, ht: (n, 0, ht)),  # fmap0 H-tile (lane-dense)
                pl.BlockSpec(memory_space=pl.ANY),                   # padded fmap1 stays in HBM
            ],
            out_specs=pl.BlockSpec((1, Pd * Pd, Lt), lambda n, ht: (n, 0, ht)),
            scratch_shapes=[
                pltpu.VMEM((C, Lh_pad), fmap1.dtype),                # halo window (single buffer)
                pltpu.SemaphoreType.DMA(()),
            ],
        ),
        compiler_params=pltpu.CompilerParams(
            dimension_semantics=("parallel", "parallel"),
            vmem_limit_bytes=vmem_limit),
    )(wmask, f0, f1p)

    # Contiguous, metadata-only reshape back to the module's output layout.
    return out.reshape(N, Pd * Pd, H, W)


def img2col_corr_reference(fmap0, fmap1, max_disp):
    """Pure-JAX reference mirroring the PyTorch/numpy forward."""
    N, C, H, W = fmap0.shape
    d = max_disp
    Pd = 2 * d + 1
    f1p = jnp.pad(fmap1, ((0, 0), (0, 0), (d, d), (d, d)))
    chans = []
    for dy in range(Pd):
        for dx in range(Pd):
            win = f1p[:, :, dy:dy + H, dx:dx + W]
            chans.append(jnp.sum(fmap0 * win, axis=1))
    return jnp.stack(chans, axis=1).astype(jnp.float32)


if __name__ == "__main__":
    # Module config (synthetic): max_disp=3 -> 7x7 = 49 output channels.
    max_disp = 3
    N, C, H, W = 2, 4, 16, 16

    key = jax.random.PRNGKey(0)
    k0, k1 = jax.random.split(key)
    fmap0 = jax.random.normal(k0, (N, C, H, W), dtype=jnp.float32)
    fmap1 = jax.random.normal(k1, (N, C, H, W), dtype=jnp.float32)

    out = img2col_corr(fmap0, fmap1, max_disp)
    out = jax.block_until_ready(out)

    ref = img2col_corr_reference(fmap0, fmap1, max_disp)
    Pd = 2 * max_disp + 1
    assert out.shape == (N, Pd * Pd, H, W), out.shape
    assert out.dtype == jnp.float32
    assert jnp.allclose(out, ref, atol=1e-5, rtol=1e-5), "mismatch vs reference"

    # NOTE: the module's oy/ox buffers are not used by its forward pass, so
    # they are not needed here.
    print("KERNEL_OK")
</pallas_src>

<mosaic_0001>
module attributes {stable_mosaic.version = 11 : i64} {
  func.func @kernel(%arg0: i32, %arg1: i32, %arg2: memref<7x256xf32, #tpu.memory_space<vmem>>, %arg3: memref<1x4x256xf32, #tpu.memory_space<vmem>>, %arg4: memref<2x4x384xf32, #tpu.memory_space<any>>, %arg5: memref<1x49x256xf32, #tpu.memory_space<vmem>>, %arg6: memref<4x384xf32, #tpu.memory_space<vmem>>, %arg7: memref<!tpu.dma_semaphore, #tpu.memory_space<semaphore_mem>>) attributes {dimension_semantics = [#tpu.dimension_semantics<parallel>, #tpu.dimension_semantics<parallel>], iteration_bounds = array<i64: 2, 1>, scalar_prefetch = 0 : i64, scratch_operands = 2 : i64, tpu.core_type = #tpu.core_type<tc>, window_params = [{pipeline_mode = #tpu.pipeline_mode<synchronous>, transform_indices = @transform_0, window_bounds = array<i64: 7, 256>}, {transform_indices = @transform_1, window_bounds = array<i64: 1, 4, 256>}, {}, {transform_indices = @transform_3, window_bounds = array<i64: 1, 49, 256>}]} {
    %c256_i32 = arith.constant 256 : i32
    %0 = arith.muli %arg1, %c256_i32 : i32
    %1 = tpu.assume_multiple %0, 128 : i32
    %c0_i32 = arith.constant 0 : i32
    %2 = tpu.memref_slice %arg4[%arg0, %c0_i32, %1] : memref<2x4x384xf32, #tpu.memory_space<any>> -> memref<1x4x384xf32, #tpu.memory_space<any>>
    %3 = tpu.memref_squeeze %2 : memref<1x4x384xf32, #tpu.memory_space<any>> -> memref<4x384xf32, #tpu.memory_space<any>>
    tpu.enqueue_dma source(%3 : memref<4x384xf32, #tpu.memory_space<any>>) target(%arg6 : memref<4x384xf32, #tpu.memory_space<vmem>>) target_semaphore(%arg7 : memref<!tpu.dma_semaphore, #tpu.memory_space<semaphore_mem>>)
    %c0_i32_0 = arith.constant 0 : i32
    %4 = tpu.memref_slice %arg4[%arg0, %c0_i32_0, %1] : memref<2x4x384xf32, #tpu.memory_space<any>> -> memref<1x4x384xf32, #tpu.memory_space<any>>
    %5 = tpu.memref_squeeze %4 : memref<1x4x384xf32, #tpu.memory_space<any>> -> memref<4x384xf32, #tpu.memory_space<any>>
    tpu.wait_dma2 semaphore(%arg7 : memref<!tpu.dma_semaphore, #tpu.memory_space<semaphore_mem>>) src(%5 : memref<4x384xf32, #tpu.memory_space<any>>) dst(%arg6 : memref<4x384xf32, #tpu.memory_space<vmem>>)
    %c0 = arith.constant 0 : index
    %c0_1 = arith.constant 0 : index
    %c0_2 = arith.constant 0 : index
    %6 = vector.load %arg3[%c0, %c0_1, %c0_2] : memref<1x4x256xf32, #tpu.memory_space<vmem>>, vector<1x4x256xf32>
    %7 = vector.shape_cast %6 : vector<1x4x256xf32> to vector<4x256xf32>
    %c0_3 = arith.constant 0 : index
    %c0_4 = arith.constant 0 : index
    %8 = vector.load %arg6[%c0_3, %c0_4] : memref<4x384xf32, #tpu.memory_space<vmem>>, vector<4x384xf32>
    %c0_5 = arith.constant 0 : index
    %c0_6 = arith.constant 0 : index
    %9 = vector.load %arg2[%c0_5, %c0_6] : memref<7x256xf32, #tpu.memory_space<vmem>>, vector<1x256xf32>
    %c1 = arith.constant 1 : index
    %c0_7 = arith.constant 0 : index
    %10 = vector.load %arg2[%c1, %c0_7] : memref<7x256xf32, #tpu.memory_space<vmem>>, vector<1x256xf32>
    %c2 = arith.constant 2 : index
    %c0_8 = arith.constant 0 : index
    %11 = vector.load %arg2[%c2, %c0_8] : memref<7x256xf32, #tpu.memory_space<vmem>>, vector<1x256xf32>
    %c3 = arith.constant 3 : index
    %c0_9 = arith.constant 0 : index
    %12 = vector.load %arg2[%c3, %c0_9] : memref<7x256xf32, #tpu.memory_space<vmem>>, vector<1x256xf32>
    %c4 = arith.constant 4 : index
    %c0_10 = arith.constant 0 : index
    %13 = vector.load %arg2[%c4, %c0_10] : memref<7x256xf32, #tpu.memory_space<vmem>>, vector<1x256xf32>
    %c5 = arith.constant 5 : index
    %c0_11 = arith.constant 0 : index
    %14 = vector.load %arg2[%c5, %c0_11] : memref<7x256xf32, #tpu.memory_space<vmem>>, vector<1x256xf32>
    %c6 = arith.constant 6 : index
    %c0_12 = arith.constant 0 : index
    %15 = vector.load %arg2[%c6, %c0_12] : memref<7x256xf32, #tpu.memory_space<vmem>>, vector<1x256xf32>
    %c3_i32 = arith.constant 3 : i32
    %16 = tpu.dynamic_rotate %8 by %c3_i32 dim 1 : vector<4x384xf32>, i32 -> vector<4x384xf32>
    %17 = vector.extract_strided_slice %16 {offsets = [0, 0], sizes = [4, 256], strides = [1, 1]} : vector<4x384xf32> to vector<4x256xf32>
    %18 = arith.mulf %7, %17 : vector<4x256xf32>
    %cst = arith.constant dense<0.000000e+00> : vector<256xf32>
    %19 = vector.multi_reduction <add>, %18, %cst [0] : vector<4x256xf32> to vector<256xf32>
    %20 = vector.shape_cast %19 : vector<256xf32> to vector<1x256xf32>
    %21 = arith.mulf %20, %9 : vector<1x256xf32>
    %c0_13 = arith.constant 0 : index
    %c0_14 = arith.constant 0 : index
    %c0_15 = arith.constant 0 : index
    %22 = vector.load %arg5[%c0_13, %c0_14, %c0_15] : memref<1x49x256xf32, #tpu.memory_space<vmem>>, vector<1x1x256xf32>
    %23 = vector.shape_cast %22 : vector<1x1x256xf32> to vector<1x256xf32>
    %24 = vector.shape_cast %21 : vector<1x256xf32> to vector<1x1x256xf32>
    tpu.vector_store %arg5[%c0_13, %c0_14, %c0_15], %24 {strides = array<i32>} : memref<1x49x256xf32, #tpu.memory_space<vmem>>, vector<1x1x256xf32>,
    %c2_i32 = arith.constant 2 : i32
    %25 = tpu.dynamic_rotate %8 by %c2_i32 dim 1 : vector<4x384xf32>, i32 -> vector<4x384xf32>
    %26 = vector.extract_strided_slice %25 {offsets = [0, 0], sizes = [4, 256], strides = [1, 1]} : vector<4x384xf32> to vector<4x256xf32>
    %27 = arith.mulf %7, %26 : vector<4x256xf32>
    %cst_16 = arith.constant dense<0.000000e+00> : vector<256xf32>
    %28 = vector.multi_reduction <add>, %27, %cst_16 [0] : vector<4x256xf32> to vector<256xf32>
    %29 = vector.shape_cast %28 : vector<256xf32> to vector<1x256xf32>
    %30 = arith.mulf %29, %10 : vector<1x256xf32>
    %c0_17 = arith.constant 0 : index
    %c1_18 = arith.constant 1 : index
    %c0_19 = arith.constant 0 : index
    %31 = vector.load %arg5[%c0_17, %c1_18, %c0_19] : memref<1x49x256xf32, #tpu.memory_space<vmem>>, vector<1x1x256xf32>
    %32 = vector.shape_cast %31 : vector<1x1x256xf32> to vector<1x256xf32>
    %33 = vector.shape_cast %30 : vector<1x256xf32> to vector<1x1x256xf32>
    tpu.vector_store %arg5[%c0_17, %c1_18, %c0_19], %33 {strides = array<i32>} : memref<1x49x256xf32, #tpu.memory_space<vmem>>, vector<1x1x256xf32>,
    %c1_i32 = arith.constant 1 : i32
    %34 = tpu.dynamic_rotate %8 by %c1_i32 dim 1 : vector<4x384xf32>, i32 -> vector<4x384xf32>
    %35 = vector.extract_strided_slice %34 {offsets = [0, 0], sizes = [4, 256], strides = [1, 1]} : vector<4x384xf32> to vector<4x256xf32>
    %36 = arith.mulf %7, %35 : vector<4x256xf32>
    %cst_20 = arith.constant dense<0.000000e+00> : vector<256xf32>
    %37 = vector.multi_reduction <add>, %36, %cst_20 [0] : vector<4x256xf32> to vector<256xf32>
    %38 = vector.shape_cast %37 : vector<256xf32> to vector<1x256xf32>
    %39 = arith.mulf %38, %11 : vector<1x256xf32>
    %c0_21 = arith.constant 0 : index
    %c2_22 = arith.constant 2 : index
    %c0_23 = arith.constant 0 : index
    %40 = vector.load %arg5[%c0_21, %c2_22, %c0_23] : memref<1x49x256xf32, #tpu.memory_space<vmem>>, vector<1x1x256xf32>
    %41 = vector.shape_cast %40 : vector<1x1x256xf32> to vector<1x256xf32>
    %42 = vector.shape_cast %39 : vector<1x256xf32> to vector<1x1x256xf32>
    tpu.vector_store %arg5[%c0_21, %c2_22, %c0_23], %42 {strides = array<i32>} : memref<1x49x256xf32, #tpu.memory_space<vmem>>, vector<1x1x256xf32>,
    %c0_i32_24 = arith.constant 0 : i32
    %43 = tpu.dynamic_rotate %8 by %c0_i32_24 dim 1 : vector<4x384xf32>, i32 -> vector<4x384xf32>
    %44 = vector.extract_strided_slice %43 {offsets = [0, 0], sizes = [4, 256], strides = [1, 1]} : vector<4x384xf32> to vector<4x256xf32>
    %45 = arith.mulf %7, %44 : vector<4x256xf32>
    %cst_25 = arith.constant dense<0.000000e+00> : vector<256xf32>
    %46 = vector.multi_reduction <add>, %45, %cst_25 [0] : vector<4x256xf32> to vector<256xf32>
    %47 = vector.shape_cast %46 : vector<256xf32> to vector<1x256xf32>
    %48 = arith.mulf %47, %12 : vector<1x256xf32>
    %c0_26 = arith.constant 0 : index
    %c3_27 = arith.constant 3 : index
    %c0_28 = arith.constant 0 : index
    %49 = vector.load %arg5[%c0_26, %c3_27, %c0_28] : memref<1x49x256xf32, #tpu.memory_space<vmem>>, vector<1x1x256xf32>
    %50 = vector.shape_cast %49 : vector<1x1x256xf32> to vector<1x256xf32>
    %51 = vector.shape_cast %48 : vector<1x256xf32> to vector<1x1x256xf32>
    tpu.vector_store %arg5[%c0_26, %c3_27, %c0_28], %51 {strides = array<i32>} : memref<1x49x256xf32, #tpu.memory_space<vmem>>, vector<1x1x256xf32>,
    %c383_i32 = arith.constant 383 : i32
    %52 = tpu.dynamic_rotate %8 by %c383_i32 dim 1 : vector<4x384xf32>, i32 -> vector<4x384xf32>
    %53 = vector.extract_strided_slice %52 {offsets = [0, 0], sizes = [4, 256], strides = [1, 1]} : vector<4x384xf32> to vector<4x256xf32>
    %54 = arith.mulf %7, %53 : vector<4x256xf32>
    %cst_29 = arith.constant dense<0.000000e+00> : vector<256xf32>
    %55 = vector.multi_reduction <add>, %54, %cst_29 [0] : vector<4x256xf32> to vector<256xf32>
    %56 = vector.shape_cast %55 : vector<256xf32> to vector<1x256xf32>
    %57 = arith.mulf %56, %13 : vector<1x256xf32>
    %c0_30 = arith.constant 0 : index
    %c4_31 = arith.constant 4 : index
    %c0_32 = arith.constant 0 : index
    %58 = vector.load %arg5[%c0_30, %c4_31, %c0_32] : memref<1x49x256xf32, #tpu.memory_space<vmem>>, vector<1x1x256xf32>
    %59 = vector.shape_cast %58 : vector<1x1x256xf32> to vector<1x256xf32>
    %60 = vector.shape_cast %57 : vector<1x256xf32> to vector<1x1x256xf32>
    tpu.vector_store %arg5[%c0_30, %c4_31, %c0_32], %60 {strides = array<i32>} : memref<1x49x256xf32, #tpu.memory_space<vmem>>, vector<1x1x256xf32>,
    %c382_i32 = arith.constant 382 : i32
    %61 = tpu.dynamic_rotate %8 by %c382_i32 dim 1 : vector<4x384xf32>, i32 -> vector<4x384xf32>
    %62 = vector.extract_strided_slice %61 {offsets = [0, 0], sizes = [4, 256], strides = [1, 1]} : vector<4x384xf32> to vector<4x256xf32>
    %63 = arith.mulf %7, %62 : vector<4x256xf32>
    %cst_33 = arith.constant dense<0.000000e+00> : vector<256xf32>
    %64 = vector.multi_reduction <add>, %63, %cst_33 [0] : vector<4x256xf32> to vector<256xf32>
    %65 = vector.shape_cast %64 : vector<256xf32> to vector<1x256xf32>
    %66 = arith.mulf %65, %14 : vector<1x256xf32>
    %c0_34 = arith.constant 0 : index
    %c5_35 = arith.constant 5 : index
    %c0_36 = arith.constant 0 : index
    %67 = vector.load %arg5[%c0_34, %c5_35, %c0_36] : memref<1x49x256xf32, #tpu.memory_space<vmem>>, vector<1x1x256xf32>
    %68 = vector.shape_cast %67 : vector<1x1x256xf32> to vector<1x256xf32>
    %69 = vector.shape_cast %66 : vector<1x256xf32> to vector<1x1x256xf32>
    tpu.vector_store %arg5[%c0_34, %c5_35, %c0_36], %69 {strides = array<i32>} : memref<1x49x256xf32, #tpu.memory_space<vmem>>, vector<1x1x256xf32>,
    %c381_i32 = arith.constant 381 : i32
    %70 = tpu.dynamic_rotate %8 by %c381_i32 dim 1 : vector<4x384xf32>, i32 -> vector<4x384xf32>
    %71 = vector.extract_strided_slice %70 {offsets = [0, 0], sizes = [4, 256], strides = [1, 1]} : vector<4x384xf32> to vector<4x256xf32>
    %72 = arith.mulf %7, %71 : vector<4x256xf32>
    %cst_37 = arith.constant dense<0.000000e+00> : vector<256xf32>
    %73 = vector.multi_reduction <add>, %72, %cst_37 [0] : vector<4x256xf32> to vector<256xf32>
    %74 = vector.shape_cast %73 : vector<256xf32> to vector<1x256xf32>
    %75 = arith.mulf %74, %15 : vector<1x256xf32>
    %c0_38 = arith.constant 0 : index
    %c6_39 = arith.constant 6 : index
    %c0_40 = arith.constant 0 : index
    %76 = vector.load %arg5[%c0_38, %c6_39, %c0_40] : memref<1x49x256xf32, #tpu.memory_space<vmem>>, vector<1x1x256xf32>
    %77 = vector.shape_cast %76 : vector<1x1x256xf32> to vector<1x256xf32>
    %78 = vector.shape_cast %75 : vector<1x256xf32> to vector<1x1x256xf32>
    tpu.vector_store %arg5[%c0_38, %c6_39, %c0_40], %78 {strides = array<i32>} : memref<1x49x256xf32, #tpu.memory_space<vmem>>, vector<1x1x256xf32>,
    %c371_i32 = arith.constant 371 : i32
    %79 = tpu.dynamic_rotate %8 by %c371_i32 dim 1 : vector<4x384xf32>, i32 -> vector<4x384xf32>
    %80 = vector.extract_strided_slice %79 {offsets = [0, 0], sizes = [4, 256], strides = [1, 1]} : vector<4x384xf32> to vector<4x256xf32>
    %81 = arith.mulf %7, %80 : vector<4x256xf32>
    %cst_41 = arith.constant dense<0.000000e+00> : vector<256xf32>
    %82 = vector.multi_reduction <add>, %81, %cst_41 [0] : vector<4x256xf32> to vector<256xf32>
    %83 = vector.shape_cast %82 : vector<256xf32> to vector<1x256xf32>
    %84 = arith.mulf %83, %9 : vector<1x256xf32>
    %c0_42 = arith.constant 0 : index
    %c7 = arith.constant 7 : index
    %c0_43 = arith.constant 0 : index
    %85 = vector.load %arg5[%c0_42, %c7, %c0_43] : memref<1x49x256xf32, #tpu.memory_space<vmem>>, vector<1x1x256xf32>
    %86 = vector.shape_cast %85 : vector<1x1x256xf32> to vector<1x256xf32>
    %87 = vector.shape_cast %84 : vector<1x256xf32> to vector<1x1x256xf32>
    tpu.vector_store %arg5[%c0_42, %c7, %c0_43], %87 {strides = array<i32>} : memref<1x49x256xf32, #tpu.memory_space<vmem>>, vector<1x1x256xf32>,
    %c370_i32 = arith.constant 370 : i32
    %88 = tpu.dynamic_rotate %8 by %c370_i32 dim 1 : vector<4x384xf32>, i32 -> vector<4x384xf32>
    %89 = vector.extract_strided_slice %88 {offsets = [0, 0], sizes = [4, 256], strides = [1, 1]} : vector<4x384xf32> to vector<4x256xf32>
    %90 = arith.mulf %7, %89 : vector<4x256xf32>
    %cst_44 = arith.constant dense<0.000000e+00> : vector<256xf32>
    %91 = vector.multi_reduction <add>, %90, %cst_44 [0] : vector<4x256xf32> to vector<256xf32>
    %92 = vector.shape_cast %91 : vector<256xf32> to vector<1x256xf32>
    %93 = arith.mulf %92, %10 : vector<1x256xf32>
    %c0_45 = arith.constant 0 : index
    %c8 = arith.constant 8 : index
    %c0_46 = arith.constant 0 : index
    %94 = vector.load %arg5[%c0_45, %c8, %c0_46] : memref<1x49x256xf32, #tpu.memory_space<vmem>>, vector<1x1x256xf32>
    %95 = vector.shape_cast %94 : vector<1x1x256xf32> to vector<1x256xf32>
    %96 = vector.shape_cast %93 : vector<1x256xf32> to vector<1x1x256xf32>
    tpu.vector_store %arg5[%c0_45, %c8, %c0_46], %96 {strides = array<i32>} : memref<1x49x256xf32, #tpu.memory_space<vmem>>, vector<1x1x256xf32>,
    %c369_i32 = arith.constant 369 : i32
    %97 = tpu.dynamic_rotate %8 by %c369_i32 dim 1 : vector<4x384xf32>, i32 -> vector<4x384xf32>
    %98 = vector.extract_strided_slice %97 {offsets = [0, 0], sizes = [4, 256], strides = [1, 1]} : vector<4x384xf32> to vector<4x256xf32>
    %99 = arith.mulf %7, %98 : vector<4x256xf32>
    %cst_47 = arith.constant dense<0.000000e+00> : vector<256xf32>
    %100 = vector.multi_reduction <add>, %99, %cst_47 [0] : vector<4x256xf32> to vector<256xf32>
    %101 = vector.shape_cast %100 : vector<256xf32> to vector<1x256xf32>
    %102 = arith.mulf %101, %11 : vector<1x256xf32>
    %c0_48 = arith.constant 0 : index
    %c9 = arith.constant 9 : index
    %c0_49 = arith.constant 0 : index
    %103 = vector.load %arg5[%c0_48, %c9, %c0_49] : memref<1x49x256xf32, #tpu.memory_space<vmem>>, vector<1x1x256xf32>
    %104 = vector.shape_cast %103 : vector<1x1x256xf32> to vector<1x256xf32>
    %105 = vector.shape_cast %102 : vector<1x256xf32> to vector<1x1x256xf32>
    tpu.vector_store %arg5[%c0_48, %c9, %c0_49], %105 {strides = array<i32>} : memref<1x49x256xf32, #tpu.memory_space<vmem>>, vector<1x1x256xf32>,
    %c368_i32 = arith.constant 368 : i32
    %106 = tpu.dynamic_rotate %8 by %c368_i32 dim 1 : vector<4x384xf32>, i32 -> vector<4x384xf32>
    %107 = vector.extract_strided_slice %106 {offsets = [0, 0], sizes = [4, 256], strides = [1, 1]} : vector<4x384xf32> to vector<4x256xf32>
    %108 = arith.mulf %7, %107 : vector<4x256xf32>
    %cst_50 = arith.constant dense<0.000000e+00> : vector<256xf32>
    %109 = vector.multi_reduction <add>, %108, %cst_50 [0] : vector<4x256xf32> to vector<256xf32>
    %110 = vector.shape_cast %109 : vector<256xf32> to vector<1x256xf32>
    %111 = arith.mulf %110, %12 : vector<1x256xf32>
    %c0_51 = arith.constant 0 : index
    %c10 = arith.constant 10 : index
    %c0_52 = arith.constant 0 : index
    %112 = vector.load %arg5[%c0_51, %c10, %c0_52] : memref<1x49x256xf32, #tpu.memory_space<vmem>>, vector<1x1x256xf32>
    %113 = vector.shape_cast %112 : vector<1x1x256xf32> to vector<1x256xf32>
    %114 = vector.shape_cast %111 : vector<1x256xf32> to vector<1x1x256xf32>
    tpu.vector_store %arg5[%c0_51, %c10, %c0_52], %114 {strides = array<i32>} : memref<1x49x256xf32, #tpu.memory_space<vmem>>, vector<1x1x256xf32>,
    %c367_i32 = arith.constant 367 : i32
    %115 = tpu.dynamic_rotate %8 by %c367_i32 dim 1 : vector<4x384xf32>, i32 -> vector<4x384xf32>
    %116 = vector.extract_strided_slice %115 {offsets = [0, 0], sizes = [4, 256], strides = [1, 1]} : vector<4x384xf32> to vector<4x256xf32>
    %117 = arith.mulf %7, %116 : vector<4x256xf32>
    %cst_53 = arith.constant dense<0.000000e+00> : vector<256xf32>
    %118 = vector.multi_reduction <add>, %117, %cst_53 [0] : vector<4x256xf32> to vector<256xf32>
    %119 = vector.shape_cast %118 : vector<256xf32> to vector<1x256xf32>
    %120 = arith.mulf %119, %13 : vector<1x256xf32>
    %c0_54 = arith.constant 0 : index
    %c11 = arith.constant 11 : index
    %c0_55 = arith.constant 0 : index
    %121 = vector.load %arg5[%c0_54, %c11, %c0_55] : memref<1x49x256xf32, #tpu.memory_space<vmem>>, vector<1x1x256xf32>
    %122 = vector.shape_cast %121 : vector<1x1x256xf32> to vector<1x256xf32>
    %123 = vector.shape_cast %120 : vector<1x256xf32> to vector<1x1x256xf32>
    tpu.vector_store %arg5[%c0_54, %c11, %c0_55], %123 {strides = array<i32>} : memref<1x49x256xf32, #tpu.memory_space<vmem>>, vector<1x1x256xf32>,
    %c366_i32 = arith.constant 366 : i32
    %124 = tpu.dynamic_rotate %8 by %c366_i32 dim 1 : vector<4x384xf32>, i32 -> vector<4x384xf32>
    %125 = vector.extract_strided_slice %124 {offsets = [0, 0], sizes = [4, 256], strides = [1, 1]} : vector<4x384xf32> to vector<4x256xf32>
    %126 = arith.mulf %7, %125 : vector<4x256xf32>
    %cst_56 = arith.constant dense<0.000000e+00> : vector<256xf32>
    %127 = vector.multi_reduction <add>, %126, %cst_56 [0] : vector<4x256xf32> to vector<256xf32>
    %128 = vector.shape_cast %127 : vector<256xf32> to vector<1x256xf32>
    %129 = arith.mulf %128, %14 : vector<1x256xf32>
    %c0_57 = arith.constant 0 : index
    %c12 = arith.constant 12 : index
    %c0_58 = arith.constant 0 : index
    %130 = vector.load %arg5[%c0_57, %c12, %c0_58] : memref<1x49x256xf32, #tpu.memory_space<vmem>>, vector<1x1x256xf32>
    %131 = vector.shape_cast %130 : vector<1x1x256xf32> to vector<1x256xf32>
    %132 = vector.shape_cast %129 : vector<1x256xf32> to vector<1x1x256xf32>
    tpu.vector_store %arg5[%c0_57, %c12, %c0_58], %132 {strides = array<i32>} : memref<1x49x256xf32, #tpu.memory_space<vmem>>, vector<1x1x256xf32>,
    %c365_i32 = arith.constant 365 : i32
    %133 = tpu.dynamic_rotate %8 by %c365_i32 dim 1 : vector<4x384xf32>, i32 -> vector<4x384xf32>
    %134 = vector.extract_strided_slice %133 {offsets = [0, 0], sizes = [4, 256], strides = [1, 1]} : vector<4x384xf32> to vector<4x256xf32>
    %135 = arith.mulf %7, %134 : vector<4x256xf32>
    %cst_59 = arith.constant dense<0.000000e+00> : vector<256xf32>
    %136 = vector.multi_reduction <add>, %135, %cst_59 [0] : vector<4x256xf32> to vector<256xf32>
    %137 = vector.shape_cast %136 : vector<256xf32> to vector<1x256xf32>
    %138 = arith.mulf %137, %15 : vector<1x256xf32>
    %c0_60 = arith.constant 0 : index
    %c13 = arith.constant 13 : index
    %c0_61 = arith.constant 0 : index
    %139 = vector.load %arg5[%c0_60, %c13, %c0_61] : memref<1x49x256xf32, #tpu.memory_space<vmem>>, vector<1x1x256xf32>
    %140 = vector.shape_cast %139 : vector<1x1x256xf32> to vector<1x256xf32>
    %141 = vector.shape_cast %138 : vector<1x256xf32> to vector<1x1x256xf32>
    tpu.vector_store %arg5[%c0_60, %c13, %c0_61], %141 {strides = array<i32>} : memref<1x49x256xf32, #tpu.memory_space<vmem>>, vector<1x1x256xf32>,
    %c355_i32 = arith.constant 355 : i32
    %142 = tpu.dynamic_rotate %8 by %c355_i32 dim 1 : vector<4x384xf32>, i32 -> vector<4x384xf32>
    %143 = vector.extract_strided_slice %142 {offsets = [0, 0], sizes = [4, 256], strides = [1, 1]} : vector<4x384xf32> to vector<4x256xf32>
    %144 = arith.mulf %7, %143 : vector<4x256xf32>
    %cst_62 = arith.constant dense<0.000000e+00> : vector<256xf32>
    %145 = vector.multi_reduction <add>, %144, %cst_62 [0] : vector<4x256xf32> to vector<256xf32>
    %146 = vector.shape_cast %145 : vector<256xf32> to vector<1x256xf32>
    %147 = arith.mulf %146, %9 : vector<1x256xf32>
    %c0_63 = arith.constant 0 : index
    %c14 = arith.constant 14 : index
    %c0_64 = arith.constant 0 : index
    %148 = vector.load %arg5[%c0_63, %c14, %c0_64] : memref<1x49x256xf32, #tpu.memory_space<vmem>>, vector<1x1x256xf32>
    %149 = vector.shape_cast %148 : vector<1x1x256xf32> to vector<1x256xf32>
    %150 = vector.shape_cast %147 : vector<1x256xf32> to vector<1x1x256xf32>
    tpu.vector_store %arg5[%c0_63, %c14, %c0_64], %150 {strides = array<i32>} : memref<1x49x256xf32, #tpu.memory_space<vmem>>, vector<1x1x256xf32>,
    %c354_i32 = arith.constant 354 : i32
    %151 = tpu.dynamic_rotate %8 by %c354_i32 dim 1 : vector<4x384xf32>, i32 -> vector<4x384xf32>
    %152 = vector.extract_strided_slice %151 {offsets = [0, 0], sizes = [4, 256], strides = [1, 1]} : vector<4x384xf32> to vector<4x256xf32>
    %153 = arith.mulf %7, %152 : vector<4x256xf32>
    %cst_65 = arith.constant dense<0.000000e+00> : vector<256xf32>
    %154 = vector.multi_reduction <add>, %153, %cst_65 [0] : vector<4x256xf32> to vector<256xf32>
    %155 = vector.shape_cast %154 : vector<256xf32> to vector<1x256xf32>
    %156 = arith.mulf %155, %10 : vector<1x256xf32>
    %c0_66 = arith.constant 0 : index
    %c15 = arith.constant 15 : index
    %c0_67 = arith.constant 0 : index
    %157 = vector.load %arg5[%c0_66, %c15, %c0_67] : memref<1x49x256xf32, #tpu.memory_space<vmem>>, vector<1x1x256xf32>
    %158 = vector.shape_cast %157 : vector<1x1x256xf32> to vector<1x256xf32>
    %159 = vector.shape_cast %156 : vector<1x256xf32> to vector<1x1x256xf32>
    tpu.vector_store %arg5[%c0_66, %c15, %c0_67], %159 {strides = array<i32>} : memref<1x49x256xf32, #tpu.memory_space<vmem>>, vector<1x1x256xf32>,
    %c353_i32 = arith.constant 353 : i32
    %160 = tpu.dynamic_rotate %8 by %c353_i32 dim 1 : vector<4x384xf32>, i32 -> vector<4x384xf32>
    %161 = vector.extract_strided_slice %160 {offsets = [0, 0], sizes = [4, 256], strides = [1, 1]} : vector<4x384xf32> to vector<4x256xf32>
    %162 = arith.mulf %7, %161 : vector<4x256xf32>
    %cst_68 = arith.constant dense<0.000000e+00> : vector<256xf32>
    %163 = vector.multi_reduction <add>, %162, %cst_68 [0] : vector<4x256xf32> to vector<256xf32>
    %164 = vector.shape_cast %163 : vector<256xf32> to vector<1x256xf32>
    %165 = arith.mulf %164, %11 : vector<1x256xf32>
    %c0_69 = arith.constant 0 : index
    %c16 = arith.constant 16 : index
    %c0_70 = arith.constant 0 : index
    %166 = vector.load %arg5[%c0_69, %c16, %c0_70] : memref<1x49x256xf32, #tpu.memory_space<vmem>>, vector<1x1x256xf32>
    %167 = vector.shape_cast %166 : vector<1x1x256xf32> to vector<1x256xf32>
    %168 = vector.shape_cast %165 : vector<1x256xf32> to vector<1x1x256xf32>
    tpu.vector_store %arg5[%c0_69, %c16, %c0_70], %168 {strides = array<i32>} : memref<1x49x256xf32, #tpu.memory_space<vmem>>, vector<1x1x256xf32>,
    %c352_i32 = arith.constant 352 : i32
    %169 = tpu.dynamic_rotate %8 by %c352_i32 dim 1 : vector<4x384xf32>, i32 -> vector<4x384xf32>
    %170 = vector.extract_strided_slice %169 {offsets = [0, 0], sizes = [4, 256], strides = [1, 1]} : vector<4x384xf32> to vector<4x256xf32>
    %171 = arith.mulf %7, %170 : vector<4x256xf32>
    %cst_71 = arith.constant dense<0.000000e+00> : vector<256xf32>
    %172 = vector.multi_reduction <add>, %171, %cst_71 [0] : vector<4x256xf32> to vector<256xf32>
    %173 = vector.shape_cast %172 : vector<256xf32> to vector<1x256xf32>
    %174 = arith.mulf %173, %12 : vector<1x256xf32>
    %c0_72 = arith.constant 0 : index
    %c17 = arith.constant 17 : index
    %c0_73 = arith.constant 0 : index
    %175 = vector.load %arg5[%c0_72, %c17, %c0_73] : memref<1x49x256xf32, #tpu.memory_space<vmem>>, vector<1x1x256xf32>
    %176 = vector.shape_cast %175 : vector<1x1x256xf32> to vector<1x256xf32>
    %177 = vector.shape_cast %174 : vector<1x256xf32> to vector<1x1x256xf32>
    tpu.vector_store %arg5[%c0_72, %c17, %c0_73], %177 {strides = array<i32>} : memref<1x49x256xf32, #tpu.memory_space<vmem>>, vector<1x1x256xf32>,
    %c351_i32 = arith.constant 351 : i32
    %178 = tpu.dynamic_rotate %8 by %c351_i32 dim 1 : vector<4x384xf32>, i32 -> vector<4x384xf32>
    %179 = vector.extract_strided_slice %178 {offsets = [0, 0], sizes = [4, 256], strides = [1, 1]} : vector<4x384xf32> to vector<4x256xf32>
    %180 = arith.mulf %7, %179 : vector<4x256xf32>
    %cst_74 = arith.constant dense<0.000000e+00> : vector<256xf32>
    %181 = vector.multi_reduction <add>, %180, %cst_74 [0] : vector<4x256xf32> to vector<256xf32>
    %182 = vector.shape_cast %181 : vector<256xf32> to vector<1x256xf32>
    %183 = arith.mulf %182, %13 : vector<1x256xf32>
    %c0_75 = arith.constant 0 : index
    %c18 = arith.constant 18 : index
    %c0_76 = arith.constant 0 : index
    %184 = vector.load %arg5[%c0_75, %c18, %c0_76] : memref<1x49x256xf32, #tpu.memory_space<vmem>>, vector<1x1x256xf32>
    %185 = vector.shape_cast %184 : vector<1x1x256xf32> to vector<1x256xf32>
    %186 = vector.shape_cast %183 : vector<1x256xf32> to vector<1x1x256xf32>
    tpu.vector_store %arg5[%c0_75, %c18, %c0_76], %186 {strides = array<i32>} : memref<1x49x256xf32, #tpu.memory_space<vmem>>, vector<1x1x256xf32>,
    %c350_i32 = arith.constant 350 : i32
    %187 = tpu.dynamic_rotate %8 by %c350_i32 dim 1 : vector<4x384xf32>, i32 -> vector<4x384xf32>
    %188 = vector.extract_strided_slice %187 {offsets = [0, 0], sizes = [4, 256], strides = [1, 1]} : vector<4x384xf32> to vector<4x256xf32>
    %189 = arith.mulf %7, %188 : vector<4x256xf32>
    %cst_77 = arith.constant dense<0.000000e+00> : vector<256xf32>
    %190 = vector.multi_reduction <add>, %189, %cst_77 [0] : vector<4x256xf32> to vector<256xf32>
    %191 = vector.shape_cast %190 : vector<256xf32> to vector<1x256xf32>
    %192 = arith.mulf %191, %14 : vector<1x256xf32>
    %c0_78 = arith.constant 0 : index
    %c19 = arith.constant 19 : index
    %c0_79 = arith.constant 0 : index
    %193 = vector.load %arg5[%c0_78, %c19, %c0_79] : memref<1x49x256xf32, #tpu.memory_space<vmem>>, vector<1x1x256xf32>
    %194 = vector.shape_cast %193 : vector<1x1x256xf32> to vector<1x256xf32>
    %195 = vector.shape_cast %192 : vector<1x256xf32> to vector<1x1x256xf32>
    tpu.vector_store %arg5[%c0_78, %c19, %c0_79], %195 {strides = array<i32>} : memref<1x49x256xf32, #tpu.memory_space<vmem>>, vector<1x1x256xf32>,
    %c349_i32 = arith.constant 349 : i32
    %196 = tpu.dynamic_rotate %8 by %c349_i32 dim 1 : vector<4x384xf32>, i32 -> vector<4x384xf32>
    %197 = vector.extract_strided_slice %196 {offsets = [0, 0], sizes = [4, 256], strides = [1, 1]} : vector<4x384xf32> to vector<4x256xf32>
    %198 = arith.mulf %7, %197 : vector<4x256xf32>
    %cst_80 = arith.constant dense<0.000000e+00> : vector<256xf32>
    %199 = vector.multi_reduction <add>, %198, %cst_80 [0] : vector<4x256xf32> to vector<256xf32>
    %200 = vector.shape_cast %199 : vector<256xf32> to vector<1x256xf32>
    %201 = arith.mulf %200, %15 : vector<1x256xf32>
    %c0_81 = arith.constant 0 : index
    %c20 = arith.constant 20 : index
    %c0_82 = arith.constant 0 : index
    %202 = vector.load %arg5[%c0_81, %c20, %c0_82] : memref<1x49x256xf32, #tpu.memory_space<vmem>>, vector<1x1x256xf32>
    %203 = vector.shape_cast %202 : vector<1x1x256xf32> to vector<1x256xf32>
    %204 = vector.shape_cast %201 : vector<1x256xf32> to vector<1x1x256xf32>
    tpu.vector_store %arg5[%c0_81, %c20, %c0_82], %204 {strides = array<i32>} : memref<1x49x256xf32, #tpu.memory_space<vmem>>, vector<1x1x256xf32>,
    %c339_i32 = arith.constant 339 : i32
    %205 = tpu.dynamic_rotate %8 by %c339_i32 dim 1 : vector<4x384xf32>, i32 -> vector<4x384xf32>
    %206 = vector.extract_strided_slice %205 {offsets = [0, 0], sizes = [4, 256], strides = [1, 1]} : vector<4x384xf32> to vector<4x256xf32>
    %207 = arith.mulf %7, %206 : vector<4x256xf32>
    %cst_83 = arith.constant dense<0.000000e+00> : vector<256xf32>
    %208 = vector.multi_reduction <add>, %207, %cst_83 [0] : vector<4x256xf32> to vector<256xf32>
    %209 = vector.shape_cast %208 : vector<256xf32> to vector<1x256xf32>
    %210 = arith.mulf %209, %9 : vector<1x256xf32>
    %c0_84 = arith.constant 0 : index
    %c21 = arith.constant 21 : index
    %c0_85 = arith.constant 0 : index
    %211 = vector.load %arg5[%c0_84, %c21, %c0_85] : memref<1x49x256xf32, #tpu.memory_space<vmem>>, vector<1x1x256xf32>
    %212 = vector.shape_cast %211 : vector<1x1x256xf32> to vector<1x256xf32>
    %213 = vector.shape_cast %210 : vector<1x256xf32> to vector<1x1x256xf32>
    tpu.vector_store %arg5[%c0_84, %c21, %c0_85], %213 {strides = array<i32>} : memref<1x49x256xf32, #tpu.memory_space<vmem>>, vector<1x1x256xf32>,
    %c338_i32 = arith.constant 338 : i32
    %214 = tpu.dynamic_rotate %8 by %c338_i32 dim 1 : vector<4x384xf32>, i32 -> vector<4x384xf32>
    %215 = vector.extract_strided_slice %214 {offsets = [0, 0], sizes = [4, 256], strides = [1, 1]} : vector<4x384xf32> to vector<4x256xf32>
    %216 = arith.mulf %7, %215 : vector<4x256xf32>
    %cst_86 = arith.constant dense<0.000000e+00> : vector<256xf32>
    %217 = vector.multi_reduction <add>, %216, %cst_86 [0] : vector<4x256xf32> to vector<256xf32>
    %218 = vector.shape_cast %217 : vector<256xf32> to vector<1x256xf32>
    %219 = arith.mulf %218, %10 : vector<1x256xf32>
    %c0_87 = arith.constant 0 : index
    %c22 = arith.constant 22 : index
    %c0_88 = arith.constant 0 : index
    %220 = vector.load %arg5[%c0_87, %c22, %c0_88] : memref<1x49x256xf32, #tpu.memory_space<vmem>>, vector<1x1x256xf32>
    %221 = vector.shape_cast %220 : vector<1x1x256xf32> to vector<1x256xf32>
    %222 = vector.shape_cast %219 : vector<1x256xf32> to vector<1x1x256xf32>
    tpu.vector_store %arg5[%c0_87, %c22, %c0_88], %222 {strides = array<i32>} : memref<1x49x256xf32, #tpu.memory_space<vmem>>, vector<1x1x256xf32>,
    %c337_i32 = arith.constant 337 : i32
    %223 = tpu.dynamic_rotate %8 by %c337_i32 dim 1 : vector<4x384xf32>, i32 -> vector<4x384xf32>
    %224 = vector.extract_strided_slice %223 {offsets = [0, 0], sizes = [4, 256], strides = [1, 1]} : vector<4x384xf32> to vector<4x256xf32>
    %225 = arith.mulf %7, %224 : vector<4x256xf32>
    %cst_89 = arith.constant dense<0.000000e+00> : vector<256xf32>
    %226 = vector.multi_reduction <add>, %225, %cst_89 [0] : vector<4x256xf32> to vector<256xf32>
    %227 = vector.shape_cast %226 : vector<256xf32> to vector<1x256xf32>
    %228 = arith.mulf %227, %11 : vector<1x256xf32>
    %c0_90 = arith.constant 0 : index
    %c23 = arith.constant 23 : index
    %c0_91 = arith.constant 0 : index
    %229 = vector.load %arg5[%c0_90, %c23, %c0_91] : memref<1x49x256xf32, #tpu.memory_space<vmem>>, vector<1x1x256xf32>
    %230 = vector.shape_cast %229 : vector<1x1x256xf32> to vector<1x256xf32>
    %231 = vector.shape_cast %228 : vector<1x256xf32> to vector<1x1x256xf32>
    tpu.vector_store %arg5[%c0_90, %c23, %c0_91], %231 {strides = array<i32>} : memref<1x49x256xf32, #tpu.memory_space<vmem>>, vector<1x1x256xf32>,
    %c336_i32 = arith.constant 336 : i32
    %232 = tpu.dynamic_rotate %8 by %c336_i32 dim 1 : vector<4x384xf32>, i32 -> vector<4x384xf32>
    %233 = vector.extract_strided_slice %232 {offsets = [0, 0], sizes = [4, 256], strides = [1, 1]} : vector<4x384xf32> to vector<4x256xf32>
    %234 = arith.mulf %7, %233 : vector<4x256xf32>
    %cst_92 = arith.constant dense<0.000000e+00> : vector<256xf32>
    %235 = vector.multi_reduction <add>, %234, %cst_92 [0] : vector<4x256xf32> to vector<256xf32>
    %236 = vector.shape_cast %235 : vector<256xf32> to vector<1x256xf32>
    %237 = arith.mulf %236, %12 : vector<1x256xf32>
    %c0_93 = arith.constant 0 : index
    %c24 = arith.constant 24 : index
    %c0_94 = arith.constant 0 : index
    %238 = vector.load %arg5[%c0_93, %c24, %c0_94] : memref<1x49x256xf32, #tpu.memory_space<vmem>>, vector<1x1x256xf32>
    %239 = vector.shape_cast %238 : vector<1x1x256xf32> to vector<1x256xf32>
    %240 = vector.shape_cast %237 : vector<1x256xf32> to vector<1x1x256xf32>
    tpu.vector_store %arg5[%c0_93, %c24, %c0_94], %240 {strides = array<i32>} : memref<1x49x256xf32, #tpu.memory_space<vmem>>, vector<1x1x256xf32>,
    %c335_i32 = arith.constant 335 : i32
    %241 = tpu.dynamic_rotate %8 by %c335_i32 dim 1 : vector<4x384xf32>, i32 -> vector<4x384xf32>
    %242 = vector.extract_strided_slice %241 {offsets = [0, 0], sizes = [4, 256], strides = [1, 1]} : vector<4x384xf32> to vector<4x256xf32>
    %243 = arith.mulf %7, %242 : vector<4x256xf32>
    %cst_95 = arith.constant dense<0.000000e+00> : vector<256xf32>
    %244 = vector.multi_reduction <add>, %243, %cst_95 [0] : vector<4x256xf32> to vector<256xf32>
    %245 = vector.shape_cast %244 : vector<256xf32> to vector<1x256xf32>
    %246 = arith.mulf %245, %13 : vector<1x256xf32>
    %c0_96 = arith.constant 0 : index
    %c25 = arith.constant 25 : index
    %c0_97 = arith.constant 0 : index
    %247 = vector.load %arg5[%c0_96, %c25, %c0_97] : memref<1x49x256xf32, #tpu.memory_space<vmem>>, vector<1x1x256xf32>
    %248 = vector.shape_cast %247 : vector<1x1x256xf32> to vector<1x256xf32>
    %249 = vector.shape_cast %246 : vector<1x256xf32> to vector<1x1x256xf32>
    tpu.vector_store %arg5[%c0_96, %c25, %c0_97], %249 {strides = array<i32>} : memref<1x49x256xf32, #tpu.memory_space<vmem>>, vector<1x1x256xf32>,
    %c334_i32 = arith.constant 334 : i32
    %250 = tpu.dynamic_rotate %8 by %c334_i32 dim 1 : vector<4x384xf32>, i32 -> vector<4x384xf32>
    %251 = vector.extract_strided_slice %250 {offsets = [0, 0], sizes = [4, 256], strides = [1, 1]} : vector<4x384xf32> to vector<4x256xf32>
    %252 = arith.mulf %7, %251 : vector<4x256xf32>
    %cst_98 = arith.constant dense<0.000000e+00> : vector<256xf32>
    %253 = vector.multi_reduction <add>, %252, %cst_98 [0] : vector<4x256xf32> to vector<256xf32>
    %254 = vector.shape_cast %253 : vector<256xf32> to vector<1x256xf32>
    %255 = arith.mulf %254, %14 : vector<1x256xf32>
    %c0_99 = arith.constant 0 : index
    %c26 = arith.constant 26 : index
    %c0_100 = arith.constant 0 : index
    %256 = vector.load %arg5[%c0_99, %c26, %c0_100] : memref<1x49x256xf32, #tpu.memory_space<vmem>>, vector<1x1x256xf32>
    %257 = vector.shape_cast %256 : vector<1x1x256xf32> to vector<1x256xf32>
    %258 = vector.shape_cast %255 : vector<1x256xf32> to vector<1x1x256xf32>
    tpu.vector_store %arg5[%c0_99, %c26, %c0_100], %258 {strides = array<i32>} : memref<1x49x256xf32, #tpu.memory_space<vmem>>, vector<1x1x256xf32>,
    %c333_i32 = arith.constant 333 : i32
    %259 = tpu.dynamic_rotate %8 by %c333_i32 dim 1 : vector<4x384xf32>, i32 -> vector<4x384xf32>
    %260 = vector.extract_strided_slice %259 {offsets = [0, 0], sizes = [4, 256], strides = [1, 1]} : vector<4x384xf32> to vector<4x256xf32>
    %261 = arith.mulf %7, %260 : vector<4x256xf32>
    %cst_101 = arith.constant dense<0.000000e+00> : vector<256xf32>
    %262 = vector.multi_reduction <add>, %261, %cst_101 [0] : vector<4x256xf32> to vector<256xf32>
    %263 = vector.shape_cast %262 : vector<256xf32> to vector<1x256xf32>
    %264 = arith.mulf %263, %15 : vector<1x256xf32>
    %c0_102 = arith.constant 0 : index
    %c27 = arith.constant 27 : index
    %c0_103 = arith.constant 0 : index
    %265 = vector.load %arg5[%c0_102, %c27, %c0_103] : memref<1x49x256xf32, #tpu.memory_space<vmem>>, vector<1x1x256xf32>
    %266 = vector.shape_cast %265 : vector<1x1x256xf32> to vector<1x256xf32>
    %267 = vector.shape_cast %264 : vector<1x256xf32> to vector<1x1x256xf32>
    tpu.vector_store %arg5[%c0_102, %c27, %c0_103], %267 {strides = array<i32>} : memref<1x49x256xf32, #tpu.memory_space<vmem>>, vector<1x1x256xf32>,
    %c323_i32 = arith.constant 323 : i32
    %268 = tpu.dynamic_rotate %8 by %c323_i32 dim 1 : vector<4x384xf32>, i32 -> vector<4x384xf32>
    %269 = vector.extract_strided_slice %268 {offsets = [0, 0], sizes = [4, 256], strides = [1, 1]} : vector<4x384xf32> to vector<4x256xf32>
    %270 = arith.mulf %7, %269 : vector<4x256xf32>
    %cst_104 = arith.constant dense<0.000000e+00> : vector<256xf32>
    %271 = vector.multi_reduction <add>, %270, %cst_104 [0] : vector<4x256xf32> to vector<256xf32>
    %272 = vector.shape_cast %271 : vector<256xf32> to vector<1x256xf32>
    %273 = arith.mulf %272, %9 : vector<1x256xf32>
    %c0_105 = arith.constant 0 : index
    %c28 = arith.constant 28 : index
    %c0_106 = arith.constant 0 : index
    %274 = vector.load %arg5[%c0_105, %c28, %c0_106] : memref<1x49x256xf32, #tpu.memory_space<vmem>>, vector<1x1x256xf32>
    %275 = vector.shape_cast %274 : vector<1x1x256xf32> to vector<1x256xf32>
    %276 = vector.shape_cast %273 : vector<1x256xf32> to vector<1x1x256xf32>
    tpu.vector_store %arg5[%c0_105, %c28, %c0_106], %276 {strides = array<i32>} : memref<1x49x256xf32, #tpu.memory_space<vmem>>, vector<1x1x256xf32>,
    %c322_i32 = arith.constant 322 : i32
    %277 = tpu.dynamic_rotate %8 by %c322_i32 dim 1 : vector<4x384xf32>, i32 -> vector<4x384xf32>
    %278 = vector.extract_strided_slice %277 {offsets = [0, 0], sizes = [4, 256], strides = [1, 1]} : vector<4x384xf32> to vector<4x256xf32>
    %279 = arith.mulf %7, %278 : vector<4x256xf32>
    %cst_107 = arith.constant dense<0.000000e+00> : vector<256xf32>
    %280 = vector.multi_reduction <add>, %279, %cst_107 [0] : vector<4x256xf32> to vector<256xf32>
    %281 = vector.shape_cast %280 : vector<256xf32> to vector<1x256xf32>
    %282 = arith.mulf %281, %10 : vector<1x256xf32>
    %c0_108 = arith.constant 0 : index
    %c29 = arith.constant 29 : index
    %c0_109 = arith.constant 0 : index
    %283 = vector.load %arg5[%c0_108, %c29, %c0_109] : memref<1x49x256xf32, #tpu.memory_space<vmem>>, vector<1x1x256xf32>
    %284 = vector.shape_cast %283 : vector<1x1x256xf32> to vector<1x256xf32>
    %285 = vector.shape_cast %282 : vector<1x256xf32> to vector<1x1x256xf32>
    tpu.vector_store %arg5[%c0_108, %c29, %c0_109], %285 {strides = array<i32>} : memref<1x49x256xf32, #tpu.memory_space<vmem>>, vector<1x1x256xf32>,
    %c321_i32 = arith.constant 321 : i32
    %286 = tpu.dynamic_rotate %8 by %c321_i32 dim 1 : vector<4x384xf32>, i32 -> vector<4x384xf32>
    %287 = vector.extract_strided_slice %286 {offsets = [0, 0], sizes = [4, 256], strides = [1, 1]} : vector<4x384xf32> to vector<4x256xf32>
    %288 = arith.mulf %7, %287 : vector<4x256xf32>
    %cst_110 = arith.constant dense<0.000000e+00> : vector<256xf32>
    %289 = vector.multi_reduction <add>, %288, %cst_110 [0] : vector<4x256xf32> to vector<256xf32>
    %290 = vector.shape_cast %289 : vector<256xf32> to vector<1x256xf32>
    %291 = arith.mulf %290, %11 : vector<1x256xf32>
    %c0_111 = arith.constant 0 : index
    %c30 = arith.constant 30 : index
    %c0_112 = arith.constant 0 : index
    %292 = vector.load %arg5[%c0_111, %c30, %c0_112] : memref<1x49x256xf32, #tpu.memory_space<vmem>>, vector<1x1x256xf32>
    %293 = vector.shape_cast %292 : vector<1x1x256xf32> to vector<1x256xf32>
    %294 = vector.shape_cast %291 : vector<1x256xf32> to vector<1x1x256xf32>
    tpu.vector_store %arg5[%c0_111, %c30, %c0_112], %294 {strides = array<i32>} : memref<1x49x256xf32, #tpu.memory_space<vmem>>, vector<1x1x256xf32>,
    %c320_i32 = arith.constant 320 : i32
    %295 = tpu.dynamic_rotate %8 by %c320_i32 dim 1 : vector<4x384xf32>, i32 -> vector<4x384xf32>
    %296 = vector.extract_strided_slice %295 {offsets = [0, 0], sizes = [4, 256], strides = [1, 1]} : vector<4x384xf32> to vector<4x256xf32>
    %297 = arith.mulf %7, %296 : vector<4x256xf32>
    %cst_113 = arith.constant dense<0.000000e+00> : vector<256xf32>
    %298 = vector.multi_reduction <add>, %297, %cst_113 [0] : vector<4x256xf32> to vector<256xf32>
    %299 = vector.shape_cast %298 : vector<256xf32> to vector<1x256xf32>
    %300 = arith.mulf %299, %12 : vector<1x256xf32>
    %c0_114 = arith.constant 0 : index
    %c31 = arith.constant 31 : index
    %c0_115 = arith.constant 0 : index
    %301 = vector.load %arg5[%c0_114, %c31, %c0_115] : memref<1x49x256xf32, #tpu.memory_space<vmem>>, vector<1x1x256xf32>
    %302 = vector.shape_cast %301 : vector<1x1x256xf32> to vector<1x256xf32>
    %303 = vector.shape_cast %300 : vector<1x256xf32> to vector<1x1x256xf32>
    tpu.vector_store %arg5[%c0_114, %c31, %c0_115], %303 {strides = array<i32>} : memref<1x49x256xf32, #tpu.memory_space<vmem>>, vector<1x1x256xf32>,
    %c319_i32 = arith.constant 319 : i32
    %304 = tpu.dynamic_rotate %8 by %c319_i32 dim 1 : vector<4x384xf32>, i32 -> vector<4x384xf32>
    %305 = vector.extract_strided_slice %304 {offsets = [0, 0], sizes = [4, 256], strides = [1, 1]} : vector<4x384xf32> to vector<4x256xf32>
    %306 = arith.mulf %7, %305 : vector<4x256xf32>
    %cst_116 = arith.constant dense<0.000000e+00> : vector<256xf32>
    %307 = vector.multi_reduction <add>, %306, %cst_116 [0] : vector<4x256xf32> to vector<256xf32>
    %308 = vector.shape_cast %307 : vector<256xf32> to vector<1x256xf32>
    %309 = arith.mulf %308, %13 : vector<1x256xf32>
    %c0_117 = arith.constant 0 : index
    %c32 = arith.constant 32 : index
    %c0_118 = arith.constant 0 : index
    %310 = vector.load %arg5[%c0_117, %c32, %c0_118] : memref<1x49x256xf32, #tpu.memory_space<vmem>>, vector<1x1x256xf32>
    %311 = vector.shape_cast %310 : vector<1x1x256xf32> to vector<1x256xf32>
    %312 = vector.shape_cast %309 : vector<1x256xf32> to vector<1x1x256xf32>
    tpu.vector_store %arg5[%c0_117, %c32, %c0_118], %312 {strides = array<i32>} : memref<1x49x256xf32, #tpu.memory_space<vmem>>, vector<1x1x256xf32>,
    %c318_i32 = arith.constant 318 : i32
    %313 = tpu.dynamic_rotate %8 by %c318_i32 dim 1 : vector<4x384xf32>, i32 -> vector<4x384xf32>
    %314 = vector.extract_strided_slice %313 {offsets = [0, 0], sizes = [4, 256], strides = [1, 1]} : vector<4x384xf32> to vector<4x256xf32>
    %315 = arith.mulf %7, %314 : vector<4x256xf32>
    %cst_119 = arith.constant dense<0.000000e+00> : vector<256xf32>
    %316 = vector.multi_reduction <add>, %315, %cst_119 [0] : vector<4x256xf32> to vector<256xf32>
    %317 = vector.shape_cast %316 : vector<256xf32> to vector<1x256xf32>
    %318 = arith.mulf %317, %14 : vector<1x256xf32>
    %c0_120 = arith.constant 0 : index
    %c33 = arith.constant 33 : index
    %c0_121 = arith.constant 0 : index
    %319 = vector.load %arg5[%c0_120, %c33, %c0_121] : memref<1x49x256xf32, #tpu.memory_space<vmem>>, vector<1x1x256xf32>
    %320 = vector.shape_cast %319 : vector<1x1x256xf32> to vector<1x256xf32>
    %321 = vector.shape_cast %318 : vector<1x256xf32> to vector<1x1x256xf32>
    tpu.vector_store %arg5[%c0_120, %c33, %c0_121], %321 {strides = array<i32>} : memref<1x49x256xf32, #tpu.memory_space<vmem>>, vector<1x1x256xf32>,
    %c317_i32 = arith.constant 317 : i32
    %322 = tpu.dynamic_rotate %8 by %c317_i32 dim 1 : vector<4x384xf32>, i32 -> vector<4x384xf32>
    %323 = vector.extract_strided_slice %322 {offsets = [0, 0], sizes = [4, 256], strides = [1, 1]} : vector<4x384xf32> to vector<4x256xf32>
    %324 = arith.mulf %7, %323 : vector<4x256xf32>
    %cst_122 = arith.constant dense<0.000000e+00> : vector<256xf32>
    %325 = vector.multi_reduction <add>, %324, %cst_122 [0] : vector<4x256xf32> to vector<256xf32>
    %326 = vector.shape_cast %325 : vector<256xf32> to vector<1x256xf32>
    %327 = arith.mulf %326, %15 : vector<1x256xf32>
    %c0_123 = arith.constant 0 : index
    %c34 = arith.constant 34 : index
    %c0_124 = arith.constant 0 : index
    %328 = vector.load %arg5[%c0_123, %c34, %c0_124] : memref<1x49x256xf32, #tpu.memory_space<vmem>>, vector<1x1x256xf32>
    %329 = vector.shape_cast %328 : vector<1x1x256xf32> to vector<1x256xf32>
    %330 = vector.shape_cast %327 : vector<1x256xf32> to vector<1x1x256xf32>
    tpu.vector_store %arg5[%c0_123, %c34, %c0_124], %330 {strides = array<i32>} : memref<1x49x256xf32, #tpu.memory_space<vmem>>, vector<1x1x256xf32>,
    %c307_i32 = arith.constant 307 : i32
    %331 = tpu.dynamic_rotate %8 by %c307_i32 dim 1 : vector<4x384xf32>, i32 -> vector<4x384xf32>
    %332 = vector.extract_strided_slice %331 {offsets = [0, 0], sizes = [4, 256], strides = [1, 1]} : vector<4x384xf32> to vector<4x256xf32>
    %333 = arith.mulf %7, %332 : vector<4x256xf32>
    %cst_125 = arith.constant dense<0.000000e+00> : vector<256xf32>
    %334 = vector.multi_reduction <add>, %333, %cst_125 [0] : vector<4x256xf32> to vector<256xf32>
    %335 = vector.shape_cast %334 : vector<256xf32> to vector<1x256xf32>
    %336 = arith.mulf %335, %9 : vector<1x256xf32>
    %c0_126 = arith.constant 0 : index
    %c35 = arith.constant 35 : index
    %c0_127 = arith.constant 0 : index
    %337 = vector.load %arg5[%c0_126, %c35, %c0_127] : memref<1x49x256xf32, #tpu.memory_space<vmem>>, vector<1x1x256xf32>
    %338 = vector.shape_cast %337 : vector<1x1x256xf32> to vector<1x256xf32>
    %339 = vector.shape_cast %336 : vector<1x256xf32> to vector<1x1x256xf32>
    tpu.vector_store %arg5[%c0_126, %c35, %c0_127], %339 {strides = array<i32>} : memref<1x49x256xf32, #tpu.memory_space<vmem>>, vector<1x1x256xf32>,
    %c306_i32 = arith.constant 306 : i32
    %340 = tpu.dynamic_rotate %8 by %c306_i32 dim 1 : vector<4x384xf32>, i32 -> vector<4x384xf32>
    %341 = vector.extract_strided_slice %340 {offsets = [0, 0], sizes = [4, 256], strides = [1, 1]} : vector<4x384xf32> to vector<4x256xf32>
    %342 = arith.mulf %7, %341 : vector<4x256xf32>
    %cst_128 = arith.constant dense<0.000000e+00> : vector<256xf32>
    %343 = vector.multi_reduction <add>, %342, %cst_128 [0] : vector<4x256xf32> to vector<256xf32>
    %344 = vector.shape_cast %343 : vector<256xf32> to vector<1x256xf32>
    %345 = arith.mulf %344, %10 : vector<1x256xf32>
    %c0_129 = arith.constant 0 : index
    %c36 = arith.constant 36 : index
    %c0_130 = arith.constant 0 : index
    %346 = vector.load %arg5[%c0_129, %c36, %c0_130] : memref<1x49x256xf32, #tpu.memory_space<vmem>>, vector<1x1x256xf32>
    %347 = vector.shape_cast %346 : vector<1x1x256xf32> to vector<1x256xf32>
    %348 = vector.shape_cast %345 : vector<1x256xf32> to vector<1x1x256xf32>
    tpu.vector_store %arg5[%c0_129, %c36, %c0_130], %348 {strides = array<i32>} : memref<1x49x256xf32, #tpu.memory_space<vmem>>, vector<1x1x256xf32>,
    %c305_i32 = arith.constant 305 : i32
    %349 = tpu.dynamic_rotate %8 by %c305_i32 dim 1 : vector<4x384xf32>, i32 -> vector<4x384xf32>
    %350 = vector.extract_strided_slice %349 {offsets = [0, 0], sizes = [4, 256], strides = [1, 1]} : vector<4x384xf32> to vector<4x256xf32>
    %351 = arith.mulf %7, %350 : vector<4x256xf32>
    %cst_131 = arith.constant dense<0.000000e+00> : vector<256xf32>
    %352 = vector.multi_reduction <add>, %351, %cst_131 [0] : vector<4x256xf32> to vector<256xf32>
    %353 = vector.shape_cast %352 : vector<256xf32> to vector<1x256xf32>
    %354 = arith.mulf %353, %11 : vector<1x256xf32>
    %c0_132 = arith.constant 0 : index
    %c37 = arith.constant 37 : index
    %c0_133 = arith.constant 0 : index
    %355 = vector.load %arg5[%c0_132, %c37, %c0_133] : memref<1x49x256xf32, #tpu.memory_space<vmem>>, vector<1x1x256xf32>
    %356 = vector.shape_cast %355 : vector<1x1x256xf32> to vector<1x256xf32>
    %357 = vector.shape_cast %354 : vector<1x256xf32> to vector<1x1x256xf32>
    tpu.vector_store %arg5[%c0_132, %c37, %c0_133], %357 {strides = array<i32>} : memref<1x49x256xf32, #tpu.memory_space<vmem>>, vector<1x1x256xf32>,
    %c304_i32 = arith.constant 304 : i32
    %358 = tpu.dynamic_rotate %8 by %c304_i32 dim 1 : vector<4x384xf32>, i32 -> vector<4x384xf32>
    %359 = vector.extract_strided_slice %358 {offsets = [0, 0], sizes = [4, 256], strides = [1, 1]} : vector<4x384xf32> to vector<4x256xf32>
    %360 = arith.mulf %7, %359 : vector<4x256xf32>
    %cst_134 = arith.constant dense<0.000000e+00> : vector<256xf32>
    %361 = vector.multi_reduction <add>, %360, %cst_134 [0] : vector<4x256xf32> to vector<256xf32>
    %362 = vector.shape_cast %361 : vector<256xf32> to vector<1x256xf32>
    %363 = arith.mulf %362, %12 : vector<1x256xf32>
    %c0_135 = arith.constant 0 : index
    %c38 = arith.constant 38 : index
    %c0_136 = arith.constant 0 : index
    %364 = vector.load %arg5[%c0_135, %c38, %c0_136] : memref<1x49x256xf32, #tpu.memory_space<vmem>>, vector<1x1x256xf32>
    %365 = vector.shape_cast %364 : vector<1x1x256xf32> to vector<1x256xf32>
    %366 = vector.shape_cast %363 : vector<1x256xf32> to vector<1x1x256xf32>
    tpu.vector_store %arg5[%c0_135, %c38, %c0_136], %366 {strides = array<i32>} : memref<1x49x256xf32, #tpu.memory_space<vmem>>, vector<1x1x256xf32>,
    %c303_i32 = arith.constant 303 : i32
    %367 = tpu.dynamic_rotate %8 by %c303_i32 dim 1 : vector<4x384xf32>, i32 -> vector<4x384xf32>
    %368 = vector.extract_strided_slice %367 {offsets = [0, 0], sizes = [4, 256], strides = [1, 1]} : vector<4x384xf32> to vector<4x256xf32>
    %369 = arith.mulf %7, %368 : vector<4x256xf32>
    %cst_137 = arith.constant dense<0.000000e+00> : vector<256xf32>
    %370 = vector.multi_reduction <add>, %369, %cst_137 [0] : vector<4x256xf32> to vector<256xf32>
    %371 = vector.shape_cast %370 : vector<256xf32> to vector<1x256xf32>
    %372 = arith.mulf %371, %13 : vector<1x256xf32>
    %c0_138 = arith.constant 0 : index
    %c39 = arith.constant 39 : index
    %c0_139 = arith.constant 0 : index
    %373 = vector.load %arg5[%c0_138, %c39, %c0_139] : memref<1x49x256xf32, #tpu.memory_space<vmem>>, vector<1x1x256xf32>
    %374 = vector.shape_cast %373 : vector<1x1x256xf32> to vector<1x256xf32>
    %375 = vector.shape_cast %372 : vector<1x256xf32> to vector<1x1x256xf32>
    tpu.vector_store %arg5[%c0_138, %c39, %c0_139], %375 {strides = array<i32>} : memref<1x49x256xf32, #tpu.memory_space<vmem>>, vector<1x1x256xf32>,
    %c302_i32 = arith.constant 302 : i32
    %376 = tpu.dynamic_rotate %8 by %c302_i32 dim 1 : vector<4x384xf32>, i32 -> vector<4x384xf32>
    %377 = vector.extract_strided_slice %376 {offsets = [0, 0], sizes = [4, 256], strides = [1, 1]} : vector<4x384xf32> to vector<4x256xf32>
    %378 = arith.mulf %7, %377 : vector<4x256xf32>
    %cst_140 = arith.constant dense<0.000000e+00> : vector<256xf32>
    %379 = vector.multi_reduction <add>, %378, %cst_140 [0] : vector<4x256xf32> to vector<256xf32>
    %380 = vector.shape_cast %379 : vector<256xf32> to vector<1x256xf32>
    %381 = arith.mulf %380, %14 : vector<1x256xf32>
    %c0_141 = arith.constant 0 : index
    %c40 = arith.constant 40 : index
    %c0_142 = arith.constant 0 : index
    %382 = vector.load %arg5[%c0_141, %c40, %c0_142] : memref<1x49x256xf32, #tpu.memory_space<vmem>>, vector<1x1x256xf32>
    %383 = vector.shape_cast %382 : vector<1x1x256xf32> to vector<1x256xf32>
    %384 = vector.shape_cast %381 : vector<1x256xf32> to vector<1x1x256xf32>
    tpu.vector_store %arg5[%c0_141, %c40, %c0_142], %384 {strides = array<i32>} : memref<1x49x256xf32, #tpu.memory_space<vmem>>, vector<1x1x256xf32>,
    %c301_i32 = arith.constant 301 : i32
    %385 = tpu.dynamic_rotate %8 by %c301_i32 dim 1 : vector<4x384xf32>, i32 -> vector<4x384xf32>
    %386 = vector.extract_strided_slice %385 {offsets = [0, 0], sizes = [4, 256], strides = [1, 1]} : vector<4x384xf32> to vector<4x256xf32>
    %387 = arith.mulf %7, %386 : vector<4x256xf32>
    %cst_143 = arith.constant dense<0.000000e+00> : vector<256xf32>
    %388 = vector.multi_reduction <add>, %387, %cst_143 [0] : vector<4x256xf32> to vector<256xf32>
    %389 = vector.shape_cast %388 : vector<256xf32> to vector<1x256xf32>
    %390 = arith.mulf %389, %15 : vector<1x256xf32>
    %c0_144 = arith.constant 0 : index
    %c41 = arith.constant 41 : index
    %c0_145 = arith.constant 0 : index
    %391 = vector.load %arg5[%c0_144, %c41, %c0_145] : memref<1x49x256xf32, #tpu.memory_space<vmem>>, vector<1x1x256xf32>
    %392 = vector.shape_cast %391 : vector<1x1x256xf32> to vector<1x256xf32>
    %393 = vector.shape_cast %390 : vector<1x256xf32> to vector<1x1x256xf32>
    tpu.vector_store %arg5[%c0_144, %c41, %c0_145], %393 {strides = array<i32>} : memref<1x49x256xf32, #tpu.memory_space<vmem>>, vector<1x1x256xf32>,
    %c291_i32 = arith.constant 291 : i32
    %394 = tpu.dynamic_rotate %8 by %c291_i32 dim 1 : vector<4x384xf32>, i32 -> vector<4x384xf32>
    %395 = vector.extract_strided_slice %394 {offsets = [0, 0], sizes = [4, 256], strides = [1, 1]} : vector<4x384xf32> to vector<4x256xf32>
    %396 = arith.mulf %7, %395 : vector<4x256xf32>
    %cst_146 = arith.constant dense<0.000000e+00> : vector<256xf32>
    %397 = vector.multi_reduction <add>, %396, %cst_146 [0] : vector<4x256xf32> to vector<256xf32>
    %398 = vector.shape_cast %397 : vector<256xf32> to vector<1x256xf32>
    %399 = arith.mulf %398, %9 : vector<1x256xf32>
    %c0_147 = arith.constant 0 : index
    %c42 = arith.constant 42 : index
    %c0_148 = arith.constant 0 : index
    %400 = vector.load %arg5[%c0_147, %c42, %c0_148] : memref<1x49x256xf32, #tpu.memory_space<vmem>>, vector<1x1x256xf32>
    %401 = vector.shape_cast %400 : vector<1x1x256xf32> to vector<1x256xf32>
    %402 = vector.shape_cast %399 : vector<1x256xf32> to vector<1x1x256xf32>
    tpu.vector_store %arg5[%c0_147, %c42, %c0_148], %402 {strides = array<i32>} : memref<1x49x256xf32, #tpu.memory_space<vmem>>, vector<1x1x256xf32>,
    %c290_i32 = arith.constant 290 : i32
    %403 = tpu.dynamic_rotate %8 by %c290_i32 dim 1 : vector<4x384xf32>, i32 -> vector<4x384xf32>
    %404 = vector.extract_strided_slice %403 {offsets = [0, 0], sizes = [4, 256], strides = [1, 1]} : vector<4x384xf32> to vector<4x256xf32>
    %405 = arith.mulf %7, %404 : vector<4x256xf32>
    %cst_149 = arith.constant dense<0.000000e+00> : vector<256xf32>
    %406 = vector.multi_reduction <add>, %405, %cst_149 [0] : vector<4x256xf32> to vector<256xf32>
    %407 = vector.shape_cast %406 : vector<256xf32> to vector<1x256xf32>
    %408 = arith.mulf %407, %10 : vector<1x256xf32>
    %c0_150 = arith.constant 0 : index
    %c43 = arith.constant 43 : index
    %c0_151 = arith.constant 0 : index
    %409 = vector.load %arg5[%c0_150, %c43, %c0_151] : memref<1x49x256xf32, #tpu.memory_space<vmem>>, vector<1x1x256xf32>
    %410 = vector.shape_cast %409 : vector<1x1x256xf32> to vector<1x256xf32>
    %411 = vector.shape_cast %408 : vector<1x256xf32> to vector<1x1x256xf32>
    tpu.vector_store %arg5[%c0_150, %c43, %c0_151], %411 {strides = array<i32>} : memref<1x49x256xf32, #tpu.memory_space<vmem>>, vector<1x1x256xf32>,
    %c289_i32 = arith.constant 289 : i32
    %412 = tpu.dynamic_rotate %8 by %c289_i32 dim 1 : vector<4x384xf32>, i32 -> vector<4x384xf32>
    %413 = vector.extract_strided_slice %412 {offsets = [0, 0], sizes = [4, 256], strides = [1, 1]} : vector<4x384xf32> to vector<4x256xf32>
    %414 = arith.mulf %7, %413 : vector<4x256xf32>
    %cst_152 = arith.constant dense<0.000000e+00> : vector<256xf32>
    %415 = vector.multi_reduction <add>, %414, %cst_152 [0] : vector<4x256xf32> to vector<256xf32>
    %416 = vector.shape_cast %415 : vector<256xf32> to vector<1x256xf32>
    %417 = arith.mulf %416, %11 : vector<1x256xf32>
    %c0_153 = arith.constant 0 : index
    %c44 = arith.constant 44 : index
    %c0_154 = arith.constant 0 : index
    %418 = vector.load %arg5[%c0_153, %c44, %c0_154] : memref<1x49x256xf32, #tpu.memory_space<vmem>>, vector<1x1x256xf32>
    %419 = vector.shape_cast %418 : vector<1x1x256xf32> to vector<1x256xf32>
    %420 = vector.shape_cast %417 : vector<1x256xf32> to vector<1x1x256xf32>
    tpu.vector_store %arg5[%c0_153, %c44, %c0_154], %420 {strides = array<i32>} : memref<1x49x256xf32, #tpu.memory_space<vmem>>, vector<1x1x256xf32>,
    %c288_i32 = arith.constant 288 : i32
    %421 = tpu.dynamic_rotate %8 by %c288_i32 dim 1 : vector<4x384xf32>, i32 -> vector<4x384xf32>
    %422 = vector.extract_strided_slice %421 {offsets = [0, 0], sizes = [4, 256], strides = [1, 1]} : vector<4x384xf32> to vector<4x256xf32>
    %423 = arith.mulf %7, %422 : vector<4x256xf32>
    %cst_155 = arith.constant dense<0.000000e+00> : vector<256xf32>
    %424 = vector.multi_reduction <add>, %423, %cst_155 [0] : vector<4x256xf32> to vector<256xf32>
    %425 = vector.shape_cast %424 : vector<256xf32> to vector<1x256xf32>
    %426 = arith.mulf %425, %12 : vector<1x256xf32>
    %c0_156 = arith.constant 0 : index
    %c45 = arith.constant 45 : index
    %c0_157 = arith.constant 0 : index
    %427 = vector.load %arg5[%c0_156, %c45, %c0_157] : memref<1x49x256xf32, #tpu.memory_space<vmem>>, vector<1x1x256xf32>
    %428 = vector.shape_cast %427 : vector<1x1x256xf32> to vector<1x256xf32>
    %429 = vector.shape_cast %426 : vector<1x256xf32> to vector<1x1x256xf32>
    tpu.vector_store %arg5[%c0_156, %c45, %c0_157], %429 {strides = array<i32>} : memref<1x49x256xf32, #tpu.memory_space<vmem>>, vector<1x1x256xf32>,
    %c287_i32 = arith.constant 287 : i32
    %430 = tpu.dynamic_rotate %8 by %c287_i32 dim 1 : vector<4x384xf32>, i32 -> vector<4x384xf32>
    %431 = vector.extract_strided_slice %430 {offsets = [0, 0], sizes = [4, 256], strides = [1, 1]} : vector<4x384xf32> to vector<4x256xf32>
    %432 = arith.mulf %7, %431 : vector<4x256xf32>
    %cst_158 = arith.constant dense<0.000000e+00> : vector<256xf32>
    %433 = vector.multi_reduction <add>, %432, %cst_158 [0] : vector<4x256xf32> to vector<256xf32>
    %434 = vector.shape_cast %433 : vector<256xf32> to vector<1x256xf32>
    %435 = arith.mulf %434, %13 : vector<1x256xf32>
    %c0_159 = arith.constant 0 : index
    %c46 = arith.constant 46 : index
    %c0_160 = arith.constant 0 : index
    %436 = vector.load %arg5[%c0_159, %c46, %c0_160] : memref<1x49x256xf32, #tpu.memory_space<vmem>>, vector<1x1x256xf32>
    %437 = vector.shape_cast %436 : vector<1x1x256xf32> to vector<1x256xf32>
    %438 = vector.shape_cast %435 : vector<1x256xf32> to vector<1x1x256xf32>
    tpu.vector_store %arg5[%c0_159, %c46, %c0_160], %438 {strides = array<i32>} : memref<1x49x256xf32, #tpu.memory_space<vmem>>, vector<1x1x256xf32>,
    %c286_i32 = arith.constant 286 : i32
    %439 = tpu.dynamic_rotate %8 by %c286_i32 dim 1 : vector<4x384xf32>, i32 -> vector<4x384xf32>
    %440 = vector.extract_strided_slice %439 {offsets = [0, 0], sizes = [4, 256], strides = [1, 1]} : vector<4x384xf32> to vector<4x256xf32>
    %441 = arith.mulf %7, %440 : vector<4x256xf32>
    %cst_161 = arith.constant dense<0.000000e+00> : vector<256xf32>
    %442 = vector.multi_reduction <add>, %441, %cst_161 [0] : vector<4x256xf32> to vector<256xf32>
    %443 = vector.shape_cast %442 : vector<256xf32> to vector<1x256xf32>
    %444 = arith.mulf %443, %14 : vector<1x256xf32>
    %c0_162 = arith.constant 0 : index
    %c47 = arith.constant 47 : index
    %c0_163 = arith.constant 0 : index
    %445 = vector.load %arg5[%c0_162, %c47, %c0_163] : memref<1x49x256xf32, #tpu.memory_space<vmem>>, vector<1x1x256xf32>
    %446 = vector.shape_cast %445 : vector<1x1x256xf32> to vector<1x256xf32>
    %447 = vector.shape_cast %444 : vector<1x256xf32> to vector<1x1x256xf32>
    tpu.vector_store %arg5[%c0_162, %c47, %c0_163], %447 {strides = array<i32>} : memref<1x49x256xf32, #tpu.memory_space<vmem>>, vector<1x1x256xf32>,
    %c285_i32 = arith.constant 285 : i32
    %448 = tpu.dynamic_rotate %8 by %c285_i32 dim 1 : vector<4x384xf32>, i32 -> vector<4x384xf32>
    %449 = vector.extract_strided_slice %448 {offsets = [0, 0], sizes = [4, 256], strides = [1, 1]} : vector<4x384xf32> to vector<4x256xf32>
    %450 = arith.mulf %7, %449 : vector<4x256xf32>
    %cst_164 = arith.constant dense<0.000000e+00> : vector<256xf32>
    %451 = vector.multi_reduction <add>, %450, %cst_164 [0] : vector<4x256xf32> to vector<256xf32>
    %452 = vector.shape_cast %451 : vector<256xf32> to vector<1x256xf32>
    %453 = arith.mulf %452, %15 : vector<1x256xf32>
    %c0_165 = arith.constant 0 : index
    %c48 = arith.constant 48 : index
    %c0_166 = arith.constant 0 : index
    %454 = vector.load %arg5[%c0_165, %c48, %c0_166] : memref<1x49x256xf32, #tpu.memory_space<vmem>>, vector<1x1x256xf32>
    %455 = vector.shape_cast %454 : vector<1x1x256xf32> to vector<1x256xf32>
    %456 = vector.shape_cast %453 : vector<1x256xf32> to vector<1x1x256xf32>
    tpu.vector_store %arg5[%c0_165, %c48, %c0_166], %456 {strides = array<i32>} : memref<1x49x256xf32, #tpu.memory_space<vmem>>, vector<1x1x256xf32>,
    return
  }
  func.func @transform_0(%arg0: i32, %arg1: i32) -> (i32, i32) {
    %c0_i32 = arith.constant 0 : i32
    %c0_i32_0 = arith.constant 0 : i32
    %c0_i32_1 = arith.constant 0 : i32
    return %c0_i32, %c0_i32_0 : i32, i32
  }
  func.func @transform_1(%arg0: i32, %arg1: i32) -> (i32, i32, i32) {
    %c0_i32 = arith.constant 0 : i32
    %c0_i32_0 = arith.constant 0 : i32
    return %arg0, %c0_i32, %arg1 : i32, i32, i32
  }
  func.func @transform_3(%arg0: i32, %arg1: i32) -> (i32, i32, i32) {
    %c0_i32 = arith.constant 0 : i32
    %c0_i32_0 = arith.constant 0 : i32
    return %arg0, %c0_i32, %arg1 : i32, i32, i32
  }
}

</mosaic_0001>

<bundles_post_ra>
// kernel: tpu_custom_call.1
= control target key start
LH: loop header
LB: loop body
LE: loop exit
PB: predicated region body
PF: predicated region fallthrough
CT: control target
= control target key end

     0   :  { %8 = vsyncpa [#allocation5], 0  ;;  %s4583_s0 = inlined_call_operand.hbm [shape: f32[7,256], index: 0, kind: input, shape index: {}]   ;;  %s4584_s1 = inlined_call_operand.hbm [shape: f32[2,4,256], index: 1, kind: input, shape index: {}]   ;;  %s4585_s2 = inlined_call_operand.hbm [shape: f32[2,4,384], index: 2, kind: input, shape index: {}]   ;;  %s4586_s3 = inlined_call_operand.vmem [shape: f32[2,49,256], index: 3, kind: output, shape index: {}]  }
   0x1   :  { %9 = vsyncpa [#allocation7], 0 }
   0x2   :  { %11 = vsyncpa [#allocation7 + $0x1], 0  ;;  %s3480_s12 = smov 0   ;;  %s3482_s13 = smov 0  }
   0x3   :  { %s3484_s14 = smov 0   ;;  %s3486_s15 = smov 0  }
   0x4   :  { %s3488_s16 = smov 0   ;;  %s3490_s17 = smov 0  }
   0x5 LB: > { %s3080_s18 = sadd.s32 4294967295, %s3406_s17   ;;  %p72_p0 = scmp.ne.s32.totalorder %s3390_s13, %s3386_s12  ;;  %s3406_s17 = sphi %s3490_s17, %s17_s17   ;;  %s3402_s16 = sphi %s3488_s16, %s4607_s16   ;;  %s3398_s15 = sphi %s3486_s15, %s4606_s15   ;;  %s3394_s14 = sphi %s3484_s14, %s4605_s14   ;;  %s3390_s13 = sphi %s3482_s13, %s4604_s13   ;;  %s3386_s12 = sphi %s3480_s12, %s4603_s12  }
   0x6   : > { %p3510_p1 = scmp.eq.s32.totalorder %s3080_s18, 0  ;;  %p3082_p2 = scmp.ge.s32.totalorder %s3406_s17, 1 }
   0x7   : > { %p111_p3 = scmp.lt.s32.totalorder %s3406_s17, 3  ;;  %s3408_s22 = smov [#allocation4]  }
   0x8   : > { %s4591_s19 = scalar_select %p3510_p1, 1, 0 }
   0x9   : > { %p3518_p4 = por %p3510_p1, %p72_p0  ;;  %p3522_p5 = pnand %p3082_p2, %p111_p3 }
   0xa   : > { %s124_s23 = sshll.u32 %s3408_s22, 4  ;;  %s29_s25 = sadd.s32 1, %s3402_s16  ;;  %s125_s23 = int_to_ptr.vmem [resolvable:$true] %s124_s23 }
   0xb   : > { %s4592_s20 = scalar_select %p3518_p4, 1, 0 }
   0xc   : > { %s4593_s21 = scalar_select %p3522_p5, 1, 0 }
   0xd   : > { %p3153_p6 = pneg %p3522_p5  ;;  %s59_s26 = sadd.s32 1, %s3394_s14 }
   0xe   : > { %p3536_p8 = scmp.ge.s32.totalorder %s29_s25, 2  ;;  %s3268_s30 = scalar_lea.hbm %s4583_s0, 256 }
   0xf   : > { %p3530_p7 = pnand %p3153_p6, %p3510_p1  ;;  %p3269_p9 = scmp.ne.s32.totalorder %s4583_s0, %s3268_s30 }
  0x10   : > { %s4595_s27 = scalar_select %p3536_p8, 1, 0 }
  0x11   : > { %p3270_p10 = pneg %p3530_p7  ;;  %p3275_p13 = scmp.lt.u32.totalorder %s3268_s30, %s4583_s0 }
  0x13   : > { %p3271_p11 = pnand %p3270_p10, %p3269_p9 }
  0x15   : > { %p3272_p12 = pneg %p3271_p11 }
  0x17   : > { %p3277_p0 = pnand %p3275_p13, %p3272_p12 }
  0x19   : > { %3280 = shalt.err (!%p3277_p0)
}
  0x1a   : > { %s3281_s8 = scalar_lea.vmem %s125_s23, 256  ;;  %p3289_p4 = scmp.lt.s32.totalorder %s125_s23, %s125_s23 }
  0x1b   : > { %p3282_p2 = scmp.ne.s32.totalorder %s125_s23, %s3281_s8  ;;  %p3290_p1 = scmp.lt.s32.totalorder %s3281_s8, %s3281_s8 }
  0x1d   : > { %p3284_p3 = pnand %p3282_p2, %p3270_p10  ;;  %p3291_p5 = por %p3290_p1, %p3289_p4 }
  0x1f   : > { %p3285_p6 = pneg %p3284_p3 }
  0x21   : > { %p3292_p8 = pnand %p3291_p5, %p3285_p6 }
  0x23   : > { %3295 = shalt.err (!%p3292_p8)
}
  0x24   : > { %3156 = dma.hbm_to_vmem [thread:$0]  (!%p3530_p7), %s4583_s0, 256, %s125_s23, [#allocation5]  }
  0x25   : > { %p4596_p9 = scmp.ne.s32.totalorder %s4595_s27, 0  ;;  %p66_p1 = scmp.ne.s32.totalorder %s3394_s14, %s3390_s13 }
  0x26   : > { %p67_p4 = scmp.eq.s32.totalorder %s3406_s17, 0  ;;  %p3162_p5 = scmp.lt.s32.totalorder %s3406_s17, 2 }
  0x27   : > { %s4609_s25 = smov (%p4596_p9, %s29_s25), 0  ;;  %s135_s12 = sand.u32 1, %s3394_s14  }
  0x28   : > { %s54_s11 = ssub.s32 %s3402_s16, %s4609_s25  ;;  %p68_p10 = por %p67_p4, %p66_p1 }
  0x29   : > { %p57_p8 = scmp.eq.s32.totalorder %s54_s11, 0  ;;  %s3144_s18 = sshll.u32 %s3402_s16, 7 }
  0x2a   : > { %s3085_s24 = sshll.u32 %s135_s12, 3  ;;  %s3576_s23 = scalar_lea.hbm %s4584_s1, %s3144_s18 }
  0x2b   : > { %s3571_s22 = scalar_select %p57_p8, %s3394_s14, %s59_s26  }
  0x2c   : > { %s139_s27 = scalar_lea.vmem [#allocation6], %s3085_s24  ;;  %p3578_p7 = pnand %p3162_p5, %p68_p10 }
  0x2d   : > { %s149_s30 = sshll.u32 %s139_s27, 4  ;;  %s136_s26 = scalar_lea.sflag [#allocation7], %s135_s12  ;;  %s3582_s30 = int_to_ptr.vmem [resolvable:$true] %s149_s30 }
  0x2e   : > { %s3296_s5 = scalar_lea.hbm %s3576_s23, 128  ;;  %p3298_p12 = pneg %p3578_p7 }
  0x2f   : > { %p3297_p11 = scmp.ne.s32.totalorder %s3576_s23, %s3296_s5  ;;  %s3301_s8 = scalar_lea.hbm %s4584_s1, 256 }
  0x30   : > { %p3302_p2 = scmp.lt.u32.totalorder %s3576_s23, %s4584_s1  ;;  %p3303_p3 = scmp.lt.u32.totalorder %s3301_s8, %s3296_s5 }
  0x31   : > { %p3299_p13 = pnand %p3298_p12, %p3297_p11  ;;  %p3305_p9 = scmp.lt.u32.totalorder %s3296_s5, %s3576_s23 }
  0x32   : > { %p3304_p6 = por %p3303_p3, %p3302_p2 }
  0x33   : > { %p3300_p0 = pneg %p3299_p13 }
  0x34   : > { %p3306_p1 = por %p3305_p9, %p3304_p6 }
  0x36   : > { %p3307_p4 = pnand %p3306_p1, %p3300_p0 }
  0x38   : > { %3310 = shalt.err (!%p3307_p4)
}
  0x39   : > { %s3311_s11 = scalar_lea.vmem %s3582_s30, 128  ;;  %s3409_s12 = smov [#allocation6]  }
  0x3a   : > { %p3312_p5 = scmp.ne.s32.totalorder %s3582_s30, %s3311_s11  ;;  %s3316_s18 = sshll.u32 %s3409_s12, 4  ;;  %s3317_s18 = int_to_ptr.vmem [resolvable:$false] %s3316_s18 }
  0x3b   : > { %s3318_s24 = scalar_lea.vmem %s3317_s18, 256  ;;  %p3319_p11 = scmp.lt.s32.totalorder %s3582_s30, %s3317_s18 }
  0x3c   : > { %p3314_p8 = pnand %p3312_p5, %p3298_p12  ;;  %p3320_p13 = scmp.lt.s32.totalorder %s3318_s24, %s3311_s11 }
  0x3e   : > { %p3315_p10 = pneg %p3314_p8  ;;  %p3321_p2 = por %p3320_p13, %p3319_p11 }
  0x40   : > { %p3322_p3 = pnand %p3321_p2, %p3315_p10 }
  0x42   : > { %3325 = shalt.err (!%p3322_p3)
}
  0x43   : > { %3160 = dma.hbm_to_vmem [thread:$0]  (!%p3578_p7), %s3576_s23, 128, %s3582_s30, %s136_s26  }
  0x44   : > { %p4598_p0 = scmp.ne.s32.totalorder %s4593_s21, 0 }
  0x45   : > { %p4599_p12 = scmp.ne.s32.totalorder (!%p4598_p0), %s4591_s19, 0 }
  0x46   : > { %158 = sbr.rel (%p4598_p0) target bundleno = 548 (0x224), region = 28 }
  0x4d   : > { %3375 = dma.done.wait (%p4599_p12), [#allocation5], 256  }
  0x4e   : > { %3377 = vsyncadd (%p4599_p12), [#allocation5], 4294967040  ;;  %s164_s28 = sand.u32 1, %s3390_s13   ;;  %p4600_p6 = scmp.ne.s32.totalorder %s4592_s20, 0 }
  0x4f   : > { %s3090_s29 = sshll.u32 %s164_s28, 3  ;;  %s165_s27 = scalar_lea.sflag [#allocation7], %s164_s28 }
  0x50   : > { %s3616_s5 = scalar_lea.vmem [#allocation6], %s3090_s29 }
  0x51   : > { %3379 = dma.done.wait (%p4600_p6), %s165_s27, 128  }
  0x52   : > { %3381 = vsyncadd (%p4600_p6), %s165_s27, 4294967168  ;;  %p195_p7 = scmp.lt.s32.totalorder %s3398_s15, 1  ;;  %s3145_s21 = smul.u32 192, %s3398_s15 }
  0x53   : > { %s3410_s4 = smov [#allocation2]   ;;  %s3328_s20 = scalar_lea.hbm %s4585_s2, 384 }
  0x54   : > { %s4611_s15 = smov (!%p195_p7, %s3398_s15), 1  ;;  %s210_s30 = scalar_lea.hbm %s4585_s2, %s3145_s21 }
  0x55   : > { %s218_s26 = sshll.u32 %s3410_s4, 4  ;;  %s3146_s6 = smul.u32 112, %s4611_s15  ;;  %s219_s26 = int_to_ptr.vmem [resolvable:$true] %s218_s26 }
  0x56   : > { %s3326_s7 = scalar_lea.hbm %s210_s30, 192  ;;  %p3329_p1 = scmp.lt.u32.totalorder %s210_s30, %s4585_s2 }
  0x57   : > { %p3327_p9 = scmp.ne.s32.totalorder %s210_s30, %s3326_s7  ;;  %p3330_p4 = scmp.lt.u32.totalorder %s3328_s20, %s3326_s7 }
  0x58   : > { %p3332_p8 = scmp.lt.u32.totalorder %s3326_s7, %s210_s30 }
  0x59   : > { %p3331_p5 = por %p3330_p4, %p3329_p1 }
  0x5b   : > { %p3333_p10 = por %p3332_p8, %p3331_p5 }
  0x5d   : > { %p3334_p11 = pnand %p3333_p10, %p3327_p9 }
  0x5f   : > { %3337 = shalt.err (!%p3334_p11)  }
  0x60   : > { %s3338_s12 = scalar_lea.vmem %s219_s26, 192  ;;  %p3343_p2 = scmp.lt.s32.totalorder %s219_s26, %s219_s26 }
  0x61   : > { %p3339_p13 = scmp.ne.s32.totalorder %s219_s26, %s3338_s12  ;;  %p3344_p3 = scmp.lt.s32.totalorder %s3338_s12, %s3338_s12 }
  0x63   : > { %p3345_p0 = por %p3344_p3, %p3343_p2 }
  0x65   : > { %p3346_p12 = pnand %p3345_p0, %p3339_p13 }
  0x67   : > { %3349 = shalt.err (!%p3346_p12)  }
  0x68   : > { %221 = dma.hbm_to_vmem [thread:$0]  %s210_s30, 192, %s219_s26, [#allocation3] }
  0x69   : > { %s3637_s24 = scalar_lea.vmem %s4586_s3, %s3146_s6 }
  0x6a   : > { %3382 = dma.done.wait [#allocation3], 192 }
  0x6b   : > { %3383 = vsyncadd [#allocation3], 4294967104  ;;  %v3639_v0 = vld [vmem:[#allocation2 + $0x8] sm:$0xf]  ;;  %v3641_v1 = vld [vmem:[#allocation2] sm:$0xff]  ;;  %s3411_s28 = smov 3   ;;  %v251_v10 = vlaneseq }
  0x6c   : > { %249 = vrot.lane.b32.xlu1 %v3639_v0, %s3411_s28  ;;  %245 = vrot.lane.b32.xlu0 %v3641_v1, %s3411_s28  ;;  %v3647_v2 = vcombine.high %v3641_v1, %v3641_v1  ;;  %s3412_s29 = smov 2   ;;  %s3413_s27 = smov 1   ;;  %v3686_v4 = vld [vmem:[%s3616_s5] sm:$0xff]  ;;  %vm264_vm0 = vcmask 1043456   ;;  %v3425_v20 = vmov 1966171168  }
  0x6d   : > { %s3414_s21 = smov 127   ;;  %s3415_s19 = smov 126   ;;  %v281_v13 = vshrl.u32 %v251_v10, 7  ;;  %v235_v18 = vld [vmem:[#allocation4 + $0x3] ss:$8 sm:$0x3]  ;;  %v296_v21 = vunpack.c.l.s4 %v3425_v20 }
  0x6e   : > { %s3416_s23 = smov 125   ;;  %s3417_s30 = smov 115   ;;  %v446_v3 = vcombine.low %v3641_v1, %v3647_v2  ;;  %vm3719_vm1 = vcmp.lt.s32.totalorder %v251_v10, 256  ;;  %v3736_v38 = vand.u32 127, %v251_v10 }
  0x6f   : > { %s3418_s4 = smov 114   ;;  %s3419_s26 = smov 113   ;;  %v3697_v19 = vsub.s32 0, %v281_v13  ;;  %v3701_v24 = vsub.s32 1, %v281_v13  ;;  %v297_v28 = vunpack.c.0.s8 %v296_v21 }
  0x70   : > { %316 = vrot.lane.b32.xlu1 %v3641_v1, %s3412_s29  ;;  %247 = vrot.lane.b32.xlu0 %v3647_v2, %s3411_s28  ;;  %s3420_s6 = smov 112   ;;  %s3421_s7 = smov 111   ;;  %v448_v5 = vmul.f32 %v446_v3, %v3686_v4  ;;  %vm253_vm2 = vcmp.lt.s32.totalorder %v3736_v38, 3  ;;  %vm322_vm3 = vcmp.lt.s32.totalorder %v3736_v38, 2  ;;  %vm387_vm4 = vcmp.lt.s32.totalorder %v3736_v38, 1 }
  0x71   : > { %s3422_s8 = smov 110   ;;  %s3423_s9 = smov 109   ;;  %v3704_v25 = vrot.slane %v235_v18, %v3697_v19  ;;  %v3707_v29 = vrot.slane %v235_v18, %v3701_v24  ;;  %v3713_v33 = vsub.s32 %v297_v28, %v281_v13  ;;  %v229_v59 = vld [vmem:[#allocation4] ss:$8 sm:$0x3]  ;;  %vm506_vm5 = vcmp.lt.s32.totalorder %v3736_v38, 127 }
  0x72   : > { %v450_v6 = vcombine.high %v448_v5, %v448_v5  ;;  %v452_v7 = vsel %vm264_vm0, %v448_v5, 0.0  ;;  %s3424_s20 = smov 99   ;;  %s3426_s10 = smov 98   ;;  %vm571_vm6 = vcmp.lt.s32.totalorder %v3736_v38, 126  ;;  %vm636_vm7 = vcmp.lt.s32.totalorder %v3736_v38, 125 }
  0x73   : > { %v453_v8 = vrot.slane %v452_v7, 4  ;;  %s3427_s11 = smov 97   ;;  %s3428_s12 = smov 96   ;;  %vm701_vm8 = vcmp.lt.s32.totalorder %v3736_v38, 115  ;;  %vm755_vm9 = vcmp.lt.s32.totalorder %v3736_v38, 114  ;;  %vm809_vm10 = vcmp.lt.s32.totalorder %v3736_v38, 113 }
  0x74   : > { %320 = vrot.lane.b32.xlu1 %v3639_v0, %s3412_s29  ;;  %318 = vrot.lane.b32.xlu0 %v3647_v2, %s3412_s29  ;;  %v459_v9 = vsel %vm264_vm0, %v450_v6, 0.0  ;;  %s3429_s15 = smov 95   ;;  %s3430_s18 = smov 94   ;;  %v231_v6 = vld [vmem:[#allocation4 + $0x1] ss:$8 sm:$0x3] }
  0x75   : > { %v454_v11 = vadd.f32 %v453_v8, %v452_v7  ;;  %v460_v12 = vrot.slane %v459_v9, 4  ;;  %s3431_s28 = smov 93   ;;  %s3432_s29 = smov 83   ;;  %v3755_v8 = vrot.slane %v229_v59, %v3697_v19  ;;  %v3762_v18 = vrot.slane %v231_v6, %v3697_v19 }
  0x76   : > { %v3772_v28 = vrot.slane %v231_v6, %v3701_v24  ;;  %vm863_vm11 = vcmp.lt.s32.totalorder %v3736_v38, 112  ;;  %vm917_vm12 = vcmp.lt.s32.totalorder %v3736_v38, 111  ;;  %vm971_vm13 = vcmp.lt.s32.totalorder %v3736_v38, 110 }
  0x77   : > { %v455_v14 = vrot.slane %v454_v11, 2  ;;  %v461_v15 = vadd.f32 %v460_v12, %v459_v9  ;;  %v3758_v9 = vrot.slane %v229_v59, %v3701_v24  ;;  %vm1025_vm14 = vcmp.lt.s32.totalorder %v3736_v38, 109 }
  0x78   : > { %383 = vrot.lane.b32.xlu1 %v3647_v2, %s3413_s27  ;;  %381 = vrot.lane.b32.xlu0 %v3641_v1, %s3413_s27  ;;  %vm1079_vm15 = vcmp.lt.s32.totalorder %v3736_v38, 99 }
  0x79   : > { %v456_v16 = vadd.f32 %v455_v14, %v454_v11  ;;  %v462_v17 = vrot.slane %v461_v15, 2 }
  0x7b   : > { %v457_v22 = vrot.slane %v456_v16, 1  ;;  %v463_v23 = vadd.f32 %v462_v17, %v461_v15  ;;  %v233_v17 = vld [vmem:[#allocation4 + $0x2] ss:$8 sm:$0x3] }
  0x7c   : > { %500 = vrot.lane.b32.xlu1 %v3641_v1, %s3414_s21  ;;  %385 = vrot.lane.b32.xlu0 %v3639_v0, %s3413_s27  ;;  %s3433_s27 = smov 82  }
  0x7d   : > { %v458_v26 = vadd.f32 %v457_v22, %v456_v16  ;;  %v464_v27 = vrot.slane %v463_v23, 1 }
  0x7f   : > { %v465_v30 = vadd.f32 %v464_v27, %v463_v23  ;;  %v477_v31 = vmul.f32 %v3704_v25, %v458_v26 }
  0x80   : > { %504 = vrot.lane.b32.xlu1 %v3639_v0, %s3414_s21  ;;  %502 = vrot.lane.b32.xlu0 %v3647_v2, %s3414_s21  ;;  %s3434_s21 = smov 81  }
  0x81   : > { %v478_v32 = vmul.f32 %v3707_v29, %v465_v30  ;;  %v3775_v30 = vrot.slane %v233_v17, %v3697_v19 }
  0x83   : > { %v481_v34 = vcombine.low %v477_v31, %v478_v32  ;;  %v3778_v31 = vrot.slane %v233_v17, %v3701_v24 }
  0x84   : > { %567 = vrot.lane.b32.xlu1 %v3647_v2, %s3415_s19  ;;  %565 = vrot.lane.b32.xlu0 %v3641_v1, %s3415_s19 }
  0x85   : > { %v488_v35 = vrot.slane %v481_v34, %v3713_v33 }
  0x87   : > { %v495_v36 = vrot.slane %v488_v35, %v3713_v33 }
  0x88   : > { %630 = vrot.lane.b32.xlu1 %v3641_v1, %s3416_s23  ;;  %569 = vrot.lane.b32.xlu0 %v3639_v0, %s3415_s19  ;;  %s3435_s19 = smov 80  }
  0x89   : > { %3095 = vst.msk [vmem:[%s3637_s24 + $0x3] ss:$8 sm:$0x3] %vm3719_vm1, %v495_v36 }
  0x8c   : > { %634 = vrot.lane.b32.xlu1 %v3639_v0, %s3416_s23  ;;  %632 = vrot.lane.b32.xlu0 %v3647_v2, %s3416_s23  ;;  %s3436_s23 = smov 79  }
  0x90   : > { %697 = vrot.lane.b32.xlu1 %v3647_v2, %s3417_s30  ;;  %695 = vrot.lane.b32.xlu0 %v3641_v1, %s3417_s30 }
  0x94   : > { %749 = vrot.lane.b32.xlu1 %v3641_v1, %s3418_s4  ;;  %699 = vrot.lane.b32.xlu0 %v3639_v0, %s3417_s30  ;;  %s3437_s30 = smov 78  }
  0x98   : > { %753 = vrot.lane.b32.xlu1 %v3639_v0, %s3418_s4  ;;  %751 = vrot.lane.b32.xlu0 %v3647_v2, %s3418_s4  ;;  %s3438_s4 = smov 77  }
  0x9c   : > { %805 = vrot.lane.b32.xlu1 %v3647_v2, %s3419_s26  ;;  %803 = vrot.lane.b32.xlu0 %v3641_v1, %s3419_s26 }
  0xa0   : > { %857 = vrot.lane.b32.xlu1 %v3641_v1, %s3420_s6  ;;  %807 = vrot.lane.b32.xlu0 %v3639_v0, %s3419_s26  ;;  %s3439_s26 = smov 67  }
  0xa4   : > { %861 = vrot.lane.b32.xlu1 %v3639_v0, %s3420_s6  ;;  %859 = vrot.lane.b32.xlu0 %v3647_v2, %s3420_s6  ;;  %s3440_s6 = smov 66  }
  0xa8   : > { %913 = vrot.lane.b32.xlu1 %v3647_v2, %s3421_s7  ;;  %911 = vrot.lane.b32.xlu0 %v3641_v1, %s3421_s7 }
  0xac   : > { %965 = vrot.lane.b32.xlu1 %v3641_v1, %s3422_s8  ;;  %915 = vrot.lane.b32.xlu0 %v3639_v0, %s3421_s7  ;;  %s3441_s7 = smov 65  }
  0xb0   : > { %969 = vrot.lane.b32.xlu1 %v3639_v0, %s3422_s8  ;;  %967 = vrot.lane.b32.xlu0 %v3647_v2, %s3422_s8  ;;  %s3442_s8 = smov 64  }
  0xb4   : > { %1021 = vrot.lane.b32.xlu1 %v3647_v2, %s3423_s9  ;;  %1019 = vrot.lane.b32.xlu0 %v3641_v1, %s3423_s9 }
  0xb8   : > { %1073 = vrot.lane.b32.xlu1 %v3641_v1, %s3424_s20  ;;  %1023 = vrot.lane.b32.xlu0 %v3639_v0, %s3423_s9  ;;  %s3443_s9 = smov 63  }
  0xbc   : > { %1077 = vrot.lane.b32.xlu1 %v3639_v0, %s3424_s20  ;;  %1075 = vrot.lane.b32.xlu0 %v3647_v2, %s3424_s20  ;;  %s3444_s20 = smov 62  }
  0xc0   : > { %1129 = vrot.lane.b32.xlu1 %v3647_v2, %s3426_s10  ;;  %1127 = vrot.lane.b32.xlu0 %v3641_v1, %s3426_s10 }
  0xc4   : > { %1181 = vrot.lane.b32.xlu1 %v3641_v1, %s3427_s11  ;;  %1131 = vrot.lane.b32.xlu0 %v3639_v0, %s3426_s10  ;;  %s3445_s10 = smov 61  }
  0xc8   : > { %1185 = vrot.lane.b32.xlu1 %v3639_v0, %s3427_s11  ;;  %1183 = vrot.lane.b32.xlu0 %v3647_v2, %s3427_s11  ;;  %s3446_s11 = smov 51  }
  0xcc   : > { %1237 = vrot.lane.b32.xlu1 %v3647_v2, %s3428_s12  ;;  %1235 = vrot.lane.b32.xlu0 %v3641_v1, %s3428_s12 }
  0xd0   : > { %1289 = vrot.lane.b32.xlu1 %v3641_v1, %s3429_s15  ;;  %1239 = vrot.lane.b32.xlu0 %v3639_v0, %s3428_s12  ;;  %s3447_s12 = smov 50  }
  0xd4   : > { %1293 = vrot.lane.b32.xlu1 %v3639_v0, %s3429_s15  ;;  %1291 = vrot.lane.b32.xlu0 %v3647_v2, %s3429_s15  ;;  %s3448_s15 = smov 49  }
  0xd8   : > { %1345 = vrot.lane.b32.xlu1 %v3647_v2, %s3430_s18  ;;  %1343 = vrot.lane.b32.xlu0 %v3641_v1, %s3430_s18 }
  0xdc   : > { %1397 = vrot.lane.b32.xlu1 %v3641_v1, %s3431_s28  ;;  %1347 = vrot.lane.b32.xlu0 %v3639_v0, %s3430_s18  ;;  %s3449_s18 = smov 48  }
  0xde   : > { %v250_v39 = vpop.permute.xlu1 %249  ;;  %v246_v40 = vpop.permute.xlu0 %245 }
  0xdf   : > { %v255_v43 = vsel %vm253_vm2, %v250_v39, %v246_v40 }
  0xe0   : > { %1401 = vrot.lane.b32.xlu1 %v3639_v0, %s3431_s28  ;;  %1399 = vrot.lane.b32.xlu0 %v3647_v2, %s3431_s28  ;;  %s3450_s28 = smov 47  }
  0xe2   : > { %v317_v41 = vpop.permute.xlu1 %316  ;;  %v248_v42 = vpop.permute.xlu0 %247 }
  0xe3   : > { %v254_v44 = vsel %vm253_vm2, %v246_v40, %v248_v42  ;;  %vm1133_vm2 = vcmp.lt.s32.totalorder %v3736_v38, 98 }
  0xe4   : > { %v258_v45 = vcombine.low %v255_v43, %v254_v44  ;;  %1453 = vrot.lane.b32.xlu1 %v3647_v2, %s3432_s29  ;;  %1451 = vrot.lane.b32.xlu0 %v3641_v1, %s3432_s29 }
  0xe6   : > { %v260_v46 = vmul.f32 %v258_v45, %v3686_v4  ;;  %v321_v47 = vpop.permute.xlu1 %320  ;;  %v319_v48 = vpop.permute.xlu0 %318 }
  0xe7   : > { %v324_v49 = vsel %vm322_vm3, %v321_v47, %v317_v41  ;;  %v323_v50 = vsel %vm322_vm3, %v317_v41, %v319_v48  ;;  %v237_v48 = vld [vmem:[#allocation4 + $0x4] ss:$8 sm:$0x3]  ;;  %vm1187_vm3 = vcmp.lt.s32.totalorder %v3736_v38, 97 }
  0xe8   : > { %v262_v51 = vcombine.high %v260_v46, %v260_v46  ;;  %v265_v52 = vsel %vm264_vm0, %v260_v46, 0.0  ;;  %v327_v53 = vcombine.low %v324_v49, %v323_v50  ;;  %1505 = vrot.lane.b32.xlu1 %v3641_v1, %s3433_s27  ;;  %1455 = vrot.lane.b32.xlu0 %v3639_v0, %s3432_s29  ;;  %s3451_s29 = smov 46  }
  0xe9   : > { %v266_v54 = vrot.slane %v265_v52, 4 }
  0xea   : > { %v272_v55 = vsel %vm264_vm0, %v262_v51, 0.0  ;;  %v329_v56 = vmul.f32 %v327_v53, %v3686_v4  ;;  %v384_v57 = vpop.permute.xlu1 %383  ;;  %v382_v58 = vpop.permute.xlu0 %381 }
  0xeb   : > { %v267_v60 = vadd.f32 %v266_v54, %v265_v52  ;;  %v273_v61 = vrot.slane %v272_v55, 4  ;;  %v388_v20 = vsel %vm387_vm4, %v382_v58, %v384_v57 }
  0xec   : > { %v331_v62 = vcombine.high %v329_v56, %v329_v56  ;;  %v333_v63 = vsel %vm264_vm0, %v329_v56, 0.0  ;;  %1509 = vrot.lane.b32.xlu1 %v3639_v0, %s3433_s27  ;;  %1507 = vrot.lane.b32.xlu0 %v3647_v2, %s3433_s27  ;;  %s3452_s27 = smov 45  }
  0xed   : > { %v268_v3 = vrot.slane %v267_v60, 2  ;;  %v274_v5 = vadd.f32 %v273_v61, %v272_v55  ;;  %v334_v7 = vrot.slane %v333_v63, 4  ;;  %v239_v55 = vld [vmem:[#allocation4 + $0x5] ss:$8 sm:$0x3]  ;;  %v3794_v61 = vrot.slane %v237_v48, %v3697_v19 }
  0xee   : > { %v340_v10 = vsel %vm264_vm0, %v331_v62, 0.0  ;;  %v501_v11 = vpop.permute.xlu1 %500  ;;  %v386_v12 = vpop.permute.xlu0 %385  ;;  %v3797_v62 = vrot.slane %v237_v48, %v3701_v24 }
  0xef   : > { %v269_v13 = vadd.f32 %v268_v3, %v267_v60  ;;  %v275_v14 = vrot.slane %v274_v5, 2  ;;  %v335_v15 = vadd.f32 %v334_v7, %v333_v63  ;;  %v341_v16 = vrot.slane %v340_v10, 4 }
  0xf0   : > { %v389_v21 = vsel %vm387_vm4, %v386_v12, %v382_v58  ;;  %1561 = vrot.lane.b32.xlu1 %v3647_v2, %s3434_s21  ;;  %1559 = vrot.lane.b32.xlu0 %v3641_v1, %s3434_s21  ;;  %v3803_v7 = vrot.slane %v239_v55, %v3697_v19  ;;  %vm1241_vm4 = vcmp.lt.s32.totalorder %v3736_v38, 96 }
  0xf1   : > { %v270_v22 = vrot.slane %v269_v13, 1  ;;  %v276_v23 = vadd.f32 %v275_v14, %v274_v5  ;;  %v336_v26 = vrot.slane %v335_v15, 2  ;;  %v342_v27 = vadd.f32 %v341_v16, %v340_v10 }
  0xf2   : > { %v392_v32 = vcombine.low %v389_v21, %v388_v20  ;;  %v505_v34 = vpop.permute.xlu1 %504  ;;  %v503_v35 = vpop.permute.xlu0 %502 }
  0xf3   : > { %v271_v36 = vadd.f32 %v270_v22, %v269_v13  ;;  %v277_v39 = vrot.slane %v276_v23, 1  ;;  %v337_v40 = vadd.f32 %v336_v26, %v335_v15  ;;  %v343_v41 = vrot.slane %v342_v27, 2 }
  0xf4   : > { %v394_v42 = vmul.f32 %v392_v32, %v3686_v4  ;;  %v507_v43 = vsel %vm506_vm5, %v503_v35, %v505_v34  ;;  %v508_v44 = vsel %vm506_vm5, %v501_v11, %v503_v35  ;;  %1613 = vrot.lane.b32.xlu1 %v3641_v1, %s3435_s19  ;;  %1563 = vrot.lane.b32.xlu0 %v3639_v0, %s3434_s21  ;;  %vm1295_vm5 = vcmp.lt.s32.totalorder %v3736_v38, 95  ;;  %s3453_s21 = smov 35  }
  0xf5   : > { %v278_v45 = vadd.f32 %v277_v39, %v276_v23  ;;  %v338_v46 = vrot.slane %v337_v40, 1  ;;  %v344_v47 = vadd.f32 %v343_v41, %v342_v27  ;;  %v290_v49 = vmul.f32 %v3755_v8, %v271_v36 }
  0xf6   : > { %v396_v50 = vcombine.high %v394_v42, %v394_v42  ;;  %v398_v51 = vsel %vm264_vm0, %v394_v42, 0.0  ;;  %v511_v52 = vcombine.low %v508_v44, %v507_v43  ;;  %v568_v53 = vpop.permute.xlu1 %567  ;;  %v566_v54 = vpop.permute.xlu0 %565  ;;  %v3819_v41 = vrot.slane %v239_v55, %v3701_v24 }
  0xf7   : > { %v291_v56 = vmul.f32 %v3758_v9, %v278_v45  ;;  %v339_v57 = vadd.f32 %v338_v46, %v337_v40  ;;  %v345_v58 = vrot.slane %v344_v47, 1  ;;  %v399_v59 = vrot.slane %v398_v51, 4 }
  0xf8   : > { %v405_v60 = vsel %vm264_vm0, %v396_v50, 0.0  ;;  %v513_v63 = vmul.f32 %v511_v52, %v3686_v4  ;;  %1617 = vrot.lane.b32.xlu1 %v3639_v0, %s3435_s19  ;;  %1615 = vrot.lane.b32.xlu0 %v3647_v2, %s3435_s19  ;;  %v573_v26 = vsel %vm571_vm6, %v566_v54, %v568_v53  ;;  %v241_v52 = vld [vmem:[#allocation4 + $0x6] ss:$8 sm:$0x3]  ;;  %s3454_s19 = smov 34  }
  0xf9   : > { %v294_v3 = vcombine.low %v290_v49, %v291_v56  ;;  %v346_v5 = vadd.f32 %v345_v58, %v344_v47  ;;  %v400_v6 = vadd.f32 %v399_v59, %v398_v51  ;;  %v358_v10 = vmul.f32 %v3762_v18, %v339_v57 }
  0xfa   : > { %v406_v11 = vrot.slane %v405_v60, 4  ;;  %v515_v12 = vcombine.high %v513_v63, %v513_v63  ;;  %v517_v13 = vsel %vm264_vm0, %v513_v63, 0.0  ;;  %v631_v14 = vpop.permute.xlu1 %630  ;;  %v570_v15 = vpop.permute.xlu0 %569 }
  0xfb   : > { %v301_v16 = vrot.slane %v294_v3, %v3713_v33  ;;  %v359_v17 = vmul.f32 %v3772_v28, %v346_v5  ;;  %v401_v20 = vrot.slane %v400_v6, 2  ;;  %v518_v21 = vrot.slane %v517_v13, 4 }
  0xfc   : > { %v407_v22 = vadd.f32 %v406_v11, %v405_v60  ;;  %v524_v23 = vsel %vm264_vm0, %v515_v12, 0.0  ;;  %v572_v27 = vsel %vm571_vm6, %v568_v53, %v570_v15  ;;  %1669 = vrot.lane.b32.xlu1 %v3647_v2, %s3436_s23  ;;  %1667 = vrot.lane.b32.xlu0 %v3641_v1, %s3436_s23  ;;  %v3839_v11 = vrot.slane %v241_v52, %v3697_v19 }
  0xfd   : > { %v308_v32 = vrot.slane %v301_v16, %v3713_v33  ;;  %v362_v34 = vcombine.low %v358_v10, %v359_v17  ;;  %v402_v35 = vadd.f32 %v401_v20, %v400_v6  ;;  %v519_v36 = vadd.f32 %v518_v21, %v517_v13 }
  0xfe   : > { %v408_v39 = vrot.slane %v407_v22, 2  ;;  %v525_v40 = vrot.slane %v524_v23, 4  ;;  %v576_v42 = vcombine.low %v573_v26, %v572_v27  ;;  %v635_v43 = vpop.permute.xlu1 %634  ;;  %v633_v44 = vpop.permute.xlu0 %632  ;;  %v3844_v16 = vrot.slane %v241_v52, %v3701_v24 }
  0xff   : > { %314 = vst.msk [vmem:[%s3637_s24] ss:$8 sm:$0x3] %vm3719_vm1, %v308_v32  ;;  %v369_v45 = vrot.slane %v362_v34, %v3713_v33  ;;  %v403_v46 = vrot.slane %v402_v35, 1  ;;  %v520_v47 = vrot.slane %v519_v36, 2  ;;  %v637_v48 = vsel %vm636_vm7, %v633_v44, %v635_v43 }
 0x100   : > { %v409_v49 = vadd.f32 %v408_v39, %v407_v22  ;;  %v526_v50 = vadd.f32 %v525_v40, %v524_v23  ;;  %v578_v51 = vmul.f32 %v576_v42, %v3686_v4  ;;  %v638_v53 = vsel %vm636_vm7, %v631_v14, %v633_v44  ;;  %1721 = vrot.lane.b32.xlu1 %v3641_v1, %s3437_s30 }
 0x101   : > { %v376_v54 = vrot.slane %v369_v45, %v3713_v33  ;;  %v404_v55 = vadd.f32 %v403_v46, %v402_v35  ;;  %v521_v56 = vadd.f32 %v520_v47, %v519_v36  ;;  %v641_v57 = vcombine.low %v638_v53, %v637_v48  ;;  %1671 = vrot.lane.b32.xlu0 %v3639_v0, %s3436_s23  ;;  %s3455_s23 = smov 33  }
 0x102   : > { %v410_v58 = vrot.slane %v409_v49, 1  ;;  %v527_v59 = vrot.slane %v526_v50, 2  ;;  %v580_v60 = vcombine.high %v578_v51, %v578_v51  ;;  %v582_v63 = vsel %vm264_vm0, %v578_v51, 0.0  ;;  %v698_v3 = vpop.permute.xlu1 %697  ;;  %v696_v5 = vpop.permute.xlu0 %695 }
 0x103   : > { %3093 = vst.msk [vmem:[%s3637_s24 + $0x1] ss:$8 sm:$0x3] %vm3719_vm1, %v376_v54  ;;  %v522_v6 = vrot.slane %v521_v56, 1  ;;  %v583_v10 = vrot.slane %v582_v63, 4  ;;  %v643_v12 = vmul.f32 %v641_v57, %v3686_v4  ;;  %v423_v17 = vmul.f32 %v3775_v30, %v404_v55 }
 0x104   : > { %v411_v13 = vadd.f32 %v410_v58, %v409_v49  ;;  %v528_v14 = vadd.f32 %v527_v59, %v526_v50  ;;  %v589_v15 = vsel %vm264_vm0, %v580_v60, 0.0  ;;  %1725 = vrot.lane.b32.xlu1 %v3639_v0, %s3437_s30  ;;  %v703_v39 = vsel %vm701_vm8, %v696_v5, %v698_v3 }
 0x105   : > { %v584_v20 = vadd.f32 %v583_v10, %v582_v63  ;;  %v590_v21 = vrot.slane %v589_v15, 4  ;;  %v645_v22 = vcombine.high %v643_v12, %v643_v12  ;;  %1723 = vrot.lane.b32.xlu0 %v3647_v2, %s3437_s30  ;;  %v523_v23 = vadd.f32 %v522_v6, %v521_v56  ;;  %s3456_s30 = smov 32  }
 0x106   : > { %v424_v19 = vmul.f32 %v3778_v31, %v411_v13  ;;  %v529_v26 = vrot.slane %v528_v14, 1  ;;  %v647_v27 = vsel %vm264_vm0, %v643_v12, 0.0  ;;  %v750_v32 = vpop.permute.xlu1 %749  ;;  %v700_v34 = vpop.permute.xlu0 %699  ;;  %vm1349_vm6 = vcmp.lt.s32.totalorder %v3736_v38, 94 }
 0x107   : > { %v585_v35 = vrot.slane %v584_v20, 2  ;;  %v591_v24 = vadd.f32 %v590_v21, %v589_v15  ;;  %v648_v36 = vrot.slane %v647_v27, 4  ;;  %v654_v43 = vsel %vm264_vm0, %v645_v22, 0.0 }
 0x108   : > { %v427_v40 = vcombine.low %v423_v17, %v424_v19  ;;  %v530_v42 = vadd.f32 %v529_v26, %v528_v14  ;;  %v702_v44 = vsel %vm701_vm8, %v698_v3, %v700_v34  ;;  %1777 = vrot.lane.b32.xlu1 %v3647_v2, %s3438_s4  ;;  %v655_v48 = vrot.slane %v654_v43, 4 }
 0x109   : > { %v586_v45 = vadd.f32 %v585_v35, %v584_v20  ;;  %v592_v46 = vrot.slane %v591_v24, 2  ;;  %v649_v47 = vadd.f32 %v648_v36, %v647_v27  ;;  %1775 = vrot.lane.b32.xlu0 %v3641_v1, %s3438_s4  ;;  %v542_v50 = vmul.f32 %v3794_v61, %v523_v23 }
 0x10a   : > { %v434_v49 = vrot.slane %v427_v40, %v3713_v33  ;;  %v543_v51 = vmul.f32 %v3797_v62, %v530_v42  ;;  %v706_v52 = vcombine.low %v703_v39, %v702_v44  ;;  %v754_v53 = vpop.permute.xlu1 %753  ;;  %v752_v54 = vpop.permute.xlu0 %751  ;;  %v656_v58 = vadd.f32 %v655_v48, %v654_v43 }
 0x10b   : > { %v587_v55 = vrot.slane %v586_v45, 1  ;;  %v593_v56 = vadd.f32 %v592_v46, %v591_v24  ;;  %v650_v57 = vrot.slane %v649_v47, 2  ;;  %v756_v3 = vsel %vm755_vm9, %v752_v54, %v754_v53 }
 0x10c   : > { %v441_v59 = vrot.slane %v434_v49, %v3713_v33  ;;  %v546_v60 = vcombine.low %v542_v50, %v543_v51  ;;  %v708_v63 = vmul.f32 %v706_v52, %v3686_v4  ;;  %1829 = vrot.lane.b32.xlu1 %v3641_v1, %s3439_s26  ;;  %v657_v12 = vrot.slane %v656_v58, 2 }
 0x10d   : > { %v588_v5 = vadd.f32 %v587_v55, %v586_v45  ;;  %v594_v6 = vrot.slane %v593_v56, 1  ;;  %v651_v10 = vadd.f32 %v650_v57, %v649_v47  ;;  %1779 = vrot.lane.b32.xlu0 %v3639_v0, %s3438_s4  ;;  %v757_v17 = vsel %vm755_vm9, %v750_v32, %v752_v54  ;;  %s3457_s4 = smov 31  }
 0x10e   : > { %3094 = vst.msk [vmem:[%s3637_s24 + $0x2] ss:$8 sm:$0x3] %vm3719_vm1, %v441_v59  ;;  %v553_v13 = vrot.slane %v546_v60, %v3713_v33  ;;  %v710_v14 = vcombine.high %v708_v63, %v708_v63  ;;  %v712_v15 = vsel %vm264_vm0, %v708_v63, 0.0  ;;  %v806_v20 = vpop.permute.xlu1 %805  ;;  %v804_v21 = vpop.permute.xlu0 %803  ;;  %v658_v26 = vadd.f32 %v657_v12, %v656_v58 }
 0x10f   : > { %v595_v22 = vadd.f32 %v594_v6, %v593_v56  ;;  %v607_v19 = vmul.f32 %v3803_v7, %v588_v5  ;;  %v652_v23 = vrot.slane %v651_v10, 1  ;;  %v713_v34 = vrot.slane %v712_v15, 4 }
 0x110   : > { %v560_v27 = vrot.slane %v553_v13, %v3713_v33  ;;  %v719_v35 = vsel %vm264_vm0, %v710_v14, 0.0  ;;  %v760_v24 = vcombine.low %v757_v17, %v756_v3  ;;  %1833 = vrot.lane.b32.xlu1 %v3639_v0, %s3439_s26  ;;  %v659_v32 = vrot.slane %v658_v26, 1 }
 0x111   : > { %v608_v36 = vmul.f32 %v3819_v41, %v595_v22  ;;  %v653_v39 = vadd.f32 %v652_v23, %v651_v10  ;;  %v720_v40 = vrot.slane %v719_v35, 4  ;;  %1831 = vrot.lane.b32.xlu0 %v3647_v2, %s3439_s26  ;;  %v714_v42 = vadd.f32 %v713_v34, %v712_v15  ;;  %s3458_s26 = smov 30  }
 0x112   : > { %3096 = vst.msk [vmem:[%s3637_s24 + $0x4] ss:$8 sm:$0x3] %vm3719_vm1, %v560_v27  ;;  %v762_v43 = vmul.f32 %v760_v24, %v3686_v4  ;;  %v811_v44 = vsel %vm809_vm10, %v804_v21, %v806_v20  ;;  %v858_v45 = vpop.permute.xlu1 %857  ;;  %v808_v46 = vpop.permute.xlu0 %807  ;;  %v660_v48 = vadd.f32 %v659_v32, %v658_v26  ;;  %vm1403_vm7 = vcmp.lt.s32.totalorder %v3736_v38, 93 }
 0x113   : > { %v611_v47 = vcombine.low %v607_v19, %v608_v36  ;;  %v672_v49 = vmul.f32 %v3839_v11, %v653_v39  ;;  %v721_v50 = vadd.f32 %v720_v40, %v719_v35  ;;  %v715_v51 = vrot.slane %v714_v42, 2 }
 0x114   : > { %v764_v52 = vcombine.high %v762_v43, %v762_v43  ;;  %v766_v53 = vsel %vm264_vm0, %v762_v43, 0.0  ;;  %v810_v54 = vsel %vm809_vm10, %v806_v20, %v808_v46  ;;  %1885 = vrot.lane.b32.xlu1 %v3647_v2, %s3440_s6  ;;  %v673_v56 = vmul.f32 %v3844_v16, %v660_v48 }
 0x115   : > { %v618_v55 = vrot.slane %v611_v47, %v3713_v33  ;;  %v722_v57 = vrot.slane %v721_v50, 2  ;;  %v767_v58 = vrot.slane %v766_v53, 4  ;;  %1883 = vrot.lane.b32.xlu0 %v3641_v1, %s3440_s6  ;;  %v716_v59 = vadd.f32 %v715_v51, %v714_v42 }
 0x116   : > { %v773_v60 = vsel %vm264_vm0, %v764_v52, 0.0  ;;  %v814_v63 = vcombine.low %v811_v44, %v810_v54  ;;  %v862_v3 = vpop.permute.xlu1 %861  ;;  %v860_v5 = vpop.permute.xlu0 %859  ;;  %v676_v10 = vcombine.low %v672_v49, %v673_v56  ;;  %vm1457_vm8 = vcmp.lt.s32.totalorder %v3736_v38, 83 }
 0x117   : > { %v625_v6 = vrot.slane %v618_v55, %v3713_v33  ;;  %v723_v12 = vadd.f32 %v722_v57, %v721_v50  ;;  %v768_v13 = vadd.f32 %v767_v58, %v766_v53  ;;  %v717_v14 = vrot.slane %v716_v59, 1 }
 0x118   : > { %v774_v15 = vrot.slane %v773_v60, 4  ;;  %v816_v17 = vmul.f32 %v814_v63, %v3686_v4  ;;  %v864_v20 = vsel %vm863_vm11, %v860_v5, %v862_v3  ;;  %1937 = vrot.lane.b32.xlu1 %v3641_v1, %s3441_s7  ;;  %v683_v21 = vrot.slane %v676_v10, %v3713_v33 }
 0x119   : > { %3097 = vst.msk [vmem:[%s3637_s24 + $0x5] ss:$8 sm:$0x3] %vm3719_vm1, %v625_v6  ;;  %v724_v22 = vrot.slane %v723_v12, 1  ;;  %v769_v19 = vrot.slane %v768_v13, 2  ;;  %v865_v23 = vsel %vm863_vm11, %v858_v45, %v860_v5  ;;  %1887 = vrot.lane.b32.xlu0 %v3639_v0, %s3440_s6  ;;  %v718_v26 = vadd.f32 %v717_v14, %v716_v59  ;;  %s3459_s6 = smov 29  }
 0x11a   : > { %v775_v27 = vadd.f32 %v774_v15, %v773_v60  ;;  %v818_v34 = vcombine.high %v816_v17, %v816_v17  ;;  %v820_v35 = vsel %vm264_vm0, %v816_v17, 0.0  ;;  %v914_v24 = vpop.permute.xlu1 %913  ;;  %v912_v36 = vpop.permute.xlu0 %911  ;;  %v690_v39 = vrot.slane %v683_v21, %v3713_v33 }
 0x11b   : > { %v725_v32 = vadd.f32 %v724_v22, %v723_v12  ;;  %v770_v40 = vadd.f32 %v769_v19, %v768_v13  ;;  %v821_v42 = vrot.slane %v820_v35, 4  ;;  %v726_v43 = vmul.f32 %v718_v26, %v3755_v8 }
 0x11c   : > { %v776_v44 = vrot.slane %v775_v27, 2  ;;  %v827_v45 = vsel %vm264_vm0, %v818_v34, 0.0  ;;  %v868_v46 = vcombine.low %v865_v23, %v864_v20  ;;  %1941 = vrot.lane.b32.xlu1 %v3639_v0, %s3441_s7  ;;  %3098 = vst.msk [vmem:[%s3637_s24 + $0x6] ss:$8 sm:$0x3] %vm3719_vm1, %v690_v39  ;;  %v919_v53 = vsel %vm917_vm12, %v912_v36, %v914_v24 }
 0x11d   : > { %v727_v47 = vmul.f32 %v725_v32, %v3758_v9  ;;  %v771_v48 = vrot.slane %v770_v40, 1  ;;  %v822_v49 = vadd.f32 %v821_v42, %v820_v35  ;;  %v828_v50 = vrot.slane %v827_v45, 4  ;;  %1939 = vrot.lane.b32.xlu0 %v3647_v2, %s3441_s7 }
 0x11e   : > { %v777_v51 = vadd.f32 %v776_v44, %v775_v27  ;;  %v870_v52 = vmul.f32 %v868_v46, %v3686_v4  ;;  %v966_v54 = vpop.permute.xlu1 %965  ;;  %v916_v55 = vpop.permute.xlu0 %915  ;;  %vm1511_vm9 = vcmp.lt.s32.totalorder %v3736_v38, 82  ;;  %vm1565_vm10 = vcmp.lt.s32.totalorder %v3736_v38, 81 }
 0x11f   : > { %v730_v56 = vcombine.low %v726_v43, %v727_v47  ;;  %v772_v57 = vadd.f32 %v771_v48, %v770_v40  ;;  %v823_v58 = vrot.slane %v822_v49, 2  ;;  %v829_v59 = vadd.f32 %v828_v50, %v827_v45 }
 0x120   : > { %v778_v60 = vrot.slane %v777_v51, 1  ;;  %v872_v63 = vcombine.high %v870_v52, %v870_v52  ;;  %v874_v3 = vsel %vm264_vm0, %v870_v52, 0.0  ;;  %v918_v5 = vsel %vm917_vm12, %v914_v24, %v916_v55  ;;  %1993 = vrot.lane.b32.xlu1 %v3647_v2, %s3442_s8 }
 0x121   : > { %v737_v6 = vrot.slane %v730_v56, %v3713_v33  ;;  %v780_v10 = vmul.f32 %v772_v57, %v3762_v18  ;;  %v824_v12 = vadd.f32 %v823_v58, %v822_v49  ;;  %v830_v13 = vrot.slane %v829_v59, 2  ;;  %1991 = vrot.lane.b32.xlu0 %v3641_v1, %s3442_s8 }
 0x122   : > { %v779_v14 = vadd.f32 %v778_v60, %v777_v51  ;;  %v875_v15 = vrot.slane %v874_v3, 4  ;;  %v881_v17 = vsel %vm264_vm0, %v872_v63, 0.0  ;;  %v922_v20 = vcombine.low %v919_v53, %v918_v5  ;;  %v970_v21 = vpop.permute.xlu1 %969  ;;  %v968_v22 = vpop.permute.xlu0 %967 }
 0x123   : > { %v744_v19 = vrot.slane %v737_v6, %v3713_v33  ;;  %v825_v23 = vrot.slane %v824_v12, 1  ;;  %v831_v26 = vadd.f32 %v830_v13, %v829_v59  ;;  %v882_v27 = vrot.slane %v881_v17, 4 }
 0x124   : > { %v781_v34 = vmul.f32 %v779_v14, %v3772_v28  ;;  %v876_v35 = vadd.f32 %v875_v15, %v874_v3  ;;  %v924_v24 = vmul.f32 %v922_v20, %v3686_v4  ;;  %v972_v36 = vsel %vm971_vm13, %v968_v22, %v970_v21  ;;  %2045 = vrot.lane.b32.xlu1 %v3641_v1, %s3443_s9 }
 0x125   : > { %3099 = vst.msk [vmem:[%s3637_s24 + $0x7] ss:$8 sm:$0x3] %vm3719_vm1, %v744_v19  ;;  %v826_v39 = vadd.f32 %v825_v23, %v824_v12  ;;  %v832_v32 = vrot.slane %v831_v26, 1  ;;  %v883_v40 = vadd.f32 %v882_v27, %v881_v17  ;;  %v973_v42 = vsel %vm971_vm13, %v966_v54, %v968_v22  ;;  %1995 = vrot.lane.b32.xlu0 %v3639_v0, %s3442_s8 }
 0x126   : > { %v784_v43 = vcombine.low %v780_v10, %v781_v34  ;;  %v877_v44 = vrot.slane %v876_v35, 2  ;;  %v926_v45 = vcombine.high %v924_v24, %v924_v24  ;;  %v928_v46 = vsel %vm264_vm0, %v924_v24, 0.0  ;;  %v1022_v47 = vpop.permute.xlu1 %1021  ;;  %v1020_v48 = vpop.permute.xlu0 %1019 }
 0x127   : > { %v833_v49 = vadd.f32 %v832_v32, %v831_v26  ;;  %v834_v50 = vmul.f32 %v826_v39, %v3775_v30  ;;  %v884_v51 = vrot.slane %v883_v40, 2  ;;  %v929_v52 = vrot.slane %v928_v46, 4 }
 0x128   : > { %v791_v53 = vrot.slane %v784_v43, %v3713_v33  ;;  %v878_v55 = vadd.f32 %v877_v44, %v876_v35  ;;  %v935_v54 = vsel %vm264_vm0, %v926_v45, 0.0  ;;  %v976_v56 = vcombine.low %v973_v42, %v972_v36  ;;  %2049 = vrot.lane.b32.xlu1 %v3639_v0, %s3443_s9 }
 0x129   : > { %v835_v57 = vmul.f32 %v833_v49, %v3778_v31  ;;  %v885_v58 = vadd.f32 %v884_v51, %v883_v40  ;;  %v930_v59 = vadd.f32 %v929_v52, %v928_v46  ;;  %v936_v60 = vrot.slane %v935_v54, 4  ;;  %2047 = vrot.lane.b32.xlu0 %v3647_v2, %s3443_s9 }
 0x12a   : > { %v798_v63 = vrot.slane %v791_v53, %v3713_v33  ;;  %v879_v3 = vrot.slane %v878_v55, 1  ;;  %v978_v5 = vmul.f32 %v976_v56, %v3686_v4  ;;  %v1027_v6 = vsel %vm1025_vm14, %v1020_v48, %v1022_v47  ;;  %v1074_v10 = vpop.permute.xlu1 %1073  ;;  %v1024_v12 = vpop.permute.xlu0 %1023  ;;  %v3974_v48 = vld [vmem:[#allocation2] sm:$0xff]  ;;  %v3982_v53 = vld [vmem:[#allocation2 + $0x8] sm:$0xf] }
 0x12b   : > { %v838_v13 = vcombine.low %v834_v50, %v835_v57  ;;  %v886_v0 = vrot.slane %v885_v58, 1  ;;  %v931_v14 = vrot.slane %v930_v59, 2  ;;  %v937_v15 = vadd.f32 %v936_v60, %v935_v54 }
 0x12c   : > { %3100 = vst.msk [vmem:[%s3637_s24 + $0x10] ss:$8 sm:$0x3] %vm3719_vm1, %v798_v63  ;;  %v880_v17 = vadd.f32 %v879_v3, %v878_v55  ;;  %v980_v20 = vcombine.high %v978_v5, %v978_v5  ;;  %v982_v21 = vsel %vm264_vm0, %v978_v5, 0.0  ;;  %v1026_v22 = vsel %vm1025_vm14, %v1022_v47, %v1024_v12  ;;  %2101 = vrot.lane.b32.xlu1 %v3647_v2, %s3444_s20 }
 0x12d   : > { %v845_v19 = vrot.slane %v838_v13, %v3713_v33  ;;  %v887_v23 = vadd.f32 %v886_v0, %v885_v58  ;;  %v932_v26 = vadd.f32 %v931_v14, %v930_v59  ;;  %v938_v27 = vrot.slane %v937_v15, 2  ;;  %2099 = vrot.lane.b32.xlu0 %v3641_v1, %s3444_s20 }
 0x12e   : > { %v888_v34 = vmul.f32 %v880_v17, %v3704_v25  ;;  %v983_v35 = vrot.slane %v982_v21, 4  ;;  %v989_v24 = vsel %vm264_vm0, %v980_v20, 0.0  ;;  %v1030_v36 = vcombine.low %v1027_v6, %v1026_v22  ;;  %v1078_v39 = vpop.permute.xlu1 %1077  ;;  %v1076_v32 = vpop.permute.xlu0 %1075 }
 0x12f   : > { %v852_v40 = vrot.slane %v845_v19, %v3713_v33  ;;  %v889_v42 = vmul.f32 %v887_v23, %v3707_v29  ;;  %v933_v43 = vrot.slane %v932_v26, 1  ;;  %v939_v44 = vadd.f32 %v938_v27, %v937_v15 }
 0x130   : > { %v984_v45 = vadd.f32 %v983_v35, %v982_v21  ;;  %v990_v46 = vrot.slane %v989_v24, 4  ;;  %v1032_v47 = vmul.f32 %v1030_v36, %v3686_v4  ;;  %v1080_v1 = vsel %vm1079_vm15, %v1076_v32, %v1078_v39  ;;  %2153 = vrot.lane.b32.xlu1 %v3974_v48, %s3445_s10 }
 0x131   : > { %3101 = vst.msk [vmem:[%s3637_s24 + $0x11] ss:$8 sm:$0x3] %vm3719_vm1, %v852_v40  ;;  %v892_v49 = vcombine.low %v888_v34, %v889_v42  ;;  %v934_v50 = vadd.f32 %v933_v43, %v932_v26  ;;  %v940_v51 = vrot.slane %v939_v44, 1  ;;  %v1081_v52 = vsel %vm1079_vm15, %v1074_v10, %v1076_v32  ;;  %2103 = vrot.lane.b32.xlu0 %v3982_v53, %s3444_s20 }
 0x132   : > { %v985_v55 = vrot.slane %v984_v45, 2  ;;  %v991_v54 = vadd.f32 %v990_v46, %v989_v24  ;;  %v1034_v56 = vcombine.high %v1032_v47, %v1032_v47  ;;  %v1036_v57 = vsel %vm264_vm0, %v1032_v47, 0.0  ;;  %v1130_v58 = vpop.permute.xlu1 %1129  ;;  %v1128_v59 = vpop.permute.xlu0 %1127 }
 0x133   : > { %v899_v60 = vrot.slane %v892_v49, %v3713_v33  ;;  %v941_v63 = vadd.f32 %v940_v51, %v939_v44  ;;  %v942_v3 = vmul.f32 %v934_v50, %v3794_v61  ;;  %v1037_v5 = vrot.slane %v1036_v57, 4 }
 0x134   : > { %v986_v6 = vadd.f32 %v985_v55, %v984_v45  ;;  %v992_v10 = vrot.slane %v991_v54, 2  ;;  %v1043_v12 = vsel %vm264_vm0, %v1034_v56, 0.0  ;;  %v1084_v13 = vcombine.low %v1081_v52, %v1080_v1  ;;  %2157 = vrot.lane.b32.xlu1 %v3982_v53, %s3445_s10 }
 0x135   : > { %v906_v0 = vrot.slane %v899_v60, %v3713_v33  ;;  %v943_v14 = vmul.f32 %v941_v63, %v3797_v62  ;;  %v1038_v15 = vadd.f32 %v1037_v5, %v1036_v57  ;;  %v1044_v17 = vrot.slane %v1043_v12, 4  ;;  %2155 = vrot.lane.b32.xlu0 %v3647_v2, %s3445_s10 }
 0x136   : > { %v987_v20 = vrot.slane %v986_v6, 1  ;;  %v993_v21 = vadd.f32 %v992_v10, %v991_v54  ;;  %v1086_v22 = vmul.f32 %v1084_v13, %v3686_v4  ;;  %v1135_v19 = vsel %vm1133_vm2, %v1128_v59, %v1130_v58  ;;  %v1182_v23 = vpop.permute.xlu1 %1181  ;;  %v1132_v26 = vpop.permute.xlu0 %1131 }
 0x137   : > { %3102 = vst.msk [vmem:[%s3637_s24 + $0x12] ss:$8 sm:$0x3] %vm3719_vm1, %v906_v0  ;;  %v946_v27 = vcombine.low %v942_v3, %v943_v14  ;;  %v1039_v34 = vrot.slane %v1038_v15, 2  ;;  %v1045_v35 = vadd.f32 %v1044_v17, %v1043_v12  ;;  %v1134_v24 = vsel %vm1133_vm2, %v1130_v58, %v1132_v26  ;;  %v4012_v58 = vld [vmem:[%s3616_s5] sm:$0xff] }
 0x138   : > { %v988_v36 = vadd.f32 %v987_v20, %v986_v6  ;;  %v994_v39 = vrot.slane %v993_v21, 1  ;;  %v1088_v32 = vcombine.high %v1086_v22, %v1086_v22  ;;  %v1090_v4 = vsel %vm264_vm0, %v1086_v22, 0.0  ;;  %2209 = vrot.lane.b32.xlu1 %v3647_v2, %s3446_s11 }
 0x139   : > { %v953_v40 = vrot.slane %v946_v27, %v3713_v33  ;;  %v1040_v42 = vadd.f32 %v1039_v34, %v1038_v15  ;;  %v1046_v43 = vrot.slane %v1045_v35, 2  ;;  %v1091_v44 = vrot.slane %v1090_v4, 4  ;;  %2207 = vrot.lane.b32.xlu0 %v3974_v48, %s3446_s11 }
 0x13a   : > { %v995_v45 = vadd.f32 %v994_v39, %v993_v21  ;;  %v996_v46 = vmul.f32 %v988_v36, %v3803_v7  ;;  %v1097_v47 = vsel %vm264_vm0, %v1088_v32, 0.0  ;;  %v1138_v1 = vcombine.low %v1135_v19, %v1134_v24  ;;  %v1186_v49 = vpop.permute.xlu1 %1185  ;;  %v1184_v50 = vpop.permute.xlu0 %1183 }
 0x13b   : > { %v960_v51 = vrot.slane %v953_v40, %v3713_v33  ;;  %v1041_v52 = vrot.slane %v1040_v42, 1  ;;  %v1047_v55 = vadd.f32 %v1046_v43, %v1045_v35  ;;  %v1092_v54 = vadd.f32 %v1091_v44, %v1090_v4 }
 0x13c   : > { %v997_v56 = vmul.f32 %v995_v45, %v3819_v41  ;;  %v1098_v57 = vrot.slane %v1097_v47, 4  ;;  %v1140_v59 = vmul.f32 %v4012_v58, %v1138_v1  ;;  %v1188_v60 = vsel %vm1187_vm3, %v1184_v50, %v1186_v49  ;;  %2261 = vrot.lane.b32.xlu1 %v3974_v48, %s3447_s12 }
 0x13d   : > { %3103 = vst.msk [vmem:[%s3637_s24 + $0x13] ss:$8 sm:$0x3] %vm3719_vm1, %v960_v51  ;;  %v1042_v63 = vadd.f32 %v1041_v52, %v1040_v42  ;;  %v1048_v3 = vrot.slane %v1047_v55, 1  ;;  %v1093_v5 = vrot.slane %v1092_v54, 2  ;;  %v1189_v6 = vsel %vm1187_vm3, %v1182_v23, %v1184_v50  ;;  %2211 = vrot.lane.b32.xlu0 %v3982_v53, %s3446_s11 }
 0x13e   : > { %v1000_v10 = vcombine.low %v996_v46, %v997_v56  ;;  %v1099_v12 = vadd.f32 %v1098_v57, %v1097_v47  ;;  %v1142_v13 = vcombine.high %v1140_v59, %v1140_v59  ;;  %v1144_v0 = vsel %vm264_vm0, %v1140_v59, 0.0  ;;  %v1238_v14 = vpop.permute.xlu1 %1237  ;;  %v1236_v15 = vpop.permute.xlu0 %1235 }
 0x13f   : > { %v1049_v17 = vadd.f32 %v1048_v3, %v1047_v55  ;;  %v1050_v20 = vmul.f32 %v1042_v63, %v3839_v11  ;;  %v1094_v21 = vadd.f32 %v1093_v5, %v1092_v54  ;;  %v1145_v22 = vrot.slane %v1144_v0, 4 }
 0x140   : > { %v1007_v19 = vrot.slane %v1000_v10, %v3713_v33  ;;  %v1100_v26 = vrot.slane %v1099_v12, 2  ;;  %v1151_v23 = vsel %vm264_vm0, %v1142_v13, 0.0  ;;  %v1192_v27 = vcombine.low %v1189_v6, %v1188_v60  ;;  %2265 = vrot.lane.b32.xlu1 %v3982_v53, %s3447_s12 }
 0x141   : > { %v1051_v34 = vmul.f32 %v1049_v17, %v3844_v16  ;;  %v1095_v35 = vrot.slane %v1094_v21, 1  ;;  %v1146_v24 = vadd.f32 %v1145_v22, %v1144_v0  ;;  %v1152_v36 = vrot.slane %v1151_v23, 4  ;;  %2263 = vrot.lane.b32.xlu0 %v3647_v2, %s3447_s12 }
 0x142   : > { %v1014_v39 = vrot.slane %v1007_v19, %v3713_v33  ;;  %v1101_v32 = vadd.f32 %v1100_v26, %v1099_v12  ;;  %v1194_v4 = vmul.f32 %v4012_v58, %v1192_v27  ;;  %v1243_v40 = vsel %vm1241_vm4, %v1236_v15, %v1238_v14  ;;  %v1290_v42 = vpop.permute.xlu1 %1289  ;;  %v1240_v43 = vpop.permute.xlu0 %1239 }
 0x143   : > { %v1054_v44 = vcombine.low %v1050_v20, %v1051_v34  ;;  %v1096_v45 = vadd.f32 %v1095_v35, %v1094_v21  ;;  %v1147_v46 = vrot.slane %v1146_v24, 2  ;;  %v1153_v47 = vadd.f32 %v1152_v36, %v1151_v23 }
 0x144   : > { %3104 = vst.msk [vmem:[%s3637_s24 + $0x14] ss:$8 sm:$0x3] %vm3719_vm1, %v1014_v39  ;;  %v1102_v1 = vrot.slane %v1101_v32, 1  ;;  %v1196_v49 = vcombine.high %v1194_v4, %v1194_v4  ;;  %v1198_v50 = vsel %vm264_vm0, %v1194_v4, 0.0  ;;  %v1242_v51 = vsel %vm1241_vm4, %v1238_v14, %v1240_v43  ;;  %2317 = vrot.lane.b32.xlu1 %v3647_v2, %s3448_s15 }
 0x145   : > { %v1061_v52 = vrot.slane %v1054_v44, %v3713_v33  ;;  %v1104_v55 = vmul.f32 %v1096_v45, %v3755_v8  ;;  %v1148_v54 = vadd.f32 %v1147_v46, %v1146_v24  ;;  %v1154_v56 = vrot.slane %v1153_v47, 2  ;;  %2315 = vrot.lane.b32.xlu0 %v3974_v48, %s3448_s15 }
 0x146   : > { %v1103_v57 = vadd.f32 %v1102_v1, %v1101_v32  ;;  %v1199_v59 = vrot.slane %v1198_v50, 4  ;;  %v1205_v60 = vsel %vm264_vm0, %v1196_v49, 0.0  ;;  %v1246_v63 = vcombine.low %v1243_v40, %v1242_v51  ;;  %v1294_v3 = vpop.permute.xlu1 %1293  ;;  %v1292_v5 = vpop.permute.xlu0 %1291 }
 0x147   : > { %v1068_v6 = vrot.slane %v1061_v52, %v3713_v33  ;;  %v1149_v10 = vrot.slane %v1148_v54, 1  ;;  %v1155_v12 = vadd.f32 %v1154_v56, %v1153_v47  ;;  %v1206_v13 = vrot.slane %v1205_v60, 4 }
 0x148   : > { %v1105_v0 = vmul.f32 %v1103_v57, %v3758_v9  ;;  %v1200_v14 = vadd.f32 %v1199_v59, %v1198_v50  ;;  %v1248_v15 = vmul.f32 %v4012_v58, %v1246_v63  ;;  %v1296_v17 = vsel %vm1295_vm5, %v1292_v5, %v1294_v3  ;;  %2369 = vrot.lane.b32.xlu1 %v3974_v48, %s3449_s18 }
 0x149   : > { %3105 = vst.msk [vmem:[%s3637_s24 + $0x15] ss:$8 sm:$0x3] %vm3719_vm1, %v1068_v6  ;;  %v1150_v20 = vadd.f32 %v1149_v10, %v1148_v54  ;;  %v1156_v21 = vrot.slane %v1155_v12, 1  ;;  %v1207_v22 = vadd.f32 %v1206_v13, %v1205_v60  ;;  %v1297_v19 = vsel %vm1295_vm5, %v1290_v42, %v1292_v5  ;;  %2319 = vrot.lane.b32.xlu0 %v3982_v53, %s3448_s15 }
 0x14a   : > { %v1108_v26 = vcombine.low %v1104_v55, %v1105_v0  ;;  %v1201_v23 = vrot.slane %v1200_v14, 2  ;;  %v1250_v27 = vcombine.high %v1248_v15, %v1248_v15  ;;  %v1252_v34 = vsel %vm264_vm0, %v1248_v15, 0.0  ;;  %v1346_v35 = vpop.permute.xlu1 %1345  ;;  %v1344_v24 = vpop.permute.xlu0 %1343 }
 0x14b   : > { %v1157_v36 = vadd.f32 %v1156_v21, %v1155_v12  ;;  %v1158_v39 = vmul.f32 %v1150_v20, %v3762_v18  ;;  %v1208_v32 = vrot.slane %v1207_v22, 2  ;;  %v1253_v4 = vrot.slane %v1252_v34, 4 }
 0x14c   : > { %v1115_v40 = vrot.slane %v1108_v26, %v3713_v33  ;;  %v1202_v43 = vadd.f32 %v1201_v23, %v1200_v14  ;;  %v1259_v42 = vsel %vm264_vm0, %v1250_v27, 0.0  ;;  %v1300_v44 = vcombine.low %v1297_v19, %v1296_v17  ;;  %2373 = vrot.lane.b32.xlu1 %v3982_v53, %s3449_s18 }
 0x14d   : > { %v1159_v45 = vmul.f32 %v1157_v36, %v3772_v28  ;;  %v1209_v46 = vadd.f32 %v1208_v32, %v1207_v22  ;;  %v1254_v47 = vadd.f32 %v1253_v4, %v1252_v34  ;;  %v1260_v1 = vrot.slane %v1259_v42, 4  ;;  %2371 = vrot.lane.b32.xlu0 %v3647_v2, %s3449_s18 }
 0x14e   : > { %v1122_v49 = vrot.slane %v1115_v40, %v3713_v33  ;;  %v1203_v50 = vrot.slane %v1202_v43, 1  ;;  %v1302_v51 = vmul.f32 %v4012_v58, %v1300_v44  ;;  %v1351_v52 = vsel %vm1349_vm6, %v1344_v24, %v1346_v35  ;;  %v1398_v55 = vpop.permute.xlu1 %1397  ;;  %v1348_v54 = vpop.permute.xlu0 %1347 }
 0x14f   : > { %v1162_v56 = vcombine.low %v1158_v39, %v1159_v45  ;;  %v1210_v57 = vrot.slane %v1209_v46, 1  ;;  %v1255_v59 = vrot.slane %v1254_v47, 2  ;;  %v1261_v60 = vadd.f32 %v1260_v1, %v1259_v42 }
 0x150   : > { %3106 = vst.msk [vmem:[%s3637_s24 + $0x16] ss:$8 sm:$0x3] %vm3719_vm1, %v1122_v49  ;;  %v1204_v63 = vadd.f32 %v1203_v50, %v1202_v43  ;;  %v1304_v3 = vcombine.high %v1302_v51, %v1302_v51  ;;  %v1306_v5 = vsel %vm264_vm0, %v1302_v51, 0.0  ;;  %v1350_v6 = vsel %vm1349_vm6, %v1346_v35, %v1348_v54  ;;  %2425 = vrot.lane.b32.xlu1 %v3647_v2, %s3450_s28 }
 0x151   : > { %v1169_v10 = vrot.slane %v1162_v56, %v3713_v33  ;;  %v1211_v12 = vadd.f32 %v1210_v57, %v1209_v46  ;;  %v1256_v13 = vadd.f32 %v1255_v59, %v1254_v47  ;;  %v1262_v0 = vrot.slane %v1261_v60, 2  ;;  %2423 = vrot.lane.b32.xlu0 %v3974_v48, %s3450_s28 }
 0x152   : > { %v1212_v14 = vmul.f32 %v1204_v63, %v3775_v30  ;;  %v1307_v15 = vrot.slane %v1306_v5, 4  ;;  %v1313_v17 = vsel %vm264_vm0, %v1304_v3, 0.0  ;;  %v1354_v20 = vcombine.low %v1351_v52, %v1350_v6  ;;  %v1402_v21 = vpop.permute.xlu1 %1401  ;;  %v1400_v22 = vpop.permute.xlu0 %1399 }
 0x153   : > { %v1176_v19 = vrot.slane %v1169_v10, %v3713_v33  ;;  %v1213_v26 = vmul.f32 %v1211_v12, %v3778_v31  ;;  %v1257_v23 = vrot.slane %v1256_v13, 1  ;;  %v1263_v27 = vadd.f32 %v1262_v0, %v1261_v60 }
 0x154   : > { %v1308_v34 = vadd.f32 %v1307_v15, %v1306_v5  ;;  %v1314_v35 = vrot.slane %v1313_v17, 4  ;;  %v1356_v24 = vmul.f32 %v4012_v58, %v1354_v20  ;;  %v1404_v36 = vsel %vm1403_vm7, %v1400_v22, %v1402_v21  ;;  %2477 = vrot.lane.b32.xlu1 %v3974_v48, %s3451_s29 }
 0x155   : > { %3107 = vst.msk [vmem:[%s3637_s24 + $0x17] ss:$8 sm:$0x3] %vm3719_vm1, %v1176_v19  ;;  %v1216_v39 = vcombine.low %v1212_v14, %v1213_v26  ;;  %v1258_v32 = vadd.f32 %v1257_v23, %v1256_v13  ;;  %v1264_v4 = vrot.slane %v1263_v27, 1  ;;  %v1405_v40 = vsel %vm1403_vm7, %v1398_v55, %v1400_v22  ;;  %2427 = vrot.lane.b32.xlu0 %v3982_v53, %s3450_s28 }
 0x156   : > { %v1309_v43 = vrot.slane %v1308_v34, 2  ;;  %v1315_v42 = vadd.f32 %v1314_v35, %v1313_v17  ;;  %v1358_v44 = vcombine.high %v1356_v24, %v1356_v24  ;;  %v1360_v45 = vsel %vm264_vm0, %v1356_v24, 0.0  ;;  %v1454_v46 = vpop.permute.xlu1 %1453  ;;  %v1452_v47 = vpop.permute.xlu0 %1451 }
 0x157   : > { %v1223_v1 = vrot.slane %v1216_v39, %v3713_v33  ;;  %v1265_v49 = vadd.f32 %v1264_v4, %v1263_v27  ;;  %v1266_v50 = vmul.f32 %v1258_v32, %v3704_v25  ;;  %v1361_v51 = vrot.slane %v1360_v45, 4 }
 0x158   : > { %v1310_v52 = vadd.f32 %v1309_v43, %v1308_v34  ;;  %v1316_v55 = vrot.slane %v1315_v42, 2  ;;  %v1367_v54 = vsel %vm264_vm0, %v1358_v44, 0.0  ;;  %v1408_v56 = vcombine.low %v1405_v40, %v1404_v36  ;;  %2481 = vrot.lane.b32.xlu1 %v3982_v53, %s3451_s29 }
 0x159   : > { %v1230_v57 = vrot.slane %v1223_v1, %v3713_v33  ;;  %v1267_v59 = vmul.f32 %v1265_v49, %v3707_v29  ;;  %v1362_v60 = vadd.f32 %v1361_v51, %v1360_v45  ;;  %v1368_v63 = vrot.slane %v1367_v54, 4  ;;  %2479 = vrot.lane.b32.xlu0 %v3647_v2, %s3451_s29 }
 0x15a   : > { %v1311_v3 = vrot.slane %v1310_v52, 1  ;;  %v1317_v5 = vadd.f32 %v1316_v55, %v1315_v42  ;;  %v1410_v6 = vmul.f32 %v4012_v58, %v1408_v56  ;;  %v1459_v10 = vsel %vm1457_vm8, %v1452_v47, %v1454_v46  ;;  %v1506_v12 = vpop.permute.xlu1 %1505  ;;  %v1456_v13 = vpop.permute.xlu0 %1455 }
 0x15b   : > { %3108 = vst.msk [vmem:[%s3637_s24 + $0x20] ss:$8 sm:$0x3] %vm3719_vm1, %v1230_v57  ;;  %v1270_v0 = vcombine.low %v1266_v50, %v1267_v59  ;;  %v1363_v14 = vrot.slane %v1362_v60, 2  ;;  %v1369_v15 = vadd.f32 %v1368_v63, %v1367_v54  ;;  %v1458_v17 = vsel %vm1457_vm8, %v1454_v46, %v1456_v13 }
 0x15c   : > { %v1312_v20 = vadd.f32 %v1311_v3, %v1310_v52  ;;  %v1318_v21 = vrot.slane %v1317_v5, 1  ;;  %v1412_v22 = vcombine.high %v1410_v6, %v1410_v6  ;;  %v1414_v19 = vsel %vm264_vm0, %v1410_v6, 0.0  ;;  %2533 = vrot.lane.b32.xlu1 %v3647_v2, %s3452_s27 }
 0x15d   : > { %v1277_v26 = vrot.slane %v1270_v0, %v3713_v33  ;;  %v1364_v23 = vadd.f32 %v1363_v14, %v1362_v60  ;;  %v1370_v27 = vrot.slane %v1369_v15, 2  ;;  %v1415_v34 = vrot.slane %v1414_v19, 4  ;;  %2531 = vrot.lane.b32.xlu0 %v3974_v48, %s3452_s27 }
 0x15e   : > { %v1319_v35 = vadd.f32 %v1318_v21, %v1317_v5  ;;  %v1320_v24 = vmul.f32 %v1312_v20, %v3794_v61  ;;  %v1421_v36 = vsel %vm264_vm0, %v1412_v22, 0.0  ;;  %v1462_v39 = vcombine.low %v1459_v10, %v1458_v17  ;;  %v1510_v32 = vpop.permute.xlu1 %1509  ;;  %v1508_v4 = vpop.permute.xlu0 %1507 }
 0x15f   : > { %v1284_v40 = vrot.slane %v1277_v26, %v3713_v33  ;;  %v1365_v43 = vrot.slane %v1364_v23, 1  ;;  %v1371_v42 = vadd.f32 %v1370_v27, %v1369_v15  ;;  %v1416_v44 = vadd.f32 %v1415_v34, %v1414_v19 }
 0x160   : > { %v1321_v45 = vmul.f32 %v1319_v35, %v3797_v62  ;;  %v1422_v46 = vrot.slane %v1421_v36, 4  ;;  %v1464_v47 = vmul.f32 %v4012_v58, %v1462_v39  ;;  %v1512_v1 = vsel %vm1511_vm9, %v1508_v4, %v1510_v32  ;;  %2585 = vrot.lane.b32.xlu1 %v3974_v48, %s3453_s21 }
 0x161   : > { %3109 = vst.msk [vmem:[%s3637_s24 + $0x21] ss:$8 sm:$0x3] %vm3719_vm1, %v1284_v40  ;;  %v1366_v49 = vadd.f32 %v1365_v43, %v1364_v23  ;;  %v1372_v50 = vrot.slane %v1371_v42, 1  ;;  %v1417_v51 = vrot.slane %v1416_v44, 2  ;;  %v1513_v52 = vsel %vm1511_vm9, %v1506_v12, %v1508_v4  ;;  %2535 = vrot.lane.b32.xlu0 %v3982_v53, %s3452_s27 }
 0x162   : > { %vm1619_vm11 = vcmp.lt.s32.totalorder %v3736_v38, 80  ;;  %v1324_v55 = vcombine.low %v1320_v24, %v1321_v45  ;;  %v1423_v54 = vadd.f32 %v1422_v46, %v1421_v36  ;;  %v1466_v56 = vcombine.high %v1464_v47, %v1464_v47  ;;  %v1562_v59 = vpop.permute.xlu1 %1561  ;;  %v1560_v60 = vpop.permute.xlu0 %1559 }
 0x163   : > { %v1468_v57 = vsel %vm264_vm0, %v1464_v47, 0.0  ;;  %v1373_v63 = vadd.f32 %v1372_v50, %v1371_v42  ;;  %v1374_v3 = vmul.f32 %v1366_v49, %v3803_v7  ;;  %v1418_v5 = vadd.f32 %v1417_v51, %v1416_v44 }
 0x164   : > { %v1469_v6 = vrot.slane %v1468_v57, 4  ;;  %v1331_v10 = vrot.slane %v1324_v55, %v3713_v33  ;;  %v1424_v13 = vrot.slane %v1423_v54, 2  ;;  %v1475_v12 = vsel %vm264_vm0, %v1466_v56, 0.0  ;;  %2589 = vrot.lane.b32.xlu1 %v3982_v53, %s3453_s21 }
 0x165   : > { %v1516_v0 = vcombine.low %v1513_v52, %v1512_v1  ;;  %v1375_v14 = vmul.f32 %v1373_v63, %v3819_v41  ;;  %v1419_v15 = vrot.slane %v1418_v5, 1  ;;  %v1476_v20 = vrot.slane %v1475_v12, 4  ;;  %2587 = vrot.lane.b32.xlu0 %v3647_v2, %s3453_s21 }
 0x166   : > { %v1470_v17 = vadd.f32 %v1469_v6, %v1468_v57  ;;  %v1338_v21 = vrot.slane %v1331_v10, %v3713_v33  ;;  %v1425_v22 = vadd.f32 %v1424_v13, %v1423_v54  ;;  %v1567_v26 = vsel %vm1565_vm10, %v1560_v60, %v1562_v59  ;;  %v1614_v23 = vpop.permute.xlu1 %1613  ;;  %v1564_v27 = vpop.permute.xlu0 %1563 }
 0x167   : > { %v1518_v19 = vmul.f32 %v4012_v58, %v1516_v0  ;;  %v1378_v34 = vcombine.low %v1374_v3, %v1375_v14  ;;  %v1420_v35 = vadd.f32 %v1419_v15, %v1418_v5  ;;  %v1477_v36 = vadd.f32 %v1476_v20, %v1475_v12 }
 0x168   : > { %v1471_v24 = vrot.slane %v1470_v17, 2  ;;  %vm1673_vm12 = vcmp.lt.s32.totalorder %v3736_v38, 79  ;;  %3110 = vst.msk [vmem:[%s3637_s24 + $0x22] ss:$8 sm:$0x3] %vm3719_vm1, %v1338_v21  ;;  %v1426_v39 = vrot.slane %v1425_v22, 1  ;;  %v1566_v40 = vsel %vm1565_vm10, %v1562_v59, %v1564_v27  ;;  %2641 = vrot.lane.b32.xlu1 %v3647_v2, %s3454_s19 }
 0x169   : > { %v1520_v32 = vcombine.high %v1518_v19, %v1518_v19  ;;  %v1522_v4 = vsel %vm264_vm0, %v1518_v19, 0.0  ;;  %v1385_v43 = vrot.slane %v1378_v34, %v3713_v33  ;;  %v1428_v42 = vmul.f32 %v1420_v35, %v3839_v11  ;;  %2639 = vrot.lane.b32.xlu0 %v3974_v48, %s3454_s19 }
 0x16a   : > { %v1472_v44 = vadd.f32 %v1471_v24, %v1470_v17  ;;  %v1478_v45 = vrot.slane %v1477_v36, 2  ;;  %v1427_v46 = vadd.f32 %v1426_v39, %v1425_v22  ;;  %v1523_v47 = vrot.slane %v1522_v4, 4  ;;  %v1618_v50 = vpop.permute.xlu1 %1617  ;;  %v1616_v51 = vpop.permute.xlu0 %1615 }
 0x16b   : > { %v1529_v1 = vsel %vm264_vm0, %v1520_v32, 0.0  ;;  %v1570_v49 = vcombine.low %v1567_v26, %v1566_v40  ;;  %v1392_v52 = vrot.slane %v1385_v43, %v3713_v33  ;;  %v1620_v63 = vsel %vm1619_vm11, %v1616_v51, %v1618_v50 }
 0x16c   : > { %v1473_v55 = vrot.slane %v1472_v44, 1  ;;  %v1479_v54 = vadd.f32 %v1478_v45, %v1477_v36  ;;  %v1530_v56 = vrot.slane %v1529_v1, 4  ;;  %v1429_v57 = vmul.f32 %v1427_v46, %v3844_v16  ;;  %2693 = vrot.lane.b32.xlu1 %v3974_v48, %s3455_s23 }
 0x16d   : > { %v1524_v59 = vadd.f32 %v1523_v47, %v1522_v4  ;;  %v1572_v60 = vmul.f32 %v4012_v58, %v1570_v49  ;;  %3111 = vst.msk [vmem:[%s3637_s24 + $0x23] ss:$8 sm:$0x3] %vm3719_vm1, %v1392_v52  ;;  %v1621_v10 = vsel %vm1619_vm11, %v1614_v23, %v1616_v51  ;;  %2643 = vrot.lane.b32.xlu0 %v3982_v53, %s3454_s19  ;;  %vm1727_vm13 = vcmp.lt.s32.totalorder %v3736_v38, 78 }
 0x16e   : > { %v1474_v3 = vadd.f32 %v1473_v55, %v1472_v44  ;;  %v1480_v5 = vrot.slane %v1479_v54, 1  ;;  %v1531_v6 = vadd.f32 %v1530_v56, %v1529_v1  ;;  %v1432_v13 = vcombine.low %v1428_v42, %v1429_v57  ;;  %v1670_v15 = vpop.permute.xlu1 %1669  ;;  %v1668_v17 = vpop.permute.xlu0 %1667 }
 0x16f   : > { %v1525_v12 = vrot.slane %v1524_v59, 2  ;;  %v1574_v0 = vcombine.high %v1572_v60, %v1572_v60  ;;  %v1576_v14 = vsel %vm264_vm0, %v1572_v60, 0.0  ;;  %v1624_v34 = vcombine.low %v1621_v10, %v1620_v63 }
 0x170   : > { %v1481_v20 = vadd.f32 %v1480_v5, %v1479_v54  ;;  %v1482_v21 = vmul.f32 %v1474_v3, %v3755_v8  ;;  %v1532_v22 = vrot.slane %v1531_v6, 2  ;;  %v1577_v19 = vrot.slane %v1576_v14, 4  ;;  %2697 = vrot.lane.b32.xlu1 %v3982_v53, %s3455_s23 }
 0x171   : > { %v1439_v26 = vrot.slane %v1432_v13, %v3713_v33  ;;  %v1526_v27 = vadd.f32 %v1525_v12, %v1524_v59  ;;  %v1583_v23 = vsel %vm264_vm0, %v1574_v0, 0.0  ;;  %2695 = vrot.lane.b32.xlu0 %v3647_v2, %s3455_s23  ;;  %v1626_v40 = vmul.f32 %v4012_v58, %v1624_v34 }
 0x172   : > { %v1483_v35 = vmul.f32 %v1481_v20, %v3758_v9  ;;  %v1533_v24 = vadd.f32 %v1532_v22, %v1531_v6  ;;  %v1578_v36 = vadd.f32 %v1577_v19, %v1576_v14  ;;  %v1584_v39 = vrot.slane %v1583_v23, 4  ;;  %v1722_v42 = vpop.permute.xlu1 %1721 }
 0x173   : > { %v1446_v32 = vrot.slane %v1439_v26, %v3713_v33  ;;  %v1527_v4 = vrot.slane %v1526_v27, 1  ;;  %v1675_v43 = vsel %vm1673_vm12, %v1668_v17, %v1670_v15  ;;  %v1672_v1 = vpop.permute.xlu0 %1671  ;;  %v1628_v50 = vcombine.high %v1626_v40, %v1626_v40 }
 0x174   : > { %v1486_v44 = vcombine.low %v1482_v21, %v1483_v35  ;;  %v1534_v45 = vrot.slane %v1533_v24, 1  ;;  %v1579_v46 = vrot.slane %v1578_v36, 2  ;;  %v1585_v47 = vadd.f32 %v1584_v39, %v1583_v23  ;;  %2749 = vrot.lane.b32.xlu1 %v3647_v2, %s3456_s30 }
 0x175   : > { %3112 = vst.msk [vmem:[%s3637_s24 + $0x24] ss:$8 sm:$0x3] %vm3719_vm1, %v1446_v32  ;;  %v1528_v49 = vadd.f32 %v1527_v4, %v1526_v27  ;;  %v1630_v51 = vsel %vm264_vm0, %v1626_v40, 0.0  ;;  %v1674_v52 = vsel %vm1673_vm12, %v1670_v15, %v1672_v1  ;;  %vm1781_vm14 = vcmp.lt.s32.totalorder %v3736_v38, 77  ;;  %2747 = vrot.lane.b32.xlu0 %v3974_v48, %s3456_s30 }
 0x176   : > { %v1493_v55 = vrot.slane %v1486_v44, %v3713_v33  ;;  %v1535_v54 = vadd.f32 %v1534_v45, %v1533_v24  ;;  %v1580_v56 = vadd.f32 %v1579_v46, %v1578_v36  ;;  %v1586_v57 = vrot.slane %v1585_v47, 2  ;;  %v1726_v5 = vpop.permute.xlu1 %1725 }
 0x177   : > { %v1536_v59 = vmul.f32 %v1528_v49, %v3762_v18  ;;  %v1631_v60 = vrot.slane %v1630_v51, 4  ;;  %v1637_v63 = vsel %vm264_vm0, %v1628_v50, 0.0  ;;  %v1678_v3 = vcombine.low %v1675_v43, %v1674_v52  ;;  %v1724_v0 = vpop.permute.xlu0 %1723 }
 0x178   : > { %v1500_v6 = vrot.slane %v1493_v55, %v3713_v33  ;;  %v1537_v10 = vmul.f32 %v1535_v54, %v3772_v28  ;;  %v1581_v13 = vrot.slane %v1580_v56, 1  ;;  %v1587_v12 = vadd.f32 %v1586_v57, %v1585_v47  ;;  %2801 = vrot.lane.b32.xlu1 %v3974_v48, %s3457_s4 }
 0x179   : > { %v1632_v14 = vadd.f32 %v1631_v60, %v1630_v51  ;;  %v1638_v15 = vrot.slane %v1637_v63, 4  ;;  %v1680_v17 = vmul.f32 %v4012_v58, %v1678_v3  ;;  %v1728_v20 = vsel %vm1727_vm13, %v1724_v0, %v1726_v5  ;;  %2751 = vrot.lane.b32.xlu0 %v3982_v53, %s3456_s30 }
 0x17a   : > { %3113 = vst.msk [vmem:[%s3637_s24 + $0x25] ss:$8 sm:$0x3] %vm3719_vm1, %v1500_v6  ;;  %v1540_v21 = vcombine.low %v1536_v59, %v1537_v10  ;;  %v1582_v22 = vadd.f32 %v1581_v13, %v1580_v56  ;;  %v1588_v19 = vrot.slane %v1587_v12, 1  ;;  %v1729_v26 = vsel %vm1727_vm13, %v1722_v42, %v1724_v0  ;;  %v1778_v24 = vpop.permute.xlu1 %1777 }
 0x17b   : > { %v1633_v27 = vrot.slane %v1632_v14, 2  ;;  %v1639_v23 = vadd.f32 %v1638_v15, %v1637_v63  ;;  %v1682_v34 = vcombine.high %v1680_v17, %v1680_v17  ;;  %v1684_v35 = vsel %vm264_vm0, %v1680_v17, 0.0  ;;  %v1776_v40 = vpop.permute.xlu0 %1775 }
 0x17c   : > { %v1547_v36 = vrot.slane %v1540_v21, %v3713_v33  ;;  %v1589_v39 = vadd.f32 %v1588_v19, %v1587_v12  ;;  %v1590_v32 = vmul.f32 %v1582_v22, %v3775_v30  ;;  %v1685_v4 = vrot.slane %v1684_v35, 4  ;;  %2805 = vrot.lane.b32.xlu1 %v3982_v53, %s3457_s4 }
 0x17d   : > { %v1634_v43 = vadd.f32 %v1633_v27, %v1632_v14  ;;  %v1640_v44 = vrot.slane %v1639_v23, 2  ;;  %v1691_v42 = vsel %vm264_vm0, %v1682_v34, 0.0  ;;  %v1732_v45 = vcombine.low %v1729_v26, %v1728_v20  ;;  %2803 = vrot.lane.b32.xlu0 %v3647_v2, %s3457_s4 }
 0x17e   : > { %v1554_v46 = vrot.slane %v1547_v36, %v3713_v33  ;;  %v1591_v47 = vmul.f32 %v1589_v39, %v3778_v31  ;;  %v1686_v1 = vadd.f32 %v1685_v4, %v1684_v35  ;;  %v1692_v49 = vrot.slane %v1691_v42, 4  ;;  %v1830_v55 = vpop.permute.xlu1 %1829 }
 0x17f   : > { %v1635_v50 = vrot.slane %v1634_v43, 1  ;;  %v1641_v51 = vadd.f32 %v1640_v44, %v1639_v23  ;;  %v1734_v52 = vmul.f32 %v4012_v58, %v1732_v45  ;;  %vm1835_vm15 = vcmp.lt.s32.totalorder %v3736_v38, 67  ;;  %v1780_v60 = vpop.permute.xlu0 %1779 }
 0x180   : > { %3114 = vst.msk [vmem:[%s3637_s24 + $0x26] ss:$8 sm:$0x3] %vm3719_vm1, %v1554_v46  ;;  %v1594_v54 = vcombine.low %v1590_v32, %v1591_v47  ;;  %v1687_v56 = vrot.slane %v1686_v1, 2  ;;  %v1693_v57 = vadd.f32 %v1692_v49, %v1691_v42  ;;  %v1783_v59 = vsel %vm1781_vm14, %v1776_v40, %v1778_v24  ;;  %2857 = vrot.lane.b32.xlu1 %v3647_v2, %s3458_s26 }
 0x181   : > { %vm1889_vm2 = vcmp.lt.s32.totalorder %v3736_v38, 66  ;;  %v1636_v63 = vadd.f32 %v1635_v50, %v1634_v43  ;;  %v1642_v3 = vrot.slane %v1641_v51, 1  ;;  %v1736_v5 = vcombine.high %v1734_v52, %v1734_v52  ;;  %2855 = vrot.lane.b32.xlu0 %v3974_v48, %s3458_s26 }
 0x182   : > { %v1738_v6 = vsel %vm264_vm0, %v1734_v52, 0.0  ;;  %v1601_v10 = vrot.slane %v1594_v54, %v3713_v33  ;;  %v1688_v13 = vadd.f32 %v1687_v56, %v1686_v1  ;;  %v1694_v12 = vrot.slane %v1693_v57, 2  ;;  %v1834_v21 = vpop.permute.xlu1 %1833 }
 0x183   : > { %v1739_v0 = vrot.slane %v1738_v6, 4  ;;  %v1643_v14 = vadd.f32 %v1642_v3, %v1641_v51  ;;  %v1644_v15 = vmul.f32 %v1636_v63, %v3704_v25  ;;  %v1745_v17 = vsel %vm264_vm0, %v1736_v5, 0.0  ;;  %v1832_v23 = vpop.permute.xlu0 %1831 }
 0x184   : > { %v1782_v20 = vsel %vm1781_vm14, %v1778_v24, %v1780_v60  ;;  %v1608_v22 = vrot.slane %v1601_v10, %v3713_v33  ;;  %v1689_v19 = vrot.slane %v1688_v13, 1  ;;  %v1695_v26 = vadd.f32 %v1694_v12, %v1693_v57  ;;  %2909 = vrot.lane.b32.xlu1 %v3974_v48, %s3459_s6 }
 0x185   : > { %v1740_v27 = vadd.f32 %v1739_v0, %v1738_v6  ;;  %v1645_v34 = vmul.f32 %v1643_v14, %v3707_v29  ;;  %v1746_v35 = vrot.slane %v1745_v17, 4  ;;  %v1786_v36 = vcombine.low %v1783_v59, %v1782_v20  ;;  %2859 = vrot.lane.b32.xlu0 %v3982_v53, %s3458_s26 }
 0x186   : > { %v1836_v39 = vsel %vm1835_vm15, %v1832_v23, %v1834_v21  ;;  %3115 = vst.msk [vmem:[%s3637_s24 + $0x27] ss:$8 sm:$0x3] %vm3719_vm1, %v1608_v22  ;;  %v1690_v24 = vadd.f32 %v1689_v19, %v1688_v13  ;;  %v1696_v32 = vrot.slane %v1695_v26, 1  ;;  %v1837_v40 = vsel %vm1835_vm15, %v1830_v55, %v1832_v23  ;;  %v1886_v46 = vpop.permute.xlu1 %1885 }
 0x187   : > { %v1741_v4 = vrot.slane %v1740_v27, 2  ;;  %v1648_v43 = vcombine.low %v1644_v15, %v1645_v34  ;;  %v1747_v44 = vadd.f32 %v1746_v35, %v1745_v17  ;;  %v1788_v42 = vmul.f32 %v4012_v58, %v1786_v36  ;;  %v1884_v49 = vpop.permute.xlu0 %1883 }
 0x188   : > { %v1840_v45 = vcombine.low %v1837_v40, %v1836_v39  ;;  %v1697_v47 = vadd.f32 %v1696_v32, %v1695_v26  ;;  %v1698_v48 = vmul.f32 %v1690_v24, %v3794_v61  ;;  %vm1943_vm3 = vcmp.lt.s32.totalorder %v3736_v38, 65  ;;  %2913 = vrot.lane.b32.xlu1 %v3982_v53, %s3459_s6 }
 0x189   : > { %v1742_v1 = vadd.f32 %v1741_v4, %v1740_v27  ;;  %v1655_v50 = vrot.slane %v1648_v43, %v3713_v33  ;;  %v1748_v51 = vrot.slane %v1747_v44, 2  ;;  %v1790_v52 = vcombine.high %v1788_v42, %v1788_v42  ;;  %2911 = vrot.lane.b32.xlu0 %v3647_v2, %s3459_s6 }
 0x18a   : > { %v1792_v55 = vsel %vm264_vm0, %v1788_v42, 0.0  ;;  %v1699_v54 = vmul.f32 %v1697_v47, %v3797_v62  ;;  %v1842_v59 = vmul.f32 %v4012_v58, %v1840_v45  ;;  %v1891_v5 = vsel %vm1889_vm2, %v1884_v49, %v1886_v46  ;;  %v1938_v6 = vpop.permute.xlu1 %1937 }
 0x18b   : > { %v1743_v56 = vrot.slane %v1742_v1, 1  ;;  %v1793_v57 = vrot.slane %v1792_v55, 4  ;;  %v1662_v60 = vrot.slane %v1655_v50, %v3713_v33  ;;  %v1749_v63 = vadd.f32 %v1748_v51, %v1747_v44  ;;  %v1888_v0 = vpop.permute.xlu0 %1887 }
 0x18c   : > { %v1799_v3 = vsel %vm264_vm0, %v1790_v52, 0.0  ;;  %v1702_v10 = vcombine.low %v1698_v48, %v1699_v54  ;;  %v1844_v15 = vcombine.high %v1842_v59, %v1842_v59  ;;  %v1846_v2 = vsel %vm264_vm0, %v1842_v59, 0.0 }
 0x18d   : > { %v1744_v53 = vadd.f32 %v1743_v56, %v1742_v1  ;;  %v1794_v13 = vadd.f32 %v1793_v57, %v1792_v55  ;;  %v1800_v12 = vrot.slane %v1799_v3, 4  ;;  %3116 = vst.msk [vmem:[%s3637_s24 + $0x30] ss:$8 sm:$0x3] %vm3719_vm1, %v1662_v60  ;;  %v1750_v14 = vrot.slane %v1749_v63, 1 }
 0x18e   : > { %v1890_v17 = vsel %vm1889_vm2, %v1886_v46, %v1888_v0  ;;  %vm1997_vm4 = vcmp.lt.s32.totalorder %v3736_v38, 64  ;;  %v1709_v20 = vrot.slane %v1702_v10, %v3713_v33  ;;  %v1847_v27 = vrot.slane %v1846_v2, 4  ;;  %v1942_v35 = vpop.permute.xlu1 %1941 }
 0x18f   : > { %v1752_v21 = vmul.f32 %v1744_v53, %v3803_v7  ;;  %v1795_v22 = vrot.slane %v1794_v13, 2  ;;  %v1801_v19 = vadd.f32 %v1800_v12, %v1799_v3  ;;  %v1751_v26 = vadd.f32 %v1750_v14, %v1749_v63  ;;  %v1940_v4 = vpop.permute.xlu0 %1939 }
 0x190   : > { %v1853_v23 = vsel %vm264_vm0, %v1844_v15, 0.0  ;;  %v1894_v34 = vcombine.low %v1891_v5, %v1890_v17  ;;  %v1716_v36 = vrot.slane %v1709_v20, %v3713_v33  ;;  %v1848_v43 = vadd.f32 %v1847_v27, %v1846_v2 }
 0x191   : > { %v1796_v39 = vadd.f32 %v1795_v22, %v1794_v13  ;;  %v1802_v24 = vrot.slane %v1801_v19, 2  ;;  %v1854_v32 = vrot.slane %v1853_v23, 4  ;;  %v1753_v40 = vmul.f32 %v1751_v26, %v3819_v41 }
 0x192   : > { %v1896_v44 = vmul.f32 %v4012_v58, %v1894_v34  ;;  %v1944_v42 = vsel %vm1943_vm3, %v1940_v4, %v1942_v35  ;;  %3117 = vst.msk [vmem:[%s3637_s24 + $0x31] ss:$8 sm:$0x3] %vm3719_vm1, %v1716_v36  ;;  %v1945_v48 = vsel %vm1943_vm3, %v1938_v6, %v1940_v4  ;;  %vm2051_vm5 = vcmp.lt.s32.totalorder %v3736_v38, 63  ;;  %v1994_v52 = vpop.permute.xlu1 %1993 }
 0x193   : > { %v1797_v45 = vrot.slane %v1796_v39, 1  ;;  %v1803_v46 = vadd.f32 %v1802_v24, %v1801_v19  ;;  %v1855_v47 = vadd.f32 %v1854_v32, %v1853_v23  ;;  %v1756_v1 = vcombine.low %v1752_v21, %v1753_v40  ;;  %v1992_v59 = vpop.permute.xlu0 %1991 }
 0x194   : > { %v1849_v49 = vrot.slane %v1848_v43, 2  ;;  %v1898_v50 = vcombine.high %v1896_v44, %v1896_v44  ;;  %v1900_v51 = vsel %vm264_vm0, %v1896_v44, 0.0  ;;  %v1948_v5 = vcombine.low %v1945_v48, %v1944_v42 }
 0x195   : > { %v1798_v55 = vadd.f32 %v1797_v45, %v1796_v39  ;;  %v1804_v54 = vrot.slane %v1803_v46, 1  ;;  %v1856_v56 = vrot.slane %v1855_v47, 2  ;;  %v1901_v57 = vrot.slane %v1900_v51, 4 }
 0x196   : > { %v1763_v60 = vrot.slane %v1756_v1, %v3713_v33  ;;  %v1850_v63 = vadd.f32 %v1849_v49, %v1848_v43  ;;  %v1907_v3 = vsel %vm264_vm0, %v1898_v50, 0.0  ;;  %v1950_v15 = vmul.f32 %v4012_v58, %v1948_v5  ;;  %v2046_v2 = vpop.permute.xlu1 %2045 }
 0x197   : > { %v1805_v6 = vadd.f32 %v1804_v54, %v1803_v46  ;;  %v1806_v10 = vmul.f32 %v1798_v55, %v3839_v11  ;;  %v1857_v53 = vadd.f32 %v1856_v56, %v1855_v47  ;;  %v1902_v13 = vadd.f32 %v1901_v57, %v1900_v51  ;;  %v1996_v19 = vpop.permute.xlu0 %1995 }
 0x198   : > { %v1770_v12 = vrot.slane %v1763_v60, %v3713_v33  ;;  %v1851_v0 = vrot.slane %v1850_v63, 1  ;;  %v1908_v14 = vrot.slane %v1907_v3, 4  ;;  %v1999_v22 = vsel %vm1997_vm4, %v1992_v59, %v1994_v52  ;;  %v4297_v59 = vld [vmem:[%s3616_s5] sm:$0xff] }
 0x199   : > { %v1807_v17 = vmul.f32 %v1805_v6, %v3844_v16  ;;  %v1858_v20 = vrot.slane %v1857_v53, 1  ;;  %v1903_v21 = vrot.slane %v1902_v13, 2  ;;  %vm2105_vm6 = vcmp.lt.s32.totalorder %v3736_v38, 62 }
 0x19a   : > { %3118 = vst.msk [vmem:[%s3637_s24 + $0x32] ss:$8 sm:$0x3] %vm3719_vm1, %v1770_v12  ;;  %v1852_v26 = vadd.f32 %v1851_v0, %v1850_v63  ;;  %v1909_v27 = vadd.f32 %v1908_v14, %v1907_v3  ;;  %v1952_v23 = vcombine.high %v1950_v15, %v1950_v15  ;;  %v1954_v34 = vsel %vm264_vm0, %v1950_v15, 0.0  ;;  %v2050_v43 = vpop.permute.xlu1 %2049 }
 0x19b   : > { %v1810_v58 = vcombine.low %v1806_v10, %v1807_v17  ;;  %v1859_v35 = vadd.f32 %v1858_v20, %v1857_v53  ;;  %v1904_v36 = vadd.f32 %v1903_v21, %v1902_v13  ;;  %v1955_v39 = vrot.slane %v1954_v34, 4  ;;  %v2048_v47 = vpop.permute.xlu0 %2047 }
 0x19c   : > { %v1860_v24 = vmul.f32 %v1852_v26, %v3755_v8  ;;  %v1910_v32 = vrot.slane %v1909_v27, 2  ;;  %v1961_v4 = vsel %vm264_vm0, %v1952_v23, 0.0  ;;  %v1998_v40 = vsel %vm1997_vm4, %v1994_v52, %v1996_v19 }
 0x19d   : > { %v1817_v44 = vrot.slane %v1810_v58, %v3713_v33  ;;  %v1861_v42 = vmul.f32 %v1859_v35, %v3758_v9  ;;  %v1905_v45 = vrot.slane %v1904_v36, 1  ;;  %v1956_v46 = vadd.f32 %v1955_v39, %v1954_v34 }
 0x19e   : > { %v1911_v48 = vadd.f32 %v1910_v32, %v1909_v27  ;;  %v1962_v1 = vrot.slane %v1961_v4, 4  ;;  %v2002_v49 = vcombine.low %v1999_v22, %v1998_v40  ;;  %v2052_v50 = vsel %vm2051_vm5, %v2048_v47, %v2050_v43  ;;  %v2102_v3 = vpop.permute.xlu1 %2101 }
 0x19f   : > { %v1824_v51 = vrot.slane %v1817_v44, %v3713_v33  ;;  %v1864_v55 = vcombine.low %v1860_v24, %v1861_v42  ;;  %v1906_v52 = vadd.f32 %v1905_v45, %v1904_v36  ;;  %v1957_v54 = vrot.slane %v1956_v46, 2  ;;  %v2100_v13 = vpop.permute.xlu0 %2099 }
 0x1a0   : > { %v1912_v56 = vrot.slane %v1911_v48, 1  ;;  %v1963_v57 = vadd.f32 %v1962_v1, %v1961_v4  ;;  %v2004_v60 = vmul.f32 %v4297_v59, %v2002_v49  ;;  %v2053_v63 = vsel %vm2051_vm5, %v2046_v2, %v2048_v47 }
 0x1a1   : > { %3119 = vst.msk [vmem:[%s3637_s24 + $0x33] ss:$8 sm:$0x3] %vm3719_vm1, %v1824_v51  ;;  %v1871_v5 = vrot.slane %v1864_v55, %v3713_v33  ;;  %v1914_v6 = vmul.f32 %v1906_v52, %v3762_v18  ;;  %v1958_v10 = vadd.f32 %v1957_v54, %v1956_v46  ;;  %v2056_v53 = vcombine.low %v2053_v63, %v2052_v50 }
 0x1a2   : > { %v1913_v12 = vadd.f32 %v1912_v56, %v1911_v48  ;;  %v1964_v0 = vrot.slane %v1963_v57, 2  ;;  %v2006_v14 = vcombine.high %v2004_v60, %v2004_v60  ;;  %v2008_v15 = vsel %vm264_vm0, %v2004_v60, 0.0  ;;  %v2154_v23 = vpop.permute.xlu1 %2153 }
 0x1a3   : > { %v1878_v17 = vrot.slane %v1871_v5, %v3713_v33  ;;  %v1959_v2 = vrot.slane %v1958_v10, 1  ;;  %v2009_v20 = vrot.slane %v2008_v15, 4  ;;  %v2058_v21 = vmul.f32 %v4297_v59, %v2056_v53  ;;  %v2104_v39 = vpop.permute.xlu0 %2103 }
 0x1a4   : > { %v1915_v22 = vmul.f32 %v1913_v12, %v3772_v28  ;;  %v1965_v19 = vadd.f32 %v1964_v0, %v1963_v57  ;;  %v2015_v26 = vsel %vm264_vm0, %v2006_v14, 0.0  ;;  %v2107_v27 = vsel %vm2105_vm6, %v2100_v13, %v2102_v3 }
 0x1a5   : > { %3120 = vst.msk [vmem:[%s3637_s24 + $0x34] ss:$8 sm:$0x3] %vm3719_vm1, %v1878_v17  ;;  %v1960_v34 = vadd.f32 %v1959_v2, %v1958_v10  ;;  %v2010_v58 = vadd.f32 %v2009_v20, %v2008_v15  ;;  %v2016_v35 = vrot.slane %v2015_v26, 4  ;;  %v2060_v36 = vcombine.high %v2058_v21, %v2058_v21 }
 0x1a6   : > { %v1918_v24 = vcombine.low %v1914_v6, %v1915_v22  ;;  %v1966_v32 = vrot.slane %v1965_v19, 1  ;;  %v2062_v4 = vsel %vm264_vm0, %v2058_v21, 0.0  ;;  %v2106_v40 = vsel %vm2105_vm6, %v2102_v3, %v2104_v39  ;;  %v2158_v49 = vpop.permute.xlu1 %2157 }
 0x1a7   : > { %v1968_v43 = vmul.f32 %v1960_v34, %v3775_v30  ;;  %v2011_v44 = vrot.slane %v2010_v58, 2  ;;  %v2017_v42 = vadd.f32 %v2016_v35, %v2015_v26  ;;  %v2063_v45 = vrot.slane %v2062_v4, 4  ;;  %v2156_v54 = vpop.permute.xlu0 %2155 }
 0x1a8   : > { %v1925_v46 = vrot.slane %v1918_v24, %v3713_v33  ;;  %v1967_v47 = vadd.f32 %v1966_v32, %v1965_v19  ;;  %v2069_v48 = vsel %vm264_vm0, %v2060_v36, 0.0  ;;  %v2110_v1 = vcombine.low %v2107_v27, %v2106_v40 }
 0x1a9   : > { %v2012_v50 = vadd.f32 %v2011_v44, %v2010_v58  ;;  %v2018_v51 = vrot.slane %v2017_v42, 2  ;;  %v2064_v55 = vadd.f32 %v2063_v45, %v2062_v4  ;;  %v2070_v52 = vrot.slane %v2069_v48, 4 }
 0x1aa   : > { %v1932_v56 = vrot.slane %v1925_v46, %v3713_v33  ;;  %v1969_v57 = vmul.f32 %v1967_v47, %v3778_v31  ;;  %v2112_v60 = vmul.f32 %v4297_v59, %v2110_v1  ;;  %vm2159_vm7 = vcmp.lt.s32.totalorder %v3736_v38, 61  ;;  %v2210_v0 = vpop.permute.xlu1 %2209 }
 0x1ab   : > { %v2013_v63 = vrot.slane %v2012_v50, 1  ;;  %v2019_v3 = vadd.f32 %v2018_v51, %v2017_v42  ;;  %v2065_v5 = vrot.slane %v2064_v55, 2  ;;  %v2071_v6 = vadd.f32 %v2070_v52, %v2069_v48  ;;  %v2208_v20 = vpop.permute.xlu0 %2207 }
 0x1ac   : > { %3121 = vst.msk [vmem:[%s3637_s24 + $0x35] ss:$8 sm:$0x3] %vm3719_vm1, %v1932_v56  ;;  %v1972_v10 = vcombine.low %v1968_v43, %v1969_v57  ;;  %v2114_v53 = vcombine.high %v2112_v60, %v2112_v60  ;;  %v2116_v13 = vsel %vm264_vm0, %v2112_v60, 0.0  ;;  %v2160_v12 = vsel %vm2159_vm7, %v2156_v54, %v2158_v49 }
 0x1ad   : > { %v2014_v14 = vadd.f32 %v2013_v63, %v2012_v50  ;;  %v2020_v15 = vrot.slane %v2019_v3, 1  ;;  %v2066_v17 = vadd.f32 %v2065_v5, %v2064_v55  ;;  %v2072_v2 = vrot.slane %v2071_v6, 2 }
 0x1ae   : > { %v1979_v21 = vrot.slane %v1972_v10, %v3713_v33  ;;  %v2117_v22 = vrot.slane %v2116_v13, 4  ;;  %v2123_v19 = vsel %vm264_vm0, %v2114_v53, 0.0  ;;  %v2161_v26 = vsel %vm2159_vm7, %v2154_v23, %v2156_v54  ;;  %v2262_v4 = vpop.permute.xlu1 %2261 }
 0x1af   : > { %v2021_v27 = vadd.f32 %v2020_v15, %v2019_v3  ;;  %v2022_v34 = vmul.f32 %v2014_v14, %v3704_v25  ;;  %v2067_v58 = vrot.slane %v2066_v17, 1  ;;  %v2073_v35 = vadd.f32 %v2072_v2, %v2071_v6  ;;  %v2212_v42 = vpop.permute.xlu0 %2211 }
 0x1b0   : > { %v1986_v36 = vrot.slane %v1979_v21, %v3713_v33  ;;  %v2118_v39 = vadd.f32 %v2117_v22, %v2116_v13  ;;  %v2124_v24 = vrot.slane %v2123_v19, 4  ;;  %v2164_v32 = vcombine.low %v2161_v26, %v2160_v12 }
 0x1b1   : > { %v2023_v40 = vmul.f32 %v2021_v27, %v3707_v29  ;;  %v2068_v43 = vadd.f32 %v2067_v58, %v2066_v17  ;;  %v2074_v44 = vrot.slane %v2073_v35, 1  ;;  %vm2213_vm8 = vcmp.lt.s32.totalorder %v3736_v38, 51 }
 0x1b2   : > { %3122 = vst.msk [vmem:[%s3637_s24 + $0x36] ss:$8 sm:$0x3] %vm3719_vm1, %v1986_v36  ;;  %v2119_v23 = vrot.slane %v2118_v39, 2  ;;  %v2125_v45 = vadd.f32 %v2124_v24, %v2123_v19  ;;  %v2166_v46 = vmul.f32 %v4297_v59, %v2164_v32  ;;  %v2215_v47 = vsel %vm2213_vm8, %v2208_v20, %v2210_v0  ;;  %v2266_v56 = vpop.permute.xlu1 %2265 }
 0x1b3   : > { %v2026_v48 = vcombine.low %v2022_v34, %v2023_v40  ;;  %v2075_v1 = vadd.f32 %v2074_v44, %v2073_v35  ;;  %v2076_v49 = vmul.f32 %v2068_v43, %v3794_v61  ;;  %v2214_v50 = vsel %vm2213_vm8, %v2210_v0, %v2212_v42  ;;  %v2264_v5 = vpop.permute.xlu0 %2263 }
 0x1b4   : > { %v2120_v51 = vadd.f32 %v2119_v23, %v2118_v39  ;;  %v2126_v55 = vrot.slane %v2125_v45, 2  ;;  %v2168_v52 = vcombine.high %v2166_v46, %v2166_v46  ;;  %v2170_v54 = vsel %vm264_vm0, %v2166_v46, 0.0 }
 0x1b5   : > { %v2033_v57 = vrot.slane %v2026_v48, %v3713_v33  ;;  %v2077_v60 = vmul.f32 %v2075_v1, %v3797_v62  ;;  %v2171_v63 = vrot.slane %v2170_v54, 4  ;;  %v2218_v3 = vcombine.low %v2215_v47, %v2214_v50 }
 0x1b6   : > { %v2121_v6 = vrot.slane %v2120_v51, 1  ;;  %v2127_v10 = vadd.f32 %v2126_v55, %v2125_v45  ;;  %v2177_v53 = vsel %vm264_vm0, %v2168_v52, 0.0  ;;  %vm2267_vm9 = vcmp.lt.s32.totalorder %v3736_v38, 50  ;;  %v2318_v21 = vpop.permute.xlu1 %2317 }
 0x1b7   : > { %v2040_v13 = vrot.slane %v2033_v57, %v3713_v33  ;;  %v2080_v12 = vcombine.low %v2076_v49, %v2077_v60  ;;  %v2172_v0 = vadd.f32 %v2171_v63, %v2170_v54  ;;  %v2178_v14 = vrot.slane %v2177_v53, 4  ;;  %v2316_v34 = vpop.permute.xlu0 %2315 }
 0x1b8   : > { %v2122_v15 = vadd.f32 %v2121_v6, %v2120_v51  ;;  %v2128_v17 = vrot.slane %v2127_v10, 1  ;;  %v2220_v2 = vmul.f32 %v4297_v59, %v2218_v3  ;;  %v2268_v20 = vsel %vm2267_vm9, %v2264_v5, %v2266_v56 }
 0x1b9   : > { %3123 = vst.msk [vmem:[%s3637_s24 + $0x37] ss:$8 sm:$0x3] %vm3719_vm1, %v2040_v13  ;;  %v2087_v22 = vrot.slane %v2080_v12, %v3713_v33  ;;  %v2173_v19 = vrot.slane %v2172_v0, 2  ;;  %v2179_v26 = vadd.f32 %v2178_v14, %v2177_v53  ;;  %v2269_v27 = vsel %vm2267_vm9, %v2262_v4, %v2264_v5 }
 0x1ba   : > { %v2129_v58 = vadd.f32 %v2128_v17, %v2127_v10  ;;  %v2130_v35 = vmul.f32 %v2122_v15, %v3803_v7  ;;  %v2222_v36 = vcombine.high %v2220_v2, %v2220_v2  ;;  %v2224_v39 = vsel %vm264_vm0, %v2220_v2, 0.0  ;;  %v2370_v4 = vpop.permute.xlu1 %2369 }
 0x1bb   : > { %v2094_v24 = vrot.slane %v2087_v22, %v3713_v33  ;;  %v2174_v32 = vadd.f32 %v2173_v19, %v2172_v0  ;;  %v2180_v40 = vrot.slane %v2179_v26, 2  ;;  %v2225_v43 = vrot.slane %v2224_v39, 4  ;;  %v2320_v1 = vpop.permute.xlu0 %2319 }
 0x1bc   : > { %v2131_v44 = vmul.f32 %v2129_v58, %v3819_v41  ;;  %v2231_v42 = vsel %vm264_vm0, %v2222_v36, 0.0  ;;  %v2272_v23 = vcombine.low %v2269_v27, %v2268_v20  ;;  %vm2321_vm10 = vcmp.lt.s32.totalorder %v3736_v38, 49 }
 0x1bd   : > { %3124 = vst.msk [vmem:[%s3637_s24 + $0x40] ss:$8 sm:$0x3] %vm3719_vm1, %v2094_v24  ;;  %v2175_v45 = vrot.slane %v2174_v32, 1  ;;  %v2181_v46 = vadd.f32 %v2180_v40, %v2179_v26  ;;  %v2226_v47 = vadd.f32 %v2225_v43, %v2224_v39  ;;  %v2232_v48 = vrot.slane %v2231_v42, 4 }
 0x1be   : > { %v2134_v49 = vcombine.low %v2130_v35, %v2131_v44  ;;  %v2274_v50 = vmul.f32 %v4297_v59, %v2272_v23  ;;  %v2323_v51 = vsel %vm2321_vm10, %v2316_v34, %v2318_v21  ;;  %v2322_v55 = vsel %vm2321_vm10, %v2318_v21, %v2320_v1  ;;  %v2374_v6 = vpop.permute.xlu1 %2373 }
 0x1bf   : > { %v2176_v52 = vadd.f32 %v2175_v45, %v2174_v32  ;;  %v2182_v54 = vrot.slane %v2181_v46, 1  ;;  %v2227_v56 = vrot.slane %v2226_v47, 2  ;;  %v2233_v57 = vadd.f32 %v2232_v48, %v2231_v42  ;;  %v2372_v0 = vpop.permute.xlu0 %2371 }
 0x1c0   : > { %v2141_v60 = vrot.slane %v2134_v49, %v3713_v33  ;;  %v2276_v63 = vcombine.high %v2274_v50, %v2274_v50  ;;  %v2278_v3 = vsel %vm264_vm0, %v2274_v50, 0.0  ;;  %v2326_v5 = vcombine.low %v2323_v51, %v2322_v55 }
 0x1c1   : > { %v2183_v10 = vadd.f32 %v2182_v54, %v2181_v46  ;;  %v2184_v53 = vmul.f32 %v2176_v52, %v3839_v11  ;;  %v2228_v13 = vadd.f32 %v2227_v56, %v2226_v47  ;;  %v2234_v12 = vrot.slane %v2233_v57, 2 }
 0x1c2   : > { %v2148_v14 = vrot.slane %v2141_v60, %v3713_v33  ;;  %v2279_v15 = vrot.slane %v2278_v3, 4  ;;  %v2285_v17 = vsel %vm264_vm0, %v2276_v63, 0.0  ;;  %v2328_v2 = vmul.f32 %v4297_v59, %v2326_v5  ;;  %v2426_v58 = vpop.permute.xlu1 %2425 }
 0x1c3   : > { %v2185_v20 = vmul.f32 %v2183_v10, %v3844_v16  ;;  %v2229_v21 = vrot.slane %v2228_v13, 1  ;;  %v2235_v22 = vadd.f32 %v2234_v12, %v2233_v57  ;;  %v2286_v19 = vrot.slane %v2285_v17, 4  ;;  %v2424_v32 = vpop.permute.xlu0 %2423 }
 0x1c4   : > { %3125 = vst.msk [vmem:[%s3637_s24 + $0x41] ss:$8 sm:$0x3] %vm3719_vm1, %v2148_v14  ;;  %v2280_v26 = vadd.f32 %v2279_v15, %v2278_v3  ;;  %v2330_v27 = vcombine.high %v2328_v2, %v2328_v2  ;;  %v2332_v34 = vsel %vm264_vm0, %v2328_v2, 0.0  ;;  %vm2375_vm11 = vcmp.lt.s32.totalorder %v3736_v38, 48 }
 0x1c5   : > { %v2188_v35 = vcombine.low %v2184_v53, %v2185_v20  ;;  %v2230_v36 = vadd.f32 %v2229_v21, %v2228_v13  ;;  %v2236_v39 = vrot.slane %v2235_v22, 1  ;;  %v2287_v24 = vadd.f32 %v2286_v19, %v2285_v17 }
 0x1c6   : > { %v2281_v40 = vrot.slane %v2280_v26, 2  ;;  %v2333_v43 = vrot.slane %v2332_v34, 4  ;;  %v2339_v44 = vsel %vm264_vm0, %v2330_v27, 0.0  ;;  %v2376_v42 = vsel %vm2375_vm11, %v2372_v0, %v2374_v6  ;;  %v2478_v51 = vpop.permute.xlu1 %2477 }
 0x1c7   : > { %v2195_v23 = vrot.slane %v2188_v35, %v3713_v33  ;;  %v2237_v45 = vadd.f32 %v2236_v39, %v2235_v22  ;;  %v2238_v46 = vmul.f32 %v2230_v36, %v3755_v8  ;;  %v2288_v47 = vrot.slane %v2287_v24, 2  ;;  %v2428_v57 = vpop.permute.xlu0 %2427 }
 0x1c8   : > { %v2282_v48 = vadd.f32 %v2281_v40, %v2280_v26  ;;  %v2334_v1 = vadd.f32 %v2333_v43, %v2332_v34  ;;  %v2340_v49 = vrot.slane %v2339_v44, 4  ;;  %v2377_v50 = vsel %vm2375_vm11, %v2370_v4, %v2372_v0 }
 0x1c9   : > { %v2202_v55 = vrot.slane %v2195_v23, %v3713_v33  ;;  %v2239_v52 = vmul.f32 %v2237_v45, %v3758_v9  ;;  %v2289_v54 = vadd.f32 %v2288_v47, %v2287_v24  ;;  %v2380_v56 = vcombine.low %v2377_v50, %v2376_v42 }
 0x1ca   : > { %v2283_v60 = vrot.slane %v2282_v48, 1  ;;  %v2335_v63 = vrot.slane %v2334_v1, 2  ;;  %v2341_v3 = vadd.f32 %v2340_v49, %v2339_v44  ;;  %vm2429_vm12 = vcmp.lt.s32.totalorder %v3736_v38, 47  ;;  %v2482_v14 = vpop.permute.xlu1 %2481 }
 0x1cb   : > { %3126 = vst.msk [vmem:[%s3637_s24 + $0x42] ss:$8 sm:$0x3] %vm3719_vm1, %v2202_v55  ;;  %v2242_v5 = vcombine.low %v2238_v46, %v2239_v52  ;;  %v2290_v6 = vrot.slane %v2289_v54, 1  ;;  %v2382_v4 = vmul.f32 %v4297_v59, %v2380_v56  ;;  %v2431_v10 = vsel %vm2429_vm12, %v2424_v32, %v2426_v58  ;;  %v2480_v21 = vpop.permute.xlu0 %2479 }
 0x1cc   : > { %v2284_v53 = vadd.f32 %v2283_v60, %v2282_v48  ;;  %v2336_v13 = vadd.f32 %v2335_v63, %v2334_v1  ;;  %v2342_v12 = vrot.slane %v2341_v3, 2  ;;  %v2430_v0 = vsel %vm2429_vm12, %v2426_v58, %v2428_v57 }
 0x1cd   : > { %v2249_v15 = vrot.slane %v2242_v5, %v3713_v33  ;;  %v2291_v17 = vadd.f32 %v2290_v6, %v2289_v54  ;;  %v2384_v2 = vcombine.high %v2382_v4, %v2382_v4  ;;  %v2386_v20 = vsel %vm264_vm0, %v2382_v4, 0.0 }
 0x1ce   : > { %v2292_v22 = vmul.f32 %v2284_v53, %v3762_v18  ;;  %v2337_v19 = vrot.slane %v2336_v13, 1  ;;  %v2343_v26 = vadd.f32 %v2342_v12, %v2341_v3  ;;  %v2387_v27 = vrot.slane %v2386_v20, 4  ;;  %v2534_v43 = vpop.permute.xlu1 %2533 }
 0x1cf   : > { %v2256_v34 = vrot.slane %v2249_v15, %v3713_v33  ;;  %v2293_v35 = vmul.f32 %v2291_v17, %v3772_v28  ;;  %v2393_v58 = vsel %vm264_vm0, %v2384_v2, 0.0  ;;  %v2434_v36 = vcombine.low %v2431_v10, %v2430_v0  ;;  %v2532_v23 = vpop.permute.xlu0 %2531 }
 0x1d0   : > { %v2338_v39 = vadd.f32 %v2337_v19, %v2336_v13  ;;  %v2344_v24 = vrot.slane %v2343_v26, 1  ;;  %v2388_v32 = vadd.f32 %v2387_v27, %v2386_v20  ;;  %v2394_v40 = vrot.slane %v2393_v58, 4 }
 0x1d1   : > { %3127 = vst.msk [vmem:[%s3637_s24 + $0x43] ss:$8 sm:$0x3] %vm3719_vm1, %v2256_v34  ;;  %v2296_v44 = vcombine.low %v2292_v22, %v2293_v35  ;;  %v2436_v42 = vmul.f32 %v4297_v59, %v2434_v36  ;;  %vm2483_vm13 = vcmp.lt.s32.totalorder %v3736_v38, 46  ;;  %vm2537_vm14 = vcmp.lt.s32.totalorder %v3736_v38, 45 }
 0x1d2   : > { %v2345_v45 = vadd.f32 %v2344_v24, %v2343_v26  ;;  %v2346_v46 = vmul.f32 %v2338_v39, %v3775_v30  ;;  %v2389_v47 = vrot.slane %v2388_v32, 2  ;;  %v2395_v48 = vadd.f32 %v2394_v40, %v2393_v58  ;;  %v2586_v60 = vpop.permute.xlu1 %2585 }
 0x1d3   : > { %v2303_v1 = vrot.slane %v2296_v44, %v3713_v33  ;;  %v2438_v49 = vcombine.high %v2436_v42, %v2436_v42  ;;  %v2440_v50 = vsel %vm264_vm0, %v2436_v42, 0.0  ;;  %v2484_v55 = vsel %vm2483_vm13, %v2480_v21, %v2482_v14  ;;  %v2536_v4 = vpop.permute.xlu0 %2535 }
 0x1d4   : > { %v2347_v52 = vmul.f32 %v2345_v45, %v3778_v31  ;;  %v2390_v54 = vadd.f32 %v2389_v47, %v2388_v32  ;;  %v2396_v56 = vrot.slane %v2395_v48, 2  ;;  %v2441_v57 = vrot.slane %v2440_v50, 4 }
 0x1d5   : > { %v2310_v63 = vrot.slane %v2303_v1, %v3713_v33  ;;  %v2447_v3 = vsel %vm264_vm0, %v2438_v49, 0.0  ;;  %v2485_v5 = vsel %vm2483_vm13, %v2478_v51, %v2480_v21  ;;  %v2539_v6 = vsel %vm2537_vm14, %v2532_v23, %v2534_v43 }
 0x1d6   : > { %v2350_v10 = vcombine.low %v2346_v46, %v2347_v52  ;;  %v2391_v53 = vrot.slane %v2390_v54, 1  ;;  %v2397_v13 = vadd.f32 %v2396_v56, %v2395_v48  ;;  %v2442_v12 = vadd.f32 %v2441_v57, %v2440_v50  ;;  %v2590_v21 = vpop.permute.xlu1 %2589 }
 0x1d7   : > { %3128 = vst.msk [vmem:[%s3637_s24 + $0x44] ss:$8 sm:$0x3] %vm3719_vm1, %v2310_v63  ;;  %v2448_v0 = vrot.slane %v2447_v3, 4  ;;  %v2488_v14 = vcombine.low %v2485_v5, %v2484_v55  ;;  %v2538_v15 = vsel %vm2537_vm14, %v2534_v43, %v2536_v4  ;;  %vm2591_vm15 = vcmp.lt.s32.totalorder %v3736_v38, 35  ;;  %v2588_v27 = vpop.permute.xlu0 %2587 }
 0x1d8   : > { %v2357_v51 = vrot.slane %v2350_v10, %v3713_v33  ;;  %v2392_v17 = vadd.f32 %v2391_v53, %v2390_v54  ;;  %v2398_v2 = vrot.slane %v2397_v13, 1  ;;  %v2443_v20 = vrot.slane %v2442_v12, 2 }
 0x1d9   : > { %v2449_v22 = vadd.f32 %v2448_v0, %v2447_v3  ;;  %v2490_v19 = vmul.f32 %v4297_v59, %v2488_v14  ;;  %v2542_v26 = vcombine.low %v2539_v6, %v2538_v15  ;;  %vm2645_vm2 = vcmp.lt.s32.totalorder %v3736_v38, 34 }
 0x1da   : > { %v2364_v34 = vrot.slane %v2357_v51, %v3713_v33  ;;  %v2399_v35 = vadd.f32 %v2398_v2, %v2397_v13  ;;  %v2400_v58 = vmul.f32 %v2392_v17, %v3704_v25  ;;  %v2444_v36 = vadd.f32 %v2443_v20, %v2442_v12  ;;  %v2642_v45 = vpop.permute.xlu1 %2641 }
 0x1db   : > { %v2450_v39 = vrot.slane %v2449_v22, 2  ;;  %v2492_v24 = vcombine.high %v2490_v19, %v2490_v19  ;;  %v2494_v32 = vsel %vm264_vm0, %v2490_v19, 0.0  ;;  %v2544_v40 = vmul.f32 %v4297_v59, %v2542_v26  ;;  %v2640_v49 = vpop.permute.xlu0 %2639 }
 0x1dc   : > { %3129 = vst.msk [vmem:[%s3637_s24 + $0x45] ss:$8 sm:$0x3] %vm3719_vm1, %v2364_v34  ;;  %v2401_v43 = vmul.f32 %v2399_v35, %v3707_v29  ;;  %v2445_v44 = vrot.slane %v2444_v36, 1  ;;  %v2495_v42 = vrot.slane %v2494_v32, 4  ;;  %v2592_v23 = vsel %vm2591_vm15, %v2588_v27, %v2590_v21 }
 0x1dd   : > { %v2451_v46 = vadd.f32 %v2450_v39, %v2449_v22  ;;  %v2501_v47 = vsel %vm264_vm0, %v2492_v24, 0.0  ;;  %v2546_v48 = vcombine.high %v2544_v40, %v2544_v40  ;;  %v2548_v1 = vsel %vm264_vm0, %v2544_v40, 0.0 }
 0x1de   : > { %v2404_v50 = vcombine.low %v2400_v58, %v2401_v43  ;;  %v2446_v55 = vadd.f32 %v2445_v44, %v2444_v36  ;;  %v2496_v52 = vadd.f32 %v2495_v42, %v2494_v32  ;;  %v2502_v54 = vrot.slane %v2501_v47, 4  ;;  %v4443_v53 = vpop.permute.xlu1 %2693 }
 0x1df   : > { %v2452_v56 = vrot.slane %v2451_v46, 1  ;;  %v2549_v57 = vrot.slane %v2548_v1, 4  ;;  %v2555_v63 = vsel %vm264_vm0, %v2546_v48, 0.0  ;;  %v2593_v3 = vsel %vm2591_vm15, %v2586_v60, %v2588_v27  ;;  %v2644_v15 = vpop.permute.xlu0 %2643 }
 0x1e0   : > { %v2411_v5 = vrot.slane %v2404_v50, %v3713_v33  ;;  %v2454_v6 = vmul.f32 %v2446_v55, %v3794_v61  ;;  %v2497_v4 = vrot.slane %v2496_v52, 2  ;;  %v2503_v10 = vadd.f32 %v2502_v54, %v2501_v47 }
 0x1e1   : > { %v2453_v13 = vadd.f32 %v2452_v56, %v2451_v46  ;;  %v2550_v12 = vadd.f32 %v2549_v57, %v2548_v1  ;;  %v2556_v0 = vrot.slane %v2555_v63, 4  ;;  %v2596_v14 = vcombine.low %v2593_v3, %v2592_v23 }
 0x1e2   : > { %v2418_v51 = vrot.slane %v2411_v5, %v3713_v33  ;;  %v2498_v17 = vadd.f32 %v2497_v4, %v2496_v52  ;;  %v2504_v2 = vrot.slane %v2503_v10, 2  ;;  %v2647_v60 = vsel %vm2645_vm2, %v2640_v49, %v2642_v45  ;;  %v2698_v35 = vpop.permute.xlu1 %2697 }
 0x1e3   : > { %v2455_v20 = vmul.f32 %v2453_v13, %v3797_v62  ;;  %v2551_v21 = vrot.slane %v2550_v12, 2  ;;  %v2557_v22 = vadd.f32 %v2556_v0, %v2555_v63  ;;  %v2598_v19 = vmul.f32 %v4297_v59, %v2596_v14  ;;  %v2696_v32 = vpop.permute.xlu0 %2695 }
 0x1e4   : > { %3130 = vst.msk [vmem:[%s3637_s24 + $0x46] ss:$8 sm:$0x3] %vm3719_vm1, %v2418_v51  ;;  %v2499_v26 = vrot.slane %v2498_v17, 1  ;;  %v2505_v27 = vadd.f32 %v2504_v2, %v2503_v10  ;;  %v2646_v34 = vsel %vm2645_vm2, %v2642_v45, %v2644_v15  ;;  %vm2699_vm3 = vcmp.lt.s32.totalorder %v3736_v38, 33 }
 0x1e5   : > { %v2458_v58 = vcombine.low %v2454_v6, %v2455_v20  ;;  %v2552_v36 = vadd.f32 %v2551_v21, %v2550_v12  ;;  %v2558_v39 = vrot.slane %v2557_v22, 2  ;;  %v2600_v24 = vcombine.high %v2598_v19, %v2598_v19 }
 0x1e6   : > { %v2500_v40 = vadd.f32 %v2499_v26, %v2498_v17  ;;  %v2506_v43 = vrot.slane %v2505_v27, 1  ;;  %v2602_v44 = vsel %vm264_vm0, %v2598_v19, 0.0  ;;  %v2650_v42 = vcombine.low %v2647_v60, %v2646_v34  ;;  %v2750_v55 = vpop.permute.xlu1 %2749 }
 0x1e7   : > { %v2465_v23 = vrot.slane %v2458_v58, %v3713_v33  ;;  %v2553_v46 = vrot.slane %v2552_v36, 1  ;;  %v2559_v47 = vadd.f32 %v2558_v39, %v2557_v22  ;;  %v2603_v48 = vrot.slane %v2602_v44, 4  ;;  %v2748_v63 = vpop.permute.xlu0 %2747 }
 0x1e8   : > { %v2507_v45 = vadd.f32 %v2506_v43, %v2505_v27  ;;  %v2508_v1 = vmul.f32 %v2500_v40, %v3803_v7  ;;  %v2609_v49 = vsel %vm264_vm0, %v2600_v24, 0.0  ;;  %v2652_v50 = vmul.f32 %v4297_v59, %v2650_v42 }
 0x1e9   : > { %v2472_v52 = vrot.slane %v2465_v23, %v3713_v33  ;;  %v2554_v54 = vadd.f32 %v2553_v46, %v2552_v36  ;;  %v2560_v56 = vrot.slane %v2559_v47, 1  ;;  %v2604_v57 = vadd.f32 %v2603_v48, %v2602_v44 }
 0x1ea   : > { %v2509_v3 = vmul.f32 %v2507_v45, %v3819_v41  ;;  %v2610_v5 = vrot.slane %v2609_v49, 4  ;;  %v2654_v6 = vcombine.high %v2652_v50, %v2652_v50  ;;  %v2656_v4 = vsel %vm264_vm0, %v2652_v50, 0.0  ;;  %v2802_v2 = vpop.permute.xlu1 %2801 }
 0x1eb   : > { %3131 = vst.msk [vmem:[%s3637_s24 + $0x47] ss:$8 sm:$0x3] %vm3719_vm1, %v2472_v52  ;;  %v2561_v10 = vadd.f32 %v2560_v56, %v2559_v47  ;;  %v2562_v13 = vmul.f32 %v2554_v54, %v3839_v11  ;;  %v2605_v12 = vrot.slane %v2604_v57, 2  ;;  %v2657_v0 = vrot.slane %v2656_v4, 4  ;;  %v2752_v19 = vpop.permute.xlu0 %2751 }
 0x1ec   : > { %v2512_v14 = vcombine.low %v2508_v1, %v2509_v3  ;;  %v2611_v15 = vadd.f32 %v2610_v5, %v2609_v49  ;;  %v2663_v51 = vsel %vm264_vm0, %v2654_v6, 0.0  ;;  %v2700_v17 = vsel %vm2699_vm3, %v2696_v32, %v2698_v35 }
 0x1ed   : > { %v2563_v60 = vmul.f32 %v2561_v10, %v3844_v16  ;;  %v2606_v20 = vadd.f32 %v2605_v12, %v2604_v57  ;;  %v2658_v21 = vadd.f32 %v2657_v0, %v2656_v4  ;;  %v2664_v22 = vrot.slane %v2663_v51, 4 }
 0x1ee   : > { %v2519_v26 = vrot.slane %v2512_v14, %v3713_v33  ;;  %v2612_v27 = vrot.slane %v2611_v15, 2  ;;  %v2701_v34 = vsel %vm2699_vm3, %v4443_v53, %v2696_v32  ;;  %vm2753_vm4 = vcmp.lt.s32.totalorder %v3736_v38, 32  ;;  %v2806_v42 = vpop.permute.xlu1 %2805 }
 0x1ef   : > { %v2566_v58 = vcombine.low %v2562_v13, %v2563_v60  ;;  %v2607_v36 = vrot.slane %v2606_v20, 1  ;;  %v2659_v35 = vrot.slane %v2658_v21, 2  ;;  %v2665_v39 = vadd.f32 %v2664_v22, %v2663_v51  ;;  %v2804_v32 = vpop.permute.xlu0 %2803 }
 0x1f0   : > { %v2526_v24 = vrot.slane %v2519_v26, %v3713_v33  ;;  %v2613_v40 = vadd.f32 %v2612_v27, %v2611_v15  ;;  %v2704_v43 = vcombine.low %v2701_v34, %v2700_v17  ;;  %v2755_v44 = vsel %vm2753_vm4, %v2748_v63, %v2750_v55 }
 0x1f1   : > { %v2573_v23 = vrot.slane %v2566_v58, %v3713_v33  ;;  %v2608_v46 = vadd.f32 %v2607_v36, %v2606_v20  ;;  %v2660_v47 = vadd.f32 %v2659_v35, %v2658_v21  ;;  %v2666_v53 = vrot.slane %v2665_v39, 2 }
 0x1f2   : > { %3132 = vst.msk [vmem:[%s3637_s24 + $0x50] ss:$8 sm:$0x3] %vm3719_vm1, %v2526_v24  ;;  %v2614_v48 = vrot.slane %v2613_v40, 1  ;;  %v2706_v45 = vmul.f32 %v4297_v59, %v2704_v43  ;;  %v2754_v1 = vsel %vm2753_vm4, %v2750_v55, %v2752_v19  ;;  %vm2807_vm5 = vcmp.lt.s32.totalorder %v3736_v38, 31  ;;  %v2858_v5 = vpop.permute.xlu1 %2857 }
 0x1f3   : > { %v2580_v49 = vrot.slane %v2573_v23, %v3713_v33  ;;  %v2616_v50 = vmul.f32 %v2608_v46, %v3755_v8  ;;  %v2661_v52 = vrot.slane %v2660_v47, 1  ;;  %v2667_v54 = vadd.f32 %v2666_v53, %v2665_v39  ;;  %v2856_v13 = vpop.permute.xlu0 %2855 }
 0x1f4   : > { %v2615_v56 = vadd.f32 %v2614_v48, %v2613_v40  ;;  %v2708_v57 = vcombine.high %v2706_v45, %v2706_v45  ;;  %v2710_v63 = vsel %vm264_vm0, %v2706_v45, 0.0  ;;  %v2758_v3 = vcombine.low %v2755_v44, %v2754_v1 }
 0x1f5   : > { %3133 = vst.msk [vmem:[%s3637_s24 + $0x51] ss:$8 sm:$0x3] %vm3719_vm1, %v2580_v49  ;;  %v2662_v6 = vadd.f32 %v2661_v52, %v2660_v47  ;;  %v2668_v4 = vrot.slane %v2667_v54, 1  ;;  %v2711_v55 = vrot.slane %v2710_v63, 4  ;;  %v2808_v10 = vsel %vm2807_vm5, %v2804_v32, %v2806_v42 }
 0x1f6   : > { %v2617_v8 = vmul.f32 %v2615_v56, %v3758_v9  ;;  %v2717_v12 = vsel %vm264_vm0, %v2708_v57, 0.0  ;;  %v2760_v0 = vmul.f32 %v4297_v59, %v2758_v3  ;;  %v2809_v14 = vsel %vm2807_vm5, %v2802_v2, %v2804_v32 }
 0x1f7   : > { %v2669_v15 = vadd.f32 %v2668_v4, %v2667_v54  ;;  %v2670_v51 = vmul.f32 %v2662_v6, %v3762_v18  ;;  %v2712_v17 = vadd.f32 %v2711_v55, %v2710_v63  ;;  %v2718_v60 = vrot.slane %v2717_v12, 4  ;;  %v2910_v18 = vpop.permute.xlu1 %2909  ;;  %v2860_v35 = vpop.permute.xlu0 %2859 }
 0x1f8   : > { %v2620_v20 = vcombine.low %v2616_v50, %v2617_v8  ;;  %v2762_v21 = vcombine.high %v2760_v0, %v2760_v0  ;;  %v2764_v22 = vsel %vm264_vm0, %v2760_v0, 0.0  ;;  %v2812_v19 = vcombine.low %v2809_v14, %v2808_v10 }
 0x1f9   : > { %v2671_v26 = vmul.f32 %v2669_v15, %v3772_v28  ;;  %v2713_v9 = vrot.slane %v2712_v17, 2  ;;  %v2719_v27 = vadd.f32 %v2718_v60, %v2717_v12  ;;  %v2765_v34 = vrot.slane %v2764_v22, 4 }
 0x1fa   : > { %v2627_v58 = vrot.slane %v2620_v20, %v3713_v33  ;;  %v2771_v36 = vsel %vm264_vm0, %v2762_v21, 0.0  ;;  %v2814_v2 = vmul.f32 %v4297_v59, %v2812_v19  ;;  %vm2861_vm6 = vcmp.lt.s32.totalorder %v3736_v38, 30 }
 0x1fb   : > { %v2674_v39 = vcombine.low %v2670_v51, %v2671_v26  ;;  %v2714_v24 = vadd.f32 %v2713_v9, %v2712_v17  ;;  %v2720_v40 = vrot.slane %v2719_v27, 2  ;;  %v2766_v43 = vadd.f32 %v2765_v34, %v2764_v22  ;;  %v2914_v4 = vpop.permute.xlu1 %2913  ;;  %v2912_v55 = vpop.permute.xlu0 %2911 }
 0x1fc   : > { %v2634_v28 = vrot.slane %v2627_v58, %v3713_v33  ;;  %v2772_v44 = vrot.slane %v2771_v36, 4  ;;  %v2816_v42 = vcombine.high %v2814_v2, %v2814_v2  ;;  %v2818_v23 = vsel %vm264_vm0, %v2814_v2, 0.0 }
 0x1fd   : > { %v2681_v46 = vrot.slane %v2674_v39, %v3713_v33  ;;  %v2715_v47 = vrot.slane %v2714_v24, 1  ;;  %v2721_v53 = vadd.f32 %v2720_v40, %v2719_v27  ;;  %v2767_v32 = vrot.slane %v2766_v43, 2 }
 0x1fe   : > { %3134 = vst.msk [vmem:[%s3637_s24 + $0x52] ss:$8 sm:$0x3] %vm3719_vm1, %v2634_v28  ;;  %v2773_v48 = vadd.f32 %v2772_v44, %v2771_v36  ;;  %v2819_v45 = vrot.slane %v2818_v23, 4  ;;  %v2825_v1 = vsel %vm264_vm0, %v2816_v42, 0.0  ;;  %v2863_v49 = vsel %vm2861_vm6, %v2856_v13, %v2858_v5 }
 0x1ff   : > { %v2688_v50 = vrot.slane %v2681_v46, %v3713_v33  ;;  %v2716_v52 = vadd.f32 %v2715_v47, %v2714_v24  ;;  %v2722_v54 = vrot.slane %v2721_v53, 1  ;;  %v2768_v56 = vadd.f32 %v2767_v32, %v2766_v43 }
 0x200   : > { %v2774_v57 = vrot.slane %v2773_v48, 2  ;;  %v2820_v63 = vadd.f32 %v2819_v45, %v2818_v23  ;;  %v2826_v3 = vrot.slane %v2825_v1, 4  ;;  %v2862_v6 = vsel %vm2861_vm6, %v2858_v5, %v2860_v35 }
 0x201   : > { %3135 = vst.msk [vmem:[%s3637_s24 + $0x53] ss:$8 sm:$0x3] %vm3719_vm1, %v2688_v50  ;;  %v2723_v10 = vadd.f32 %v2722_v54, %v2721_v53  ;;  %v2724_v8 = vmul.f32 %v2716_v52, %v3775_v30  ;;  %v2769_v13 = vrot.slane %v2768_v56, 1  ;;  %v2866_v12 = vcombine.low %v2863_v49, %v2862_v6 }
 0x202   : > { %v2775_v0 = vadd.f32 %v2774_v57, %v2773_v48  ;;  %v2821_v14 = vrot.slane %v2820_v63, 2  ;;  %v2827_v15 = vadd.f32 %v2826_v3, %v2825_v1  ;;  %vm2915_vm7 = vcmp.lt.s32.totalorder %v3736_v38, 29 }
 0x203   : > { %v2725_v51 = vmul.f32 %v2723_v10, %v3778_v31  ;;  %v2770_v17 = vadd.f32 %v2769_v13, %v2768_v56  ;;  %v2868_v5 = vmul.f32 %v4297_v59, %v2866_v12  ;;  %v2916_v60 = vsel %vm2915_vm7, %v2912_v55, %v2914_v4 }
 0x204   : > { %v2776_v20 = vrot.slane %v2775_v0, 1  ;;  %v2822_v21 = vadd.f32 %v2821_v14, %v2820_v63  ;;  %v2828_v22 = vrot.slane %v2827_v15, 2  ;;  %v2917_v19 = vsel %vm2915_vm7, %v2910_v18, %v2912_v55 }
 0x205   : > { %v2728_v26 = vcombine.low %v2724_v8, %v2725_v51  ;;  %v2870_v9 = vcombine.high %v2868_v5, %v2868_v5  ;;  %v2872_v30 = vsel %vm264_vm0, %v2868_v5, 0.0  ;;  %v2778_v31 = vmul.f32 %v2770_v17, %v3704_v25 }
 0x206   : > { %v2777_v27 = vadd.f32 %v2776_v20, %v2775_v0  ;;  %v2823_v34 = vrot.slane %v2822_v21, 1  ;;  %v2829_v58 = vadd.f32 %v2828_v22, %v2827_v15  ;;  %v2873_v36 = vrot.slane %v2872_v30, 4 }
 0x207   : > { %v2735_v38 = vrot.slane %v2728_v26, %v3713_v33  ;;  %v2879_v2 = vsel %vm264_vm0, %v2870_v9, 0.0  ;;  %v2920_v35 = vcombine.low %v2917_v19, %v2916_v60 }
 0x208   : > { %v2779_v39 = vmul.f32 %v2777_v27, %v3707_v29  ;;  %v2824_v24 = vadd.f32 %v2823_v34, %v2822_v21  ;;  %v2830_v18 = vrot.slane %v2829_v58, 1  ;;  %v2874_v40 = vadd.f32 %v2873_v36, %v2872_v30 }
 0x209   : > { %v2742_v43 = vrot.slane %v2735_v38, %v3713_v33  ;;  %v2880_v28 = vrot.slane %v2879_v2, 4  ;;  %v2922_v44 = vmul.f32 %v4297_v59, %v2920_v35 }
 0x20a   : > { %v2782_v42 = vcombine.low %v2778_v31, %v2779_v39  ;;  %v2831_v23 = vadd.f32 %v2830_v18, %v2829_v58  ;;  %v2875_v46 = vrot.slane %v2874_v40, 2  ;;  %v2832_v25 = vmul.f32 %v2824_v24, %v3794_v61 }
 0x20b   : > { %3136 = vst.msk [vmem:[%s3637_s24 + $0x54] ss:$8 sm:$0x3] %vm3719_vm1, %v2742_v43  ;;  %v2881_v47 = vadd.f32 %v2880_v28, %v2879_v2  ;;  %v2924_v53 = vcombine.high %v2922_v44, %v2922_v44  ;;  %v2926_v29 = vsel %vm264_vm0, %v2922_v44, 0.0 }
 0x20c   : > { %v2789_v32 = vrot.slane %v2782_v42, %v3713_v33  ;;  %v2833_v48 = vmul.f32 %v2831_v23, %v3797_v62  ;;  %v2876_v45 = vadd.f32 %v2875_v46, %v2874_v40  ;;  %v2927_v1 = vrot.slane %v2926_v29, 4 }
 0x20d   : > { %v2882_v59 = vrot.slane %v2881_v47, 2  ;;  %v2933_v49 = vsel %vm264_vm0, %v2924_v53, 0.0 }
 0x20e   : > { %v2796_v50 = vrot.slane %v2789_v32, %v3713_v33  ;;  %v2836_v52 = vcombine.low %v2832_v25, %v2833_v48  ;;  %v2877_v54 = vrot.slane %v2876_v45, 1  ;;  %v2928_v61 = vadd.f32 %v2927_v1, %v2926_v29 }
 0x20f   : > { %v2883_v56 = vadd.f32 %v2882_v59, %v2881_v47  ;;  %v2934_v57 = vrot.slane %v2933_v49, 4 }
 0x210   : > { %3137 = vst.msk [vmem:[%s3637_s24 + $0x55] ss:$8 sm:$0x3] %vm3719_vm1, %v2796_v50  ;;  %v2843_v63 = vrot.slane %v2836_v52, %v3713_v33  ;;  %v2929_v3 = vrot.slane %v2928_v61, 2  ;;  %v2878_v62 = vadd.f32 %v2877_v54, %v2876_v45 }
 0x211   : > { %v2884_v6 = vrot.slane %v2883_v56, 1  ;;  %v2935_v4 = vadd.f32 %v2934_v57, %v2933_v49 }
 0x212   : > { %v2850_v55 = vrot.slane %v2843_v63, %v3713_v33  ;;  %v2930_v10 = vadd.f32 %v2929_v3, %v2928_v61  ;;  %v2886_v0 = vmul.f32 %v2878_v62, %v3803_v7 }
 0x213   : > { %v2885_v8 = vadd.f32 %v2884_v6, %v2883_v56  ;;  %v2936_v13 = vrot.slane %v2935_v4, 2 }
 0x214   : > { %3138 = vst.msk [vmem:[%s3637_s24 + $0x56] ss:$8 sm:$0x3] %vm3719_vm1, %v2850_v55  ;;  %v2931_v12 = vrot.slane %v2930_v10, 1 }
 0x215   : > { %v2887_v14 = vmul.f32 %v2885_v8, %v3819_v41  ;;  %v2937_v15 = vadd.f32 %v2936_v13, %v2935_v4 }
 0x216   : > { %v2932_v17 = vadd.f32 %v2931_v12, %v2930_v10 }
 0x217   : > { %v2890_v51 = vcombine.low %v2886_v0, %v2887_v14  ;;  %v2938_v5 = vrot.slane %v2937_v15, 1 }
 0x218   : > { %v2940_v22 = vmul.f32 %v2932_v17, %v3839_v11 }
 0x219   : > { %v2897_v60 = vrot.slane %v2890_v51, %v3713_v33  ;;  %v2939_v20 = vadd.f32 %v2938_v5, %v2937_v15 }
 0x21b   : > { %v2904_v21 = vrot.slane %v2897_v60, %v3713_v33  ;;  %v2941_v19 = vmul.f32 %v2939_v20, %v3844_v16 }
 0x21d   : > { %3139 = vst.msk [vmem:[%s3637_s24 + $0x57] ss:$8 sm:$0x3] %vm3719_vm1, %v2904_v21  ;;  %v2944_v26 = vcombine.low %v2940_v22, %v2941_v19 }
 0x21f   : > { %v2951_v7 = vrot.slane %v2944_v26, %v3713_v33 }
 0x221   : > { %v2958_v41 = vrot.slane %v2951_v7, %v3713_v33 }
 0x223   : > { %3140 = vst.msk [vmem:[%s3637_s24 + $0x60] ss:$8 sm:$0x3] %vm3719_vm1, %v2958_v41 }
 0x224 PF: > { %s17_s17 = sadd.s32 1, %s3406_s17   ;;  %s4603_s12 = smov %s3390_s13 }
 0x225   : > { %p14_p6 = scmp.ge.s32.totalorder %s17_s17, 4   ;;  %s4604_s13 = smov %s3394_s14 }
 0x226   : > { %s4605_s14 = smov %s3571_s22  ;;  %s4606_s15 = smov %s3402_s16 }
 0x227   : > { %s4607_s16 = smov %s4609_s25  ;;  %16 = sbr.rel (!%p14_p6) target bundleno = 5 (0x5), region = 132 }
 0x22e   :  { %2993 = vsyncpa [#allocation5], 1 }
 0x22f   :  { %2995 = vsyncpa [#allocation5 + $0x1], 1 }
 0x230   :  { %2996 = vsyncpa [#allocation7], 1 }
 0x231   :  { %2998 = vsyncpa [#allocation7 + $0x1], 1 }
 0x232   :  { %2999 = vsyncmov [#allocation3] }
 0x235   :  { %s3000_s5 = vpop.sfrf %2999 }
 0x236   :  { %p3143_p7 = scmp.ne.s32.totalorder %s3000_s5, 0 }
 0x238   :  { %3004 = shalt.err (%p3143_p7)  }

</bundles_post_ra>
